<compile_context>
chip_gen: v6e
topology: v6e:2x2x1
jax: 0.10.0
libtpu: 0.0.40
codegen_flags: <defaults>
</compile_context>

<pallas_src>
import jax
import jax.numpy as jnp
from jax import lax
from jax.experimental import pallas as pl
from jax.experimental.pallas import tpu as pltpu


# ---------------------------------------------------------------------------
# Kernel body
# ---------------------------------------------------------------------------
def _bottleneck_body(x_ref, w1_ref, s1_ref, b1_ref, w2_ref, w3_ref, b3_ref,
                     wsc_ref, bsc_ref, out_ref):
    _, TH, W, Cout = out_ref.shape
    Cin = x_ref.shape[-1]
    mid = w1_ref.shape[1]

    h = pl.program_id(1)
    last = pl.num_programs(1) - 1

    # ---- window of TH+2 rows of the H-padded input (halo rows included) ----
    r0 = pl.multiple_of(h * TH, TH)
    xs = x_ref[:, pl.ds(r0, TH + 2), :, :]                    # (1, TH+2, W, Cin) bf16
    xf = xs.reshape((TH + 2) * W, Cin)

    # ---- conv1 (1x1) over interior + halo rows, then bn1(relu(.)) ----
    c1 = jnp.dot(xf, w1_ref[...], preferred_element_type=jnp.float32)
    q = jnp.maximum(c1, 0.0) * s1_ref[...] + b1_ref[...]      # ((TH+2)*W, mid) f32
    q = q.reshape(TH + 2, W, mid)

    # zero the conv2 halo rows that fall outside the image (top / bottom tiles only)
    top_keep = (h > 0).astype(q.dtype)
    bot_keep = (h < last).astype(q.dtype)
    q = jnp.concatenate([q[0:1] * top_keep,
                         q[1:TH + 1],
                         q[TH + 1:TH + 2] * bot_keep], axis=0).astype(jnp.bfloat16)

    # column-shifted copies realize conv2's width-1 zero padding (no scratch stores)
    zc = jnp.zeros((TH + 2, 1, mid), jnp.bfloat16)
    q_l = jnp.concatenate([zc, q[:, :W - 1, :]], axis=1)      # col c holds q[:, c-1]
    q_r = jnp.concatenate([q[:, 1:, :], zc], axis=1)          # col c holds q[:, c+1]
    taps = (q_l, q, q_r)

    # ---- conv2 (3x3, pad=1, stride=1) as ONE im2col matmul with K = 9*mid ----
    patch = jnp.concatenate(
        [taps[dx][dy:dy + TH].reshape(TH * W, mid)
         for dy in range(3) for dx in range(3)],
        axis=-1)                                              # (TH*W, 9*mid) bf16
    c2 = jnp.dot(patch, w2_ref[...], preferred_element_type=jnp.float32)

    # bn2(relu(.)) and bn3 are folded into w3/b3
    a2 = jnp.maximum(c2, 0.0).astype(jnp.bfloat16)
    c3 = jnp.dot(a2, w3_ref[...], preferred_element_type=jnp.float32) + b3_ref[...]

    # ---- shortcut over the TH interior rows only ----
    x_int = xs[:, 1:TH + 1].reshape(TH * W, Cin)
    if wsc_ref is None:
        sc = x_int.astype(jnp.float32)                        # identity residual (no matmul)
    else:
        sc = jnp.dot(x_int, wsc_ref[...],
                     preferred_element_type=jnp.float32) + bsc_ref[...]

    out = jnp.maximum(c3 + sc, 0.0)
    out_ref[...] = out.reshape(1, TH, W, Cout).astype(out_ref.dtype)


def _make_kernel(has_sc_conv):
    if has_sc_conv:
        def kernel(x_ref, w1_ref, s1_ref, b1_ref, w2_ref, w3_ref, b3_ref,
                   wsc_ref, bsc_ref, out_ref):
            _bottleneck_body(x_ref, w1_ref, s1_ref, b1_ref, w2_ref, w3_ref, b3_ref,
                             wsc_ref, bsc_ref, out_ref)
    else:
        def kernel(x_ref, w1_ref, s1_ref, b1_ref, w2_ref, w3_ref, b3_ref, out_ref):
            _bottleneck_body(x_ref, w1_ref, s1_ref, b1_ref, w2_ref, w3_ref, b3_ref,
                             None, None, out_ref)
    return kernel


# ---------------------------------------------------------------------------
# Wrapper
# ---------------------------------------------------------------------------
def _vmem_limit_bytes():
    try:
        kind = jax.devices()[0].device_kind.lower()
    except Exception:
        kind = ""
    if "v7" in kind:                    # 64 MiB physical -> leave compiler headroom
        return 48 * 1024 * 1024
    if "v2" in kind or "v3" in kind:    # small-VMEM legacy chips
        return 16 * 1024 * 1024
    return 64 * 1024 * 1024             # v4/v5e/v6e: 128 MiB physical


def _pick_row_tile(H, W, Cin, mid, Cout, vmem_limit):
    """Largest row tile whose per-tile working set fits comfortably in VMEM."""
    per_row = W * (9 * mid * 2          # im2col slab (bf16)
                   + 4 * mid * 2        # q + shifted copies (bf16)
                   + 2 * mid * 4        # conv1 / conv2 f32 accumulators
                   + 3 * Cout * 4       # conv3 accumulator + double-buffered output
                   + 2 * Cin * 2)       # x rows in flight
    fixed = 2 * (H + 2) * W * Cin * 2 + 2 * (Cin * mid + 9 * mid * mid
                                             + mid * Cout + Cin * Cout)
    budget = max(vmem_limit // 3 - fixed, per_row * 8)
    return int(min(H, max(8, budget // max(per_row, 1)), 64))


def bottleneck_pallas(x_nhwc, folded, *, row_tile=None, out_dtype=jnp.float32):
    """x_nhwc: (N, H, W, Cin), f32 or bf16.  Returns (N, H, W, Cout) NHWC."""
    N, H, W, Cin = x_nhwc.shape
    mid, Cout = folded["mid"], folded["cout"]
    assert Cin == folded["cin"]

    # bf16 input halves HBM traffic and VMEM residency; the 1-row zero pad (for in-bounds
    # halo window reads) fuses with the cast into a single XLA pass.
    x_pad = jnp.pad(x_nhwc.astype(jnp.bfloat16), ((0, 0), (1, 1), (0, 0), (0, 0)))

    vmem_limit = _vmem_limit_bytes()
    th = _pick_row_tile(H, W, Cin, mid, Cout, vmem_limit) if row_tile is None else row_tile
    th = max(1, min(th, H))
    while H % th:                        # largest divisor of H not exceeding th
        th -= 1
    ht = H // th

    has_sc = folded["wsc"] is not None
    weights = [folded["w1"], folded["s1"], folded["b1"], folded["w2"],
               folded["w3"], folded["b3"]]
    if has_sc:
        weights += [folded["wsc"], folded["bsc"]]

    def _run(single_buffer_weights):
        def wspec(a):
            zeros = (0,) * a.ndim
            if single_buffer_weights:
                # constant block index -> a second pipeline buffer is pure VMEM waste
                return pl.BlockSpec(a.shape, lambda n, h, z=zeros: z,
                                    pipeline_mode=pl.Buffered(1))
            return pl.BlockSpec(a.shape, lambda n, h, z=zeros: z)

        in_specs = [pl.BlockSpec((1, H + 2, W, Cin), lambda n, h: (n, 0, 0, 0))]
        in_specs += [wspec(a) for a in weights]
        out_specs = pl.BlockSpec((1, th, W, Cout), lambda n, h: (n, h, 0, 0))

        return pl.pallas_call(
            _make_kernel(has_sc),
            grid=(N, ht),
            in_specs=in_specs,
            out_specs=out_specs,
            out_shape=jax.ShapeDtypeStruct((N, H, W, Cout), out_dtype),
            compiler_params=pltpu.CompilerParams(
                dimension_semantics=("parallel", "parallel"),
                vmem_limit_bytes=vmem_limit),
        )(x_pad, *weights)

    try:
        return _run(True)
    except Exception:
        # jax/libtpu without per-BlockSpec pipeline_mode support -> default buffering.
        return _run(False)


# ---------------------------------------------------------------------------
# Parameters (module-style raw params + BN folding into kernel params)
# ---------------------------------------------------------------------------
def _bn_scale_shift(bn, eps=1e-5):
    s = bn["gamma"] / jnp.sqrt(bn["var"] + eps)
    return s, bn["beta"] - bn["mean"] * s


def make_params(key, in_planes, mid_planes, out_planes, shortcut_conv=True):
    ks = jax.random.split(key, 8)

    def w(k, shape, fan_in):
        return jax.random.normal(k, shape, jnp.float32) / jnp.sqrt(fan_in)

    def bn(k, c):
        k1, k2, k3, k4 = jax.random.split(k, 4)
        return dict(gamma=1.0 + 0.1 * jax.random.normal(k1, (c,), jnp.float32),
                    beta=0.1 * jax.random.normal(k2, (c,), jnp.float32),
                    mean=0.1 * jax.random.normal(k3, (c,), jnp.float32),
                    var=jnp.abs(1.0 + 0.1 * jax.random.normal(k4, (c,), jnp.float32)))

    p = dict(w1=w(ks[0], (in_planes, mid_planes), in_planes),              # 1x1 as (Cin, mid)
             w2=w(ks[1], (3, 3, mid_planes, mid_planes), 9 * mid_planes),  # HWIO
             w3=w(ks[2], (mid_planes, out_planes), mid_planes),
             bn1=bn(ks[3], mid_planes), bn2=bn(ks[4], mid_planes), bn3=bn(ks[5], out_planes),
             wsc=None, bnsc=None)
    if shortcut_conv:
        p["wsc"] = w(ks[6], (in_planes, out_planes), in_planes)
        p["bnsc"] = bn(ks[7], out_planes)
    return p


def fold_params(p, eps=1e-5):
    cin, mid = p["w1"].shape
    cout = p["w3"].shape[1]
    s1, b1 = _bn_scale_shift(p["bn1"], eps)
    s2, b2 = _bn_scale_shift(p["bn2"], eps)
    s3, b3 = _bn_scale_shift(p["bn3"], eps)

    w3s3 = p["w3"] * s3[None, :]
    folded = dict(
        w1=p["w1"].astype(jnp.bfloat16),                         # (Cin, mid)
        s1=s1[None, :].astype(jnp.float32),                      # bn1 scale (applied in kernel)
        b1=b1[None, :].astype(jnp.float32),                      # bn1 shift
        w2=p["w2"].reshape(9 * mid, mid).astype(jnp.bfloat16),   # im2col layout, unscaled
        w3=(s2[:, None] * w3s3).astype(jnp.bfloat16),            # bn2/bn3 folded
        b3=(b2 @ w3s3 + b3)[None, :].astype(jnp.float32),
        mid=mid, cin=cin, cout=cout,
    )
    if p["wsc"] is not None:
        ssc, bsc = _bn_scale_shift(p["bnsc"], eps)
        folded["wsc"] = (p["wsc"] * ssc[None, :]).astype(jnp.bfloat16)
        folded["bsc"] = bsc[None, :].astype(jnp.float32)
    else:
        assert cin == cout, "identity shortcut requires in_planes == out_planes"
        folded["wsc"] = None
        folded["bsc"] = None
    return folded


# ---------------------------------------------------------------------------
# Pure-JAX f32 reference (module semantics) for validation
# ---------------------------------------------------------------------------
def bottleneck_reference(x_nhwc, p, eps=1e-5):
    def bn(v, b):
        s, sh = _bn_scale_shift(b, eps)
        return v * s + sh

    h = jnp.einsum("nhwc,cd->nhwd", x_nhwc, p["w1"])
    h = bn(jnp.maximum(h, 0.0), p["bn1"])
    h = lax.conv_general_dilated(h, p["w2"], (1, 1), "SAME",
                                 dimension_numbers=("NHWC", "HWIO", "NHWC"))
    h = bn(jnp.maximum(h, 0.0), p["bn2"])
    h = bn(jnp.einsum("nhwc,cd->nhwd", h, p["w3"]), p["bn3"])
    sc = x_nhwc if p["wsc"] is None else bn(jnp.einsum("nhwc,cd->nhwd", x_nhwc, p["wsc"]),
                                            p["bnsc"])
    return jnp.maximum(h + sc, 0.0)


if __name__ == "__main__":
    key = jax.random.PRNGKey(0)
    k1, k2, k3 = jax.random.split(key, 3)

    N, H, W = 2, 16, 16
    Cin, mid, Cout = 4, 8, 16

    # --- config A: conv+bn shortcut (in_planes != out_planes) ---
    x = jax.random.normal(k1, (N, H, W, Cin), jnp.float32)          # NHWC
    raw = make_params(k2, Cin, mid, Cout, shortcut_conv=True)
    y = jax.block_until_ready(bottleneck_pallas(x, fold_params(raw)))
    x_q = x.astype(jnp.bfloat16).astype(jnp.float32)                # same input the kernel sees
    y_ref = bottleneck_reference(x_q, raw)
    err = jnp.abs(y - y_ref)
    assert y.shape == (N, H, W, Cout)
    # bf16 MXU operands vs f32 reference -> loose-but-discriminating tolerances
    assert float(err.max()) < 0.15 and float(err.mean()) < 0.03, \
        (float(err.max()), float(err.mean()))

    # --- config B: identity shortcut (in_planes == out_planes, stride == 1) ---
    x2 = jax.random.normal(k3, (N, H, W, Cout), jnp.float32)
    raw2 = make_params(k2, Cout, mid, Cout, shortcut_conv=False)
    y2 = jax.block_until_ready(bottleneck_pallas(x2, fold_params(raw2)))
    x2_q = x2.astype(jnp.bfloat16).astype(jnp.float32)
    y2_ref = bottleneck_reference(x2_q, raw2)
    err2 = jnp.abs(y2 - y2_ref)
    assert float(err2.max()) < 0.15 and float(err2.mean()) < 0.03, \
        (float(err2.max()), float(err2.mean()))

    print("KERNEL_OK")
</pallas_src>

<mosaic_0001>
module attributes {stable_mosaic.version = 11 : i64} {
  func.func @kernel(%arg0: i32, %arg1: i32, %arg2: memref<1x18x16x4xbf16, #tpu.memory_space<vmem>>, %arg3: memref<4x8xbf16, #tpu.memory_space<vmem>>, %arg4: memref<1x8xf32, #tpu.memory_space<vmem>>, %arg5: memref<1x8xf32, #tpu.memory_space<vmem>>, %arg6: memref<72x8xbf16, #tpu.memory_space<vmem>>, %arg7: memref<8x16xbf16, #tpu.memory_space<vmem>>, %arg8: memref<1x16xf32, #tpu.memory_space<vmem>>, %arg9: memref<4x16xbf16, #tpu.memory_space<vmem>>, %arg10: memref<1x16xf32, #tpu.memory_space<vmem>>, %arg11: memref<1x16x16x16xf32, #tpu.memory_space<vmem>>) attributes {dimension_semantics = [#tpu.dimension_semantics<parallel>, #tpu.dimension_semantics<parallel>], iteration_bounds = array<i64: 2, 1>, scalar_prefetch = 0 : i64, scratch_operands = 0 : i64, tpu.core_type = #tpu.core_type<tc>, window_params = [{transform_indices = @transform_0, window_bounds = array<i64: 1, 18, 16, 4>}, {pipeline_mode = #tpu.pipeline_mode<synchronous>, transform_indices = @transform_1, window_bounds = array<i64: 4, 8>}, {pipeline_mode = #tpu.pipeline_mode<synchronous>, transform_indices = @transform_2, window_bounds = array<i64: 1, 8>}, {pipeline_mode = #tpu.pipeline_mode<synchronous>, transform_indices = @transform_3, window_bounds = array<i64: 1, 8>}, {pipeline_mode = #tpu.pipeline_mode<synchronous>, transform_indices = @transform_4, window_bounds = array<i64: 72, 8>}, {pipeline_mode = #tpu.pipeline_mode<synchronous>, transform_indices = @transform_5, window_bounds = array<i64: 8, 16>}, {pipeline_mode = #tpu.pipeline_mode<synchronous>, transform_indices = @transform_6, window_bounds = array<i64: 1, 16>}, {pipeline_mode = #tpu.pipeline_mode<synchronous>, transform_indices = @transform_7, window_bounds = array<i64: 4, 16>}, {pipeline_mode = #tpu.pipeline_mode<synchronous>, transform_indices = @transform_8, window_bounds = array<i64: 1, 16>}, {transform_indices = @transform_9, window_bounds = array<i64: 1, 16, 16, 16>}]} {
    %c16_i32 = arith.constant 16 : i32
    %0 = arith.muli %arg1, %c16_i32 : i32
    %1 = tpu.assume_multiple %0, 16 : i32
    %c0 = arith.constant 0 : index
    %2 = arith.index_cast %1 : i32 to index
    %c0_0 = arith.constant 0 : index
    %c0_1 = arith.constant 0 : index
    %3 = vector.load %arg2[%c0, %2, %c0_0, %c0_1] : memref<1x18x16x4xbf16, #tpu.memory_space<vmem>>, vector<1x18x16x4xbf16>
    %4 = vector.shape_cast %3 : vector<1x18x16x4xbf16> to vector<288x4xbf16>
    %c0_2 = arith.constant 0 : index
    %c0_3 = arith.constant 0 : index
    %5 = vector.load %arg3[%c0_2, %c0_3] : memref<4x8xbf16, #tpu.memory_space<vmem>>, vector<4x8xbf16>
    %cst = arith.constant dense<0.000000e+00> : vector<288x8xf32>
    %6 = tpu.matmul %4, %5, %cst {dimension_numbers = #tpu.dot_dimension_numbers<[1], [0], [0], [1], [0, 0, 1, 1], [], []>} : vector<288x4xbf16>, vector<4x8xbf16>, vector<288x8xf32> -> vector<288x8xf32>
    %cst_4 = arith.constant 0.000000e+00 : f32
    %7 = vector.broadcast %cst_4 : f32 to vector<288x8xf32>
    %8 = arith.maximumf %6, %7 : vector<288x8xf32>
    %c0_5 = arith.constant 0 : index
    %c0_6 = arith.constant 0 : index
    %9 = vector.load %arg4[%c0_5, %c0_6] : memref<1x8xf32, #tpu.memory_space<vmem>>, vector<1x8xf32>
    %10 = vector.broadcast %9 : vector<1x8xf32> to vector<288x8xf32>
    %11 = arith.mulf %8, %10 : vector<288x8xf32>
    %c0_7 = arith.constant 0 : index
    %c0_8 = arith.constant 0 : index
    %12 = vector.load %arg5[%c0_7, %c0_8] : memref<1x8xf32, #tpu.memory_space<vmem>>, vector<1x8xf32>
    %13 = vector.broadcast %12 : vector<1x8xf32> to vector<288x8xf32>
    %14 = arith.addf %11, %13 : vector<288x8xf32>
    %15 = vector.shape_cast %14 : vector<288x8xf32> to vector<18x16x8xf32>
    %c0_i32 = arith.constant 0 : i32
    %16 = arith.cmpi sgt, %arg1, %c0_i32 : i32
    %17 = arith.extui %16 : i1 to i32
    %18 = arith.sitofp %17 : i32 to f32
    %c0_i32_9 = arith.constant 0 : i32
    %19 = arith.cmpi slt, %arg1, %c0_i32_9 : i32
    %20 = arith.extui %19 : i1 to i32
    %21 = arith.sitofp %20 : i32 to f32
    %22 = vector.extract_strided_slice %15 {offsets = [0, 0, 0], sizes = [1, 16, 8], strides = [1, 1, 1]} : vector<18x16x8xf32> to vector<1x16x8xf32>
    %23 = vector.broadcast %18 : f32 to vector<1x16x8xf32>
    %24 = arith.mulf %22, %23 : vector<1x16x8xf32>
    %25 = vector.extract_strided_slice %15 {offsets = [1, 0, 0], sizes = [16, 16, 8], strides = [1, 1, 1]} : vector<18x16x8xf32> to vector<16x16x8xf32>
    %26 = vector.extract_strided_slice %15 {offsets = [17, 0, 0], sizes = [1, 16, 8], strides = [1, 1, 1]} : vector<18x16x8xf32> to vector<1x16x8xf32>
    %27 = vector.broadcast %21 : f32 to vector<1x16x8xf32>
    %28 = arith.mulf %26, %27 : vector<1x16x8xf32>
    %29 = tpu.concatenate %24, %25, %28 in 0 : vector<1x16x8xf32>, vector<16x16x8xf32>, vector<1x16x8xf32> -> vector<18x16x8xf32>
    %30 = arith.truncf %29 : vector<18x16x8xf32> to vector<18x16x8xbf16>
    %cst_10 = arith.constant 0.000000e+00 : bf16
    %31 = vector.broadcast %cst_10 : bf16 to vector<18x1x8xbf16>
    %32 = vector.extract_strided_slice %30 {offsets = [0, 0, 0], sizes = [18, 15, 8], strides = [1, 1, 1]} : vector<18x16x8xbf16> to vector<18x15x8xbf16>
    %33 = tpu.concatenate %31, %32 in 1 : vector<18x1x8xbf16>, vector<18x15x8xbf16> -> vector<18x16x8xbf16>
    %34 = vector.extract_strided_slice %30 {offsets = [0, 1, 0], sizes = [18, 15, 8], strides = [1, 1, 1]} : vector<18x16x8xbf16> to vector<18x15x8xbf16>
    %35 = tpu.concatenate %34, %31 in 1 : vector<18x15x8xbf16>, vector<18x1x8xbf16> -> vector<18x16x8xbf16>
    %36 = vector.extract_strided_slice %33 {offsets = [0, 0, 0], sizes = [16, 16, 8], strides = [1, 1, 1]} : vector<18x16x8xbf16> to vector<16x16x8xbf16>
    %37 = vector.shape_cast %36 : vector<16x16x8xbf16> to vector<256x8xbf16>
    %38 = vector.extract_strided_slice %30 {offsets = [0, 0, 0], sizes = [16, 16, 8], strides = [1, 1, 1]} : vector<18x16x8xbf16> to vector<16x16x8xbf16>
    %39 = vector.shape_cast %38 : vector<16x16x8xbf16> to vector<256x8xbf16>
    %40 = vector.extract_strided_slice %35 {offsets = [0, 0, 0], sizes = [16, 16, 8], strides = [1, 1, 1]} : vector<18x16x8xbf16> to vector<16x16x8xbf16>
    %41 = vector.shape_cast %40 : vector<16x16x8xbf16> to vector<256x8xbf16>
    %42 = vector.extract_strided_slice %33 {offsets = [1, 0, 0], sizes = [16, 16, 8], strides = [1, 1, 1]} : vector<18x16x8xbf16> to vector<16x16x8xbf16>
    %43 = vector.shape_cast %42 : vector<16x16x8xbf16> to vector<256x8xbf16>
    %44 = vector.extract_strided_slice %30 {offsets = [1, 0, 0], sizes = [16, 16, 8], strides = [1, 1, 1]} : vector<18x16x8xbf16> to vector<16x16x8xbf16>
    %45 = vector.shape_cast %44 : vector<16x16x8xbf16> to vector<256x8xbf16>
    %46 = vector.extract_strided_slice %35 {offsets = [1, 0, 0], sizes = [16, 16, 8], strides = [1, 1, 1]} : vector<18x16x8xbf16> to vector<16x16x8xbf16>
    %47 = vector.shape_cast %46 : vector<16x16x8xbf16> to vector<256x8xbf16>
    %48 = vector.extract_strided_slice %33 {offsets = [2, 0, 0], sizes = [16, 16, 8], strides = [1, 1, 1]} : vector<18x16x8xbf16> to vector<16x16x8xbf16>
    %49 = vector.shape_cast %48 : vector<16x16x8xbf16> to vector<256x8xbf16>
    %50 = vector.extract_strided_slice %30 {offsets = [2, 0, 0], sizes = [16, 16, 8], strides = [1, 1, 1]} : vector<18x16x8xbf16> to vector<16x16x8xbf16>
    %51 = vector.shape_cast %50 : vector<16x16x8xbf16> to vector<256x8xbf16>
    %52 = vector.extract_strided_slice %35 {offsets = [2, 0, 0], sizes = [16, 16, 8], strides = [1, 1, 1]} : vector<18x16x8xbf16> to vector<16x16x8xbf16>
    %53 = vector.shape_cast %52 : vector<16x16x8xbf16> to vector<256x8xbf16>
    %54 = tpu.concatenate %37, %39, %41, %43, %45, %47, %49, %51, %53 in 1 : vector<256x8xbf16>, vector<256x8xbf16>, vector<256x8xbf16>, vector<256x8xbf16>, vector<256x8xbf16>, vector<256x8xbf16>, vector<256x8xbf16>, vector<256x8xbf16>, vector<256x8xbf16> -> vector<256x72xbf16>
    %c0_11 = arith.constant 0 : index
    %c0_12 = arith.constant 0 : index
    %55 = vector.load %arg6[%c0_11, %c0_12] : memref<72x8xbf16, #tpu.memory_space<vmem>>, vector<72x8xbf16>
    %cst_13 = arith.constant dense<0.000000e+00> : vector<256x8xf32>
    %56 = tpu.matmul %54, %55, %cst_13 {dimension_numbers = #tpu.dot_dimension_numbers<[1], [0], [0], [1], [0, 0, 1, 1], [], []>} : vector<256x72xbf16>, vector<72x8xbf16>, vector<256x8xf32> -> vector<256x8xf32>
    %cst_14 = arith.constant 0.000000e+00 : f32
    %57 = vector.broadcast %cst_14 : f32 to vector<256x8xf32>
    %58 = arith.maximumf %56, %57 : vector<256x8xf32>
    %59 = arith.truncf %58 : vector<256x8xf32> to vector<256x8xbf16>
    %c0_15 = arith.constant 0 : index
    %c0_16 = arith.constant 0 : index
    %60 = vector.load %arg7[%c0_15, %c0_16] : memref<8x16xbf16, #tpu.memory_space<vmem>>, vector<8x16xbf16>
    %cst_17 = arith.constant dense<0.000000e+00> : vector<256x16xf32>
    %61 = tpu.matmul %59, %60, %cst_17 {dimension_numbers = #tpu.dot_dimension_numbers<[1], [0], [0], [1], [0, 0, 1, 1], [], []>} : vector<256x8xbf16>, vector<8x16xbf16>, vector<256x16xf32> -> vector<256x16xf32>
    %c0_18 = arith.constant 0 : index
    %c0_19 = arith.constant 0 : index
    %62 = vector.load %arg8[%c0_18, %c0_19] : memref<1x16xf32, #tpu.memory_space<vmem>>, vector<1x16xf32>
    %63 = vector.broadcast %62 : vector<1x16xf32> to vector<256x16xf32>
    %64 = arith.addf %61, %63 : vector<256x16xf32>
    %65 = vector.extract_strided_slice %3 {offsets = [0, 1, 0, 0], sizes = [1, 16, 16, 4], strides = [1, 1, 1, 1]} : vector<1x18x16x4xbf16> to vector<1x16x16x4xbf16>
    %66 = vector.shape_cast %65 : vector<1x16x16x4xbf16> to vector<256x4xbf16>
    %c0_20 = arith.constant 0 : index
    %c0_21 = arith.constant 0 : index
    %67 = vector.load %arg9[%c0_20, %c0_21] : memref<4x16xbf16, #tpu.memory_space<vmem>>, vector<4x16xbf16>
    %cst_22 = arith.constant dense<0.000000e+00> : vector<256x16xf32>
    %68 = tpu.matmul %66, %67, %cst_22 {dimension_numbers = #tpu.dot_dimension_numbers<[1], [0], [0], [1], [0, 0, 1, 1], [], []>} : vector<256x4xbf16>, vector<4x16xbf16>, vector<256x16xf32> -> vector<256x16xf32>
    %c0_23 = arith.constant 0 : index
    %c0_24 = arith.constant 0 : index
    %69 = vector.load %arg10[%c0_23, %c0_24] : memref<1x16xf32, #tpu.memory_space<vmem>>, vector<1x16xf32>
    %70 = vector.broadcast %69 : vector<1x16xf32> to vector<256x16xf32>
    %71 = arith.addf %68, %70 : vector<256x16xf32>
    %72 = arith.addf %64, %71 : vector<256x16xf32>
    %cst_25 = arith.constant 0.000000e+00 : f32
    %73 = vector.broadcast %cst_25 : f32 to vector<256x16xf32>
    %74 = arith.maximumf %72, %73 : vector<256x16xf32>
    %75 = vector.shape_cast %74 : vector<256x16xf32> to vector<1x16x16x16xf32>
    %c0_26 = arith.constant 0 : index
    %c0_27 = arith.constant 0 : index
    %c0_28 = arith.constant 0 : index
    %c0_29 = arith.constant 0 : index
    %76 = vector.load %arg11[%c0_26, %c0_27, %c0_28, %c0_29] : memref<1x16x16x16xf32, #tpu.memory_space<vmem>>, vector<1x16x16x16xf32>
    tpu.vector_store %arg11[%c0_26, %c0_27, %c0_28, %c0_29], %75 {strides = array<i32>} : memref<1x16x16x16xf32, #tpu.memory_space<vmem>>, vector<1x16x16x16xf32>,
    return
  }
  func.func @transform_0(%arg0: i32, %arg1: i32) -> (i32, i32, i32, i32) {
    %c0_i32 = arith.constant 0 : i32
    %c0_i32_0 = arith.constant 0 : i32
    %c0_i32_1 = arith.constant 0 : i32
    %c0_i32_2 = arith.constant 0 : i32
    return %arg0, %c0_i32, %c0_i32_0, %c0_i32_1 : i32, i32, i32, i32
  }
  func.func @transform_1(%arg0: i32, %arg1: i32) -> (i32, i32) {
    %c0_i32 = arith.constant 0 : i32
    %c0_i32_0 = arith.constant 0 : i32
    %c0_i32_1 = arith.constant 0 : i32
    return %c0_i32, %c0_i32_0 : i32, i32
  }
  func.func @transform_2(%arg0: i32, %arg1: i32) -> (i32, i32) {
    %c0_i32 = arith.constant 0 : i32
    %c0_i32_0 = arith.constant 0 : i32
    %c0_i32_1 = arith.constant 0 : i32
    return %c0_i32, %c0_i32_0 : i32, i32
  }
  func.func @transform_3(%arg0: i32, %arg1: i32) -> (i32, i32) {
    %c0_i32 = arith.constant 0 : i32
    %c0_i32_0 = arith.constant 0 : i32
    %c0_i32_1 = arith.constant 0 : i32
    return %c0_i32, %c0_i32_0 : i32, i32
  }
  func.func @transform_4(%arg0: i32, %arg1: i32) -> (i32, i32) {
    %c0_i32 = arith.constant 0 : i32
    %c0_i32_0 = arith.constant 0 : i32
    %c0_i32_1 = arith.constant 0 : i32
    return %c0_i32, %c0_i32_0 : i32, i32
  }
  func.func @transform_5(%arg0: i32, %arg1: i32) -> (i32, i32) {
    %c0_i32 = arith.constant 0 : i32
    %c0_i32_0 = arith.constant 0 : i32
    %c0_i32_1 = arith.constant 0 : i32
    return %c0_i32, %c0_i32_0 : i32, i32
  }
  func.func @transform_6(%arg0: i32, %arg1: i32) -> (i32, i32) {
    %c0_i32 = arith.constant 0 : i32
    %c0_i32_0 = arith.constant 0 : i32
    %c0_i32_1 = arith.constant 0 : i32
    return %c0_i32, %c0_i32_0 : i32, i32
  }
  func.func @transform_7(%arg0: i32, %arg1: i32) -> (i32, i32) {
    %c0_i32 = arith.constant 0 : i32
    %c0_i32_0 = arith.constant 0 : i32
    %c0_i32_1 = arith.constant 0 : i32
    return %c0_i32, %c0_i32_0 : i32, i32
  }
  func.func @transform_8(%arg0: i32, %arg1: i32) -> (i32, i32) {
    %c0_i32 = arith.constant 0 : i32
    %c0_i32_0 = arith.constant 0 : i32
    %c0_i32_1 = arith.constant 0 : i32
    return %c0_i32, %c0_i32_0 : i32, i32
  }
  func.func @transform_9(%arg0: i32, %arg1: i32) -> (i32, i32, i32, i32) {
    %c0_i32 = arith.constant 0 : i32
    %c0_i32_0 = arith.constant 0 : i32
    %c0_i32_1 = arith.constant 0 : i32
    return %arg0, %arg1, %c0_i32, %c0_i32_0 : i32, i32, i32, i32
  }
}

module attributes {stable_mosaic.version = 11 : i64} {
  func.func @kernel(%arg0: i32, %arg1: i32, %arg2: memref<1x18x16x4xbf16, #tpu.memory_space<vmem>>, %arg3: memref<4x8xbf16, #tpu.memory_space<vmem>>, %arg4: memref<1x8xf32, #tpu.memory_space<vmem>>, %arg5: memref<1x8xf32, #tpu.memory_space<vmem>>, %arg6: memref<72x8xbf16, #tpu.memory_space<vmem>>, %arg7: memref<8x16xbf16, #tpu.memory_space<vmem>>, %arg8: memref<1x16xf32, #tpu.memory_space<vmem>>, %arg9: memref<4x16xbf16, #tpu.memory_space<vmem>>, %arg10: memref<1x16xf32, #tpu.memory_space<vmem>>, %arg11: memref<1x16x16x16xf32, #tpu.memory_space<vmem>>) attributes {dimension_semantics = [#tpu.dimension_semantics<parallel>, #tpu.dimension_semantics<parallel>], iteration_bounds = array<i64: 2, 1>, scalar_prefetch = 0 : i64, scratch_operands = 0 : i64, tpu.core_type = #tpu.core_type<tc>, window_params = [{transform_indices = @transform_0, window_bounds = array<i64: 1, 18, 16, 4>}, {pipeline_mode = #tpu.pipeline_mode<synchronous>, transform_indices = @transform_1, window_bounds = array<i64: 4, 8>}, {pipeline_mode = #tpu.pipeline_mode<synchronous>, transform_indices = @transform_2, window_bounds = array<i64: 1, 8>}, {pipeline_mode = #tpu.pipeline_mode<synchronous>, transform_indices = @transform_3, window_bounds = array<i64: 1, 8>}, {pipeline_mode = #tpu.pipeline_mode<synchronous>, transform_indices = @transform_4, window_bounds = array<i64: 72, 8>}, {pipeline_mode = #tpu.pipeline_mode<synchronous>, transform_indices = @transform_5, window_bounds = array<i64: 8, 16>}, {pipeline_mode = #tpu.pipeline_mode<synchronous>, transform_indices = @transform_6, window_bounds = array<i64: 1, 16>}, {pipeline_mode = #tpu.pipeline_mode<synchronous>, transform_indices = @transform_7, window_bounds = array<i64: 4, 16>}, {pipeline_mode = #tpu.pipeline_mode<synchronous>, transform_indices = @transform_8, window_bounds = array<i64: 1, 16>}, {transform_indices = @transform_9, window_bounds = array<i64: 1, 16, 16, 16>}]} {
    %c16_i32 = arith.constant 16 : i32
    %0 = arith.muli %arg1, %c16_i32 : i32
    %1 = tpu.assume_multiple %0, 16 : i32
    %c0 = arith.constant 0 : index
    %2 = arith.index_cast %1 : i32 to index
    %c0_0 = arith.constant 0 : index
    %c0_1 = arith.constant 0 : index
    %3 = vector.load %arg2[%c0, %2, %c0_0, %c0_1] : memref<1x18x16x4xbf16, #tpu.memory_space<vmem>>, vector<1x18x16x4xbf16>
    %4 = vector.shape_cast %3 : vector<1x18x16x4xbf16> to vector<288x4xbf16>
    %c0_2 = arith.constant 0 : index
    %c0_3 = arith.constant 0 : index
    %5 = vector.load %arg3[%c0_2, %c0_3] : memref<4x8xbf16, #tpu.memory_space<vmem>>, vector<4x8xbf16>
    %cst = arith.constant dense<0.000000e+00> : vector<288x8xf32>
    %6 = tpu.matmul %4, %5, %cst {dimension_numbers = #tpu.dot_dimension_numbers<[1], [0], [0], [1], [0, 0, 1, 1], [], []>} : vector<288x4xbf16>, vector<4x8xbf16>, vector<288x8xf32> -> vector<288x8xf32>
    %cst_4 = arith.constant 0.000000e+00 : f32
    %7 = vector.broadcast %cst_4 : f32 to vector<288x8xf32>
    %8 = arith.maximumf %6, %7 : vector<288x8xf32>
    %c0_5 = arith.constant 0 : index
    %c0_6 = arith.constant 0 : index
    %9 = vector.load %arg4[%c0_5, %c0_6] : memref<1x8xf32, #tpu.memory_space<vmem>>, vector<1x8xf32>
    %10 = vector.broadcast %9 : vector<1x8xf32> to vector<288x8xf32>
    %11 = arith.mulf %8, %10 : vector<288x8xf32>
    %c0_7 = arith.constant 0 : index
    %c0_8 = arith.constant 0 : index
    %12 = vector.load %arg5[%c0_7, %c0_8] : memref<1x8xf32, #tpu.memory_space<vmem>>, vector<1x8xf32>
    %13 = vector.broadcast %12 : vector<1x8xf32> to vector<288x8xf32>
    %14 = arith.addf %11, %13 : vector<288x8xf32>
    %15 = vector.shape_cast %14 : vector<288x8xf32> to vector<18x16x8xf32>
    %c0_i32 = arith.constant 0 : i32
    %16 = arith.cmpi sgt, %arg1, %c0_i32 : i32
    %17 = arith.extui %16 : i1 to i32
    %18 = arith.sitofp %17 : i32 to f32
    %c0_i32_9 = arith.constant 0 : i32
    %19 = arith.cmpi slt, %arg1, %c0_i32_9 : i32
    %20 = arith.extui %19 : i1 to i32
    %21 = arith.sitofp %20 : i32 to f32
    %22 = vector.extract_strided_slice %15 {offsets = [0, 0, 0], sizes = [1, 16, 8], strides = [1, 1, 1]} : vector<18x16x8xf32> to vector<1x16x8xf32>
    %23 = vector.broadcast %18 : f32 to vector<1x16x8xf32>
    %24 = arith.mulf %22, %23 : vector<1x16x8xf32>
    %25 = vector.extract_strided_slice %15 {offsets = [1, 0, 0], sizes = [16, 16, 8], strides = [1, 1, 1]} : vector<18x16x8xf32> to vector<16x16x8xf32>
    %26 = vector.extract_strided_slice %15 {offsets = [17, 0, 0], sizes = [1, 16, 8], strides = [1, 1, 1]} : vector<18x16x8xf32> to vector<1x16x8xf32>
    %27 = vector.broadcast %21 : f32 to vector<1x16x8xf32>
    %28 = arith.mulf %26, %27 : vector<1x16x8xf32>
    %29 = tpu.concatenate %24, %25, %28 in 0 : vector<1x16x8xf32>, vector<16x16x8xf32>, vector<1x16x8xf32> -> vector<18x16x8xf32>
    %30 = arith.truncf %29 : vector<18x16x8xf32> to vector<18x16x8xbf16>
    %cst_10 = arith.constant 0.000000e+00 : bf16
    %31 = vector.broadcast %cst_10 : bf16 to vector<18x1x8xbf16>
    %32 = vector.extract_strided_slice %30 {offsets = [0, 0, 0], sizes = [18, 15, 8], strides = [1, 1, 1]} : vector<18x16x8xbf16> to vector<18x15x8xbf16>
    %33 = tpu.concatenate %31, %32 in 1 : vector<18x1x8xbf16>, vector<18x15x8xbf16> -> vector<18x16x8xbf16>
    %34 = vector.extract_strided_slice %30 {offsets = [0, 1, 0], sizes = [18, 15, 8], strides = [1, 1, 1]} : vector<18x16x8xbf16> to vector<18x15x8xbf16>
    %35 = tpu.concatenate %34, %31 in 1 : vector<18x15x8xbf16>, vector<18x1x8xbf16> -> vector<18x16x8xbf16>
    %36 = vector.extract_strided_slice %33 {offsets = [0, 0, 0], sizes = [16, 16, 8], strides = [1, 1, 1]} : vector<18x16x8xbf16> to vector<16x16x8xbf16>
    %37 = vector.shape_cast %36 : vector<16x16x8xbf16> to vector<256x8xbf16>
    %38 = vector.extract_strided_slice %30 {offsets = [0, 0, 0], sizes = [16, 16, 8], strides = [1, 1, 1]} : vector<18x16x8xbf16> to vector<16x16x8xbf16>
    %39 = vector.shape_cast %38 : vector<16x16x8xbf16> to vector<256x8xbf16>
    %40 = vector.extract_strided_slice %35 {offsets = [0, 0, 0], sizes = [16, 16, 8], strides = [1, 1, 1]} : vector<18x16x8xbf16> to vector<16x16x8xbf16>
    %41 = vector.shape_cast %40 : vector<16x16x8xbf16> to vector<256x8xbf16>
    %42 = vector.extract_strided_slice %33 {offsets = [1, 0, 0], sizes = [16, 16, 8], strides = [1, 1, 1]} : vector<18x16x8xbf16> to vector<16x16x8xbf16>
    %43 = vector.shape_cast %42 : vector<16x16x8xbf16> to vector<256x8xbf16>
    %44 = vector.extract_strided_slice %30 {offsets = [1, 0, 0], sizes = [16, 16, 8], strides = [1, 1, 1]} : vector<18x16x8xbf16> to vector<16x16x8xbf16>
    %45 = vector.shape_cast %44 : vector<16x16x8xbf16> to vector<256x8xbf16>
    %46 = vector.extract_strided_slice %35 {offsets = [1, 0, 0], sizes = [16, 16, 8], strides = [1, 1, 1]} : vector<18x16x8xbf16> to vector<16x16x8xbf16>
    %47 = vector.shape_cast %46 : vector<16x16x8xbf16> to vector<256x8xbf16>
    %48 = vector.extract_strided_slice %33 {offsets = [2, 0, 0], sizes = [16, 16, 8], strides = [1, 1, 1]} : vector<18x16x8xbf16> to vector<16x16x8xbf16>
    %49 = vector.shape_cast %48 : vector<16x16x8xbf16> to vector<256x8xbf16>
    %50 = vector.extract_strided_slice %30 {offsets = [2, 0, 0], sizes = [16, 16, 8], strides = [1, 1, 1]} : vector<18x16x8xbf16> to vector<16x16x8xbf16>
    %51 = vector.shape_cast %50 : vector<16x16x8xbf16> to vector<256x8xbf16>
    %52 = vector.extract_strided_slice %35 {offsets = [2, 0, 0], sizes = [16, 16, 8], strides = [1, 1, 1]} : vector<18x16x8xbf16> to vector<16x16x8xbf16>
    %53 = vector.shape_cast %52 : vector<16x16x8xbf16> to vector<256x8xbf16>
    %54 = tpu.concatenate %37, %39, %41, %43, %45, %47, %49, %51, %53 in 1 : vector<256x8xbf16>, vector<256x8xbf16>, vector<256x8xbf16>, vector<256x8xbf16>, vector<256x8xbf16>, vector<256x8xbf16>, vector<256x8xbf16>, vector<256x8xbf16>, vector<256x8xbf16> -> vector<256x72xbf16>
    %c0_11 = arith.constant 0 : index
    %c0_12 = arith.constant 0 : index
    %55 = vector.load %arg6[%c0_11, %c0_12] : memref<72x8xbf16, #tpu.memory_space<vmem>>, vector<72x8xbf16>
    %cst_13 = arith.constant dense<0.000000e+00> : vector<256x8xf32>
    %56 = tpu.matmul %54, %55, %cst_13 {dimension_numbers = #tpu.dot_dimension_numbers<[1], [0], [0], [1], [0, 0, 1, 1], [], []>} : vector<256x72xbf16>, vector<72x8xbf16>, vector<256x8xf32> -> vector<256x8xf32>
    %cst_14 = arith.constant 0.000000e+00 : f32
    %57 = vector.broadcast %cst_14 : f32 to vector<256x8xf32>
    %58 = arith.maximumf %56, %57 : vector<256x8xf32>
    %59 = arith.truncf %58 : vector<256x8xf32> to vector<256x8xbf16>
    %c0_15 = arith.constant 0 : index
    %c0_16 = arith.constant 0 : index
    %60 = vector.load %arg7[%c0_15, %c0_16] : memref<8x16xbf16, #tpu.memory_space<vmem>>, vector<8x16xbf16>
    %cst_17 = arith.constant dense<0.000000e+00> : vector<256x16xf32>
    %61 = tpu.matmul %59, %60, %cst_17 {dimension_numbers = #tpu.dot_dimension_numbers<[1], [0], [0], [1], [0, 0, 1, 1], [], []>} : vector<256x8xbf16>, vector<8x16xbf16>, vector<256x16xf32> -> vector<256x16xf32>
    %c0_18 = arith.constant 0 : index
    %c0_19 = arith.constant 0 : index
    %62 = vector.load %arg8[%c0_18, %c0_19] : memref<1x16xf32, #tpu.memory_space<vmem>>, vector<1x16xf32>
    %63 = vector.broadcast %62 : vector<1x16xf32> to vector<256x16xf32>
    %64 = arith.addf %61, %63 : vector<256x16xf32>
    %65 = vector.extract_strided_slice %3 {offsets = [0, 1, 0, 0], sizes = [1, 16, 16, 4], strides = [1, 1, 1, 1]} : vector<1x18x16x4xbf16> to vector<1x16x16x4xbf16>
    %66 = vector.shape_cast %65 : vector<1x16x16x4xbf16> to vector<256x4xbf16>
    %c0_20 = arith.constant 0 : index
    %c0_21 = arith.constant 0 : index
    %67 = vector.load %arg9[%c0_20, %c0_21] : memref<4x16xbf16, #tpu.memory_space<vmem>>, vector<4x16xbf16>
    %cst_22 = arith.constant dense<0.000000e+00> : vector<256x16xf32>
    %68 = tpu.matmul %66, %67, %cst_22 {dimension_numbers = #tpu.dot_dimension_numbers<[1], [0], [0], [1], [0, 0, 1, 1], [], []>} : vector<256x4xbf16>, vector<4x16xbf16>, vector<256x16xf32> -> vector<256x16xf32>
    %c0_23 = arith.constant 0 : index
    %c0_24 = arith.constant 0 : index
    %69 = vector.load %arg10[%c0_23, %c0_24] : memref<1x16xf32, #tpu.memory_space<vmem>>, vector<1x16xf32>
    %70 = vector.broadcast %69 : vector<1x16xf32> to vector<256x16xf32>
    %71 = arith.addf %68, %70 : vector<256x16xf32>
    %72 = arith.addf %64, %71 : vector<256x16xf32>
    %cst_25 = arith.constant 0.000000e+00 : f32
    %73 = vector.broadcast %cst_25 : f32 to vector<256x16xf32>
    %74 = arith.maximumf %72, %73 : vector<256x16xf32>
    %75 = vector.shape_cast %74 : vector<256x16xf32> to vector<1x16x16x16xf32>
    %c0_26 = arith.constant 0 : index
    %c0_27 = arith.constant 0 : index
    %c0_28 = arith.constant 0 : index
    %c0_29 = arith.constant 0 : index
    %76 = vector.load %arg11[%c0_26, %c0_27, %c0_28, %c0_29] : memref<1x16x16x16xf32, #tpu.memory_space<vmem>>, vector<1x16x16x16xf32>
    tpu.vector_store %arg11[%c0_26, %c0_27, %c0_28, %c0_29], %75 {strides = array<i32>} : memref<1x16x16x16xf32, #tpu.memory_space<vmem>>, vector<1x16x16x16xf32>,
    return
  }
  func.func @transform_0(%arg0: i32, %arg1: i32) -> (i32, i32, i32, i32) {
    %c0_i32 = arith.constant 0 : i32
    %c0_i32_0 = arith.constant 0 : i32
    %c0_i32_1 = arith.constant 0 : i32
    %c0_i32_2 = arith.constant 0 : i32
    return %arg0, %c0_i32, %c0_i32_0, %c0_i32_1 : i32, i32, i32, i32
  }
  func.func @transform_1(%arg0: i32, %arg1: i32) -> (i32, i32) {
    %c0_i32 = arith.constant 0 : i32
    %c0_i32_0 = arith.constant 0 : i32
    %c0_i32_1 = arith.constant 0 : i32
    return %c0_i32, %c0_i32_0 : i32, i32
  }
  func.func @transform_2(%arg0: i32, %arg1: i32) -> (i32, i32) {
    %c0_i32 = arith.constant 0 : i32
    %c0_i32_0 = arith.constant 0 : i32
    %c0_i32_1 = arith.constant 0 : i32
    return %c0_i32, %c0_i32_0 : i32, i32
  }
  func.func @transform_3(%arg0: i32, %arg1: i32) -> (i32, i32) {
    %c0_i32 = arith.constant 0 : i32
    %c0_i32_0 = arith.constant 0 : i32
    %c0_i32_1 = arith.constant 0 : i32
    return %c0_i32, %c0_i32_0 : i32, i32
  }
  func.func @transform_4(%arg0: i32, %arg1: i32) -> (i32, i32) {
    %c0_i32 = arith.constant 0 : i32
    %c0_i32_0 = arith.constant 0 : i32
    %c0_i32_1 = arith.constant 0 : i32
    return %c0_i32, %c0_i32_0 : i32, i32
  }
  func.func @transform_5(%arg0: i32, %arg1: i32) -> (i32, i32) {
    %c0_i32 = arith.constant 0 : i32
    %c0_i32_0 = arith.constant 0 : i32
    %c0_i32_1 = arith.constant 0 : i32
    return %c0_i32, %c0_i32_0 : i32, i32
  }
  func.func @transform_6(%arg0: i32, %arg1: i32) -> (i32, i32) {
    %c0_i32 = arith.constant 0 : i32
    %c0_i32_0 = arith.constant 0 : i32
    %c0_i32_1 = arith.constant 0 : i32
    return %c0_i32, %c0_i32_0 : i32, i32
  }
  func.func @transform_7(%arg0: i32, %arg1: i32) -> (i32, i32) {
    %c0_i32 = arith.constant 0 : i32
    %c0_i32_0 = arith.constant 0 : i32
    %c0_i32_1 = arith.constant 0 : i32
    return %c0_i32, %c0_i32_0 : i32, i32
  }
  func.func @transform_8(%arg0: i32, %arg1: i32) -> (i32, i32) {
    %c0_i32 = arith.constant 0 : i32
    %c0_i32_0 = arith.constant 0 : i32
    %c0_i32_1 = arith.constant 0 : i32
    return %c0_i32, %c0_i32_0 : i32, i32
  }
  func.func @transform_9(%arg0: i32, %arg1: i32) -> (i32, i32, i32, i32) {
    %c0_i32 = arith.constant 0 : i32
    %c0_i32_0 = arith.constant 0 : i32
    %c0_i32_1 = arith.constant 0 : i32
    return %arg0, %arg1, %c0_i32, %c0_i32_0 : i32, i32, i32, i32
  }
}

</mosaic_0001>

<bundles_post_ra>
// kernel: tpu_custom_call.1
= control target key start
LH: loop header
LB: loop body
LE: loop exit
PB: predicated region body
PF: predicated region fallthrough
CT: control target
= control target key end

     0   :  { %s4187_s0 = inlined_call_operand.vmem [shape: bf16[2,18,16,4], index: 0, kind: input, shape index: {}]   ;;  %s4188_s1 = inlined_call_operand.vmem [shape: bf16[4,8], index: 1, kind: input, shape index: {}]   ;;  %s4189_s2 = inlined_call_operand.vmem [shape: f32[1,8], index: 2, kind: input, shape index: {}]   ;;  %s4190_s3 = inlined_call_operand.vmem [shape: f32[1,8], index: 3, kind: input, shape index: {}]   ;;  %s4191_s4 = inlined_call_operand.vmem [shape: bf16[72,8], index: 4, kind: input, shape index: {}]   ;;  %s4192_s5 = inlined_call_operand.vmem [shape: bf16[8,16], index: 5, kind: input, shape index: {}]   ;;  %s4193_s6 = inlined_call_operand.vmem [shape: f32[1,16], index: 6, kind: input, shape index: {}]   ;;  %s4194_s7 = inlined_call_operand.vmem [shape: bf16[4,16], index: 7, kind: input, shape index: {}]   ;;  %s4195_s8 = inlined_call_operand.vmem [shape: f32[1,16], index: 8, kind: input, shape index: {}]   ;;  %s4196_s9 = inlined_call_operand.hbm [shape: f32[2,16,16,16], index: 9, kind: output, shape index: {}]  }
   0x1   :  { %4201 = sst [smem:[#allocation5_spill]] %s4187_s0 }
   0x2   :  { %14 = vsyncpa [#allocation3], 0 }
   0x3   :  { %16 = vsyncpa [#allocation3 + $0x1], 0  ;;  %s3133_s30 = smov 0   ;;  %s3135_s10 = smov 0  }
   0x4   :  { %s3137_s11 = smov 0   ;;  %s3139_s12 = smov 0  }
   0x5   :  { %s3141_s13 = smov 0   ;;  %s3143_s14 = smov 0  }
   0x6 LB: > { %s2557_s15 = sadd.s32 4294967295, %s3071_s14   ;;  %s2558_s16 = sadd.s32 4294967294, %s3071_s14   ;;  %s3071_s14 = sphi %s3143_s14, %s22_s14   ;;  %s3067_s13 = sphi %s3141_s13, %s4215_s13   ;;  %s3063_s12 = sphi %s3139_s12, %s4214_s12   ;;  %s3059_s11 = sphi %s3137_s11, %s4213_s11   ;;  %s3055_s10 = sphi %s3135_s10, %s4212_s10   ;;  %s3051_s30 = sphi %s3133_s30, %s4211_s30  }
   0x7   : > { %s34_s17 = sadd.s32 1, %s3067_s13  ;;  %s237_s18 = sadd.s32 1, %s3059_s11 }
   0x8   : > { %p36_p0 = scmp.ge.s32.totalorder %s34_s17, 2  ;;  %p247_p1 = scmp.ne.s32.totalorder %s3059_s11, %s3055_s10 }
   0x9   : > { %p248_p2 = scmp.eq.s32.totalorder %s2557_s15, 1  ;;  %p253_p3 = scmp.ne.s32.totalorder %s3055_s10, %s3051_s30 }
   0xa   : > { %s4217_s17 = smov (%p36_p0, %s34_s17), 0  ;;  %p254_p5 = scmp.eq.s32.totalorder %s2558_s16, 1 }
   0xb   : > { %p3173_p4 = por %p248_p2, %p247_p1  ;;  %s232_s20 = ssub.s32 %s3067_s13, %s4217_s17 }
   0xc   : > { %p2561_p6 = scmp.ge.s32.totalorder %s3071_s14, 1  ;;  %p235_p7 = scmp.eq.s32.totalorder %s232_s20, 0 }
   0xd   : > { %p3180_p8 = por %p254_p5, %p253_p3  ;;  %p304_p9 = scmp.lt.s32.totalorder %s3071_s14, 3 }
   0xe   : > { %s3186_s22 = scalar_select %p235_p7, %s3059_s11, %s237_s18  }
   0xf   : > { %p305_p10 = pnand %p2561_p6, %p304_p9 }
  0x10   : > { %p340_p11 = scmp.lt.s32.totalorder (!%p305_p10), %s3063_s12, 1  ;;  %s4204_s0 = sld [smem:[#allocation5_spill]] (!%p305_p10) }
  0x11   : > { %308 = sbr.rel (%p305_p10) target bundleno = 1032 (0x408), region = 56  ;;  %s4197_s23 = smov (!%p305_p10), 8  }
  0x12   : > { %s3074_s24 = smov (!%p305_p10), 32   ;;  %s3077_s27 = smov (!%p305_p10), 24  }
  0x13   : > { %s3078_s28 = smov (!%p305_p10), 40   ;;  %s3080_s18 = smov (!%p305_p10), 48  }
  0x14   : > { %s4210_s20 = smov (!%p305_p10), 64   ;;  %s2662_s16 = sshll.u32 (!%p305_p10), %s3063_s12, 12 }
  0x16   : > { %v387_v0 = vld [vmem:[%s4188_s1] sm:$0x3]  ;;  %vm533_vm0 = vcmask 1041408   ;;  %s341_s25 = scalar_select %p340_p11, %s3063_s12, 1  ;;  %vm478_vm1 = vcmask 31744   ;;  %vm1085_vm2 = vcmask 1047552  }
  0x17   : > { %2885 = vmatprep.subr.msk.bf16.mxu0 %vm533_vm0, %v387_v0  ;;  %v535_v1 = vsel %vm533_vm0, %v387_v0, 0  ;;  %v3239_v22 = vld [vmem:[%s4189_s2] ss:$0 sm:$0xff]  ;;  %vm1086_vm3 = vsmask.f32 7424  ;;  %vm1010_vm5 = vcmask 1040384  }
  0x18   : > { %2738 = vmatpush3.bf16.msra.mxu0 %v535_v1  ;;  %s2889_s26 = smul.u32 144, %s341_s25  ;;  %v3246_v29 = vld [vmem:[%s4190_s3] ss:$0 sm:$0xff]  ;;  %vm3258_vm4 = vmand %vm1085_vm2, %vm1086_vm3  ;;  %vm1011_vm6 = vsmask.f32 256  ;;  %s3075_s25 = smov 16  }
  0x19   : > { %vm3268_vm7 = vmand %vm1010_vm5, %vm1011_vm6  ;;  %vm1764_vm8 = vcmask 1043456   ;;  %vm1415_vm9 = vcmask 64512   ;;  %vm1464_vm10 = vcmask 130048   ;;  %vm1497_vm11 = vcmask 195584  }
  0x1a   : > { %s3198_s29 = scalar_lea.vmem %s4204_s0, %s2889_s26  ;;  %s3076_s26 = smov 56   ;;  %vm1530_vm12 = vcmask 261120   ;;  %vm1563_vm13 = vcmask 326656   ;;  %vm1596_vm14 = vcmask 392192   ;;  %vm1629_vm15 = vcmask 457728  }
  0x1b   : > { %v2954_v2 = vld [vmem:[%s3198_s29] sm:$0xff]   ;;  %v2955_v3 = vld [vmem:[%s3198_s29 + $0x8] sm:$0xff]   ;;  %v2956_v4 = vld [vmem:[%s3198_s29 + $0x10] sm:$0xff]   ;;  %vm1662_vm2 = vcmask 523264   ;;  %vm1731_vm3 = vcmask 588800  }
  0x1c   : > { %2739 = vmatprep.mubr.msk.bf16.mxu0 %vm478_vm1, %v2954_v2  ;;  %v2957_v5 = vld [vmem:[%s3198_s29 + $0x18] sm:$0xff]   ;;  %v2958_v6 = vld [vmem:[%s3198_s29 + $0x20] sm:$0xff]   ;;  %v2959_v7 = vld [vmem:[%s3198_s29 + $0x28] sm:$0xff]  }
  0x1d   : > { %2740 = vmatmul.mubr.msk.bf16.vlgmr.msra.gmra.mxu0 %vm478_vm1, %v2955_v3  ;;  %v2960_v8 = vld [vmem:[%s3198_s29 + $0x30] sm:$0xff]   ;;  %v2961_v9 = vld [vmem:[%s3198_s29 + $0x38] sm:$0xff]   ;;  %v2962_v10 = vld [vmem:[%s3198_s29 + $0x40] sm:$0xff]  }
  0x1e   : > { %2743 = vmatprep.mubr.msk.bf16.mxu0 %vm478_vm1, %v2956_v4  ;;  %v2963_v11 = vld [vmem:[%s3198_s29 + $0x48] sm:$0xff]   ;;  %v2964_v12 = vld [vmem:[%s3198_s29 + $0x50] sm:$0xff]   ;;  %v2965_v13 = vld [vmem:[%s3198_s29 + $0x58] sm:$0xff]  }
  0x1f   : > { %v2966_v14 = vld [vmem:[%s3198_s29 + $0x60] sm:$0xff]   ;;  %v2967_v15 = vld [vmem:[%s3198_s29 + $0x68] sm:$0xff]   ;;  %v2968_v16 = vld [vmem:[%s3198_s29 + $0x70] sm:$0xff]  }
  0x20   : > { %v2969_v17 = vld [vmem:[%s3198_s29 + $0x78] sm:$0xff]   ;;  %v2970_v18 = vld [vmem:[%s3198_s29 + $0x80] sm:$0xff]   ;;  %v2971_v19 = vld [vmem:[%s3198_s29 + $0x88] sm:$0xff]  }
  0x25   : > { %2744 = vmatmul.mubr.msk.bf16.gmra.mxu0 %vm478_vm1, %v2957_v5 }
  0x26   : > { %2747 = vmatprep.mubr.msk.bf16.mxu0 %vm478_vm1, %v2958_v6 }
  0x2d   : > { %2748 = vmatmul.mubr.msk.bf16.gmra.mxu0 %vm478_vm1, %v2959_v7 }
  0x2e   : > { %2751 = vmatprep.mubr.msk.bf16.mxu0 %vm478_vm1, %v2960_v8 }
  0x35   : > { %2752 = vmatmul.mubr.msk.bf16.gmra.mxu0 %vm478_vm1, %v2961_v9 }
  0x36   : > { %2755 = vmatprep.mubr.msk.bf16.mxu0 %vm478_vm1, %v2962_v10 }
  0x3d   : > { %2756 = vmatmul.mubr.msk.bf16.gmra.mxu0 %vm478_vm1, %v2963_v11 }
  0x3e   : > { %2759 = vmatprep.mubr.msk.bf16.mxu0 %vm478_vm1, %v2964_v12 }
  0x45   : > { %2760 = vmatmul.mubr.msk.bf16.gmra.mxu0 %vm478_vm1, %v2965_v13 }
  0x46   : > { %2763 = vmatprep.mubr.msk.bf16.mxu0 %vm478_vm1, %v2966_v14 }
  0x4d   : > { %2764 = vmatmul.mubr.msk.bf16.gmra.mxu0 %vm478_vm1, %v2967_v15 }
  0x4e   : > { %2767 = vmatprep.mubr.msk.bf16.mxu0 %vm478_vm1, %v2968_v16 }
  0x55   : > { %2768 = vmatmul.mubr.msk.bf16.gmra.mxu0 %vm478_vm1, %v2969_v17 }
  0x56   : > { %2771 = vmatprep.mubr.msk.bf16.mxu0 %vm478_vm1, %v2970_v18 }
  0x5d   : > { %2772 = vmatmul.mubr.msk.bf16.gmra.mxu0 %vm478_vm1, %v2971_v19 }
  0xdd   : > { %v2741_v20 = vpop.f32.mrf.mxu0 }
  0xde   : > { %v716_v21 = vmax.f32 %v2741_v20, 0.0  ;;  %v2972_v20 = vld [vmem:[%s4191_s4 + $0x20] ss:$0 sps:$4 sm:$0xff]  }
  0xdf   : > { %v571_v23 = vpop.f32.mrf.mxu0  ;;  %2886 = vmatprep.subr.msk.bf16.mxu1 %vm1764_vm8, %v2972_v20 }
  0xe0   : > { %v714_v24 = vmax.f32 %v571_v23, 0.0  ;;  %v759_v26 = vmul.f32 %v3239_v22, %v716_v21 }
  0xe1   : > { %v2742_v25 = vpop.f32.mrf.mxu0 }
  0xe2   : > { %v757_v27 = vmul.f32 %v3239_v22, %v714_v24  ;;  %v717_v28 = vmax.f32 %v2742_v25, 0.0  ;;  %v802_v34 = vadd.f32 %v3246_v29, %v759_v26 }
  0xe3   : > { %v574_v30 = vpop.f32.mrf.mxu0 }
  0xe4   : > { %v760_v31 = vmul.f32 %v3239_v22, %v717_v28  ;;  %v715_v32 = vmax.f32 %v574_v30, 0.0  ;;  %v800_v35 = vadd.f32 %v3246_v29, %v757_v27  ;;  %v2973_v27 = vld [vmem:[%s4191_s4 + $0x18] sm:$0xff]   ;;  %v1766_v28 = vsel %vm1764_vm8, %v2972_v20, 0 }
  0xe5   : > { %v2745_v33 = vpop.f32.mrf.mxu0  ;;  %2776 = vmatpush3.bf16.msra.mxu1 %v1766_v28 }
  0xe6   : > { %v803_v36 = vadd.f32 %v3246_v29, %v760_v31  ;;  %v758_v37 = vmul.f32 %v3239_v22, %v715_v32  ;;  %v720_v41 = vmax.f32 %v2745_v33, 0.0  ;;  %v843_v43 = vmul.f32 0.0, %v800_v35  ;;  %2777 = vmatprep.subr.bf16.mxu1 %v2973_v27 }
  0xe7   : > { %v587_v38 = vpop.f32.mrf.mxu0 }
  0xe8   : > { %v849_v39 = vpack.c.bf16 %v803_v36, %v802_v34  ;;  %v801_v40 = vadd.f32 %v3246_v29, %v758_v37  ;;  %v763_v48 = vmul.f32 %v3239_v22, %v720_v41  ;;  %v718_v0 = vmax.f32 %v587_v38, 0.0  ;;  %v2974_v34 = vld [vmem:[%s4191_s4 + $0x10] sm:$0xff]  }
  0xe9   : > { %v2746_v42 = vpop.f32.mrf.mxu0  ;;  %2778 = vmatpush3.bf16.msra.mxu1 %v2973_v27 }
  0xea   : > { %v844_v44 = vmul.f32 0.0, %v801_v40  ;;  %v721_v45 = vmax.f32 %v2746_v42, 0.0  ;;  %1124 = vrot.lane.b32.xlu0 %v849_v39, %s4197_s23  ;;  %v874_v46 = vshrl.u32 %v849_v39, 16  ;;  %v877_v47 = vshll.u32 %v849_v39, 16  ;;  %2779 = vmatprep.subr.bf16.mxu1 %v2974_v34 }
  0xeb   : > { %v590_v51 = vpop.f32.mrf.mxu0  ;;  %v806_v57 = vadd.f32 %v3246_v29, %v763_v48  ;;  %v761_v6 = vmul.f32 %v3239_v22, %v718_v0 }
  0xec   : > { %v764_v49 = vmul.f32 %v3239_v22, %v721_v45  ;;  %v848_v50 = vpack.c.bf16 %v844_v44, %v843_v43  ;;  %v1033_v52 = vrot.slane %v877_v47, 1  ;;  %v876_v53 = vrot.slane %v874_v46, 7  ;;  %v2976_v44 = vld [vmem:[%s4191_s4] sm:$0xff]  }
  0xed   : > { %v719_v59 = vmax.f32 %v590_v51, 0.0  ;;  %v804_v9 = vadd.f32 %v3246_v29, %v761_v6  ;;  %v2749_v10 = vpop.f32.mrf.mxu0  ;;  %2780 = vmatpush3.bf16.msra.mxu1 %v2974_v34 }
  0xee   : > { %1251 = vrot.lane.b32.xlu0 %v849_v39, %s3074_s24  ;;  %v867_v55 = vshrl.u32 %v848_v50, 16  ;;  %v1034_v56 = vor.u32 %v1033_v52, %v874_v46  ;;  %v807_v58 = vadd.f32 %v3246_v29, %v764_v49  ;;  %v879_v61 = vor.u32 %v877_v47, %v876_v53  ;;  %v2975_v39 = vld [vmem:[%s4191_s4 + $0x8] sm:$0xff]  }
  0xef   : > { %v870_v63 = vshll.u32 %v848_v50, 16  ;;  %v762_v4 = vmul.f32 %v3239_v22, %v719_v59  ;;  %v603_v15 = vpop.f32.mrf.mxu0  ;;  %v724_v21 = vmax.f32 %v2749_v10, 0.0  ;;  %2781 = vmatprep.subr.bf16.mxu1 %v2975_v39 }
  0xf0   : > { %v1089_v60 = vsel %vm3258_vm4, %v1034_v56, 0  ;;  %v869_v62 = vrot.slane %v867_v55, 7  ;;  %v851_v3 = vpack.c.bf16 %v807_v58, %v806_v57  ;;  %v3277_v5 = vsel %vm3268_vm7, 0, %v879_v61 }
  0xf1   : > { %1172 = vrot.lane.b32.xlu1 %v1089_v60, %s3075_s25  ;;  %v805_v7 = vadd.f32 %v3246_v29, %v762_v4  ;;  %v1031_v12 = vrot.slane %v870_v63, 1  ;;  %v2750_v19 = vpop.f32.mrf.mxu0  ;;  %v767_v30 = vmul.f32 %v3239_v22, %v724_v21  ;;  %v722_v45 = vmax.f32 %v603_v15, 0.0  ;;  %2782 = vmatpush3.bf16.msra.mxu1 %v2975_v39 }
  0xf2   : > { %1122 = vrot.lane.b32.xlu0 %v848_v50, %s4197_s23  ;;  %v3272_v2 = vor.u32 %v870_v63, %v869_v62  ;;  %v891_v8 = vshll.u32 %v851_v3, 16  ;;  %v888_v13 = vshrl.u32 %v851_v3, 16  ;;  %v725_v23 = vmax.f32 %v2750_v19, 0.0  ;;  %2783 = vmatprep.subr.bf16.mxu1 %v2976_v44 }
  0xf3   : > { %v850_v11 = vpack.c.bf16 %v805_v7, %v804_v9  ;;  %v1032_v16 = vor.u32 %v1031_v12, %v867_v55  ;;  %v810_v35 = vadd.f32 %v3246_v29, %v767_v30  ;;  %v606_v41 = vpop.f32.mrf.mxu0  ;;  %v765_v49 = vmul.f32 %v3239_v22, %v722_v45 }
  0xf4   : > { %v1037_v14 = vrot.slane %v891_v8, 1  ;;  %v890_v18 = vrot.slane %v888_v13, 7  ;;  %v768_v31 = vmul.f32 %v3239_v22, %v725_v23  ;;  %v723_v46 = vmax.f32 %v606_v41, 0.0 }
  0xf5   : > { %1352 = vrot.lane.b32.xlu1 %v851_v3, %s3076_s26  ;;  %v1088_v24 = vsel %vm3258_vm4, %v1032_v16, 0  ;;  %v881_v33 = vshrl.u32 %v850_v11, 16  ;;  %v884_v38 = vshll.u32 %v850_v11, 16  ;;  %2784 = vmatpush3.bf16.msra.mxu1 %v2976_v44  ;;  %v2753_v53 = vpop.f32.mrf.mxu0  ;;  %v808_v55 = vadd.f32 %v3246_v29, %v765_v49 }
  0xf6   : > { %1218 = vrot.lane.b32.xlu0 %v3277_v5, %s3077_s27  ;;  %v1038_v17 = vor.u32 %v1037_v14, %v888_v13  ;;  %v893_v26 = vor.u32 %v891_v8, %v890_v18  ;;  %v811_v36 = vadd.f32 %v3246_v29, %v768_v31  ;;  %v766_v50 = vmul.f32 %v3239_v22, %v723_v46 }
  0xf7   : > { %v883_v37 = vrot.slane %v881_v33, 7  ;;  %v1035_v43 = vrot.slane %v884_v38, 1  ;;  %v619_v59 = vpop.f32.mrf.mxu0  ;;  %v728_v0 = vmax.f32 %v2753_v53, 0.0 }
  0xf8   : > { %v1091_v25 = vsel %vm3258_vm4, %v1038_v17, 0  ;;  %v3309_v32 = vsel %vm3268_vm7, 0, %v893_v26  ;;  %v853_v40 = vpack.c.bf16 %v811_v36, %v810_v35  ;;  %v809_v56 = vadd.f32 %v3246_v29, %v766_v50 }
  0xf9   : > { %1128 = vrot.lane.b32.xlu1 %v851_v3, %s4197_s23  ;;  %v886_v42 = vor.u32 %v884_v38, %v883_v37  ;;  %v1036_v48 = vor.u32 %v1035_v43, %v881_v33  ;;  %v2754_v63 = vpop.f32.mrf.mxu0  ;;  %v771_v7 = vmul.f32 %v3239_v22, %v728_v0  ;;  %v726_v19 = vmax.f32 %v619_v59, 0.0 }
  0xfa   : > { %1284 = vrot.lane.b32.xlu0 %v1089_v60, %s3078_s28  ;;  %v905_v52 = vshll.u32 %v853_v40, 16  ;;  %v902_v57 = vshrl.u32 %v853_v40, 16  ;;  %v852_v60 = vpack.c.bf16 %v809_v56, %v808_v55 }
  0xfb   : > { %v3332_v47 = vsel %vm3268_vm7, 0, %v886_v42  ;;  %v1090_v51 = vsel %vm3258_vm4, %v1036_v48, 0  ;;  %v622_v16 = vpop.f32.mrf.mxu0 }
  0xfc   : > { %v1041_v58 = vrot.slane %v905_v52, 1  ;;  %v904_v62 = vrot.slane %v902_v57, 7  ;;  %v895_v10 = vshrl.u32 %v852_v60, 16  ;;  %v898_v14 = vshll.u32 %v852_v60, 16 }
  0xfd   : > { %1253 = vrot.lane.b32.xlu1 %v850_v11, %s3074_s24  ;;  %v727_v20 = vmax.f32 %v622_v16, 0.0  ;;  %v2757_v28 = vpop.f32.mrf.mxu0 }
  0xfe   : > { %1255 = vrot.lane.b32.xlu0 %v851_v3, %s3074_s24  ;;  %v1042_v61 = vor.u32 %v1041_v58, %v902_v57  ;;  %v729_v3 = vmax.f32 %v2754_v63, 0.0  ;;  %v907_v6 = vor.u32 %v905_v52, %v904_v62  ;;  %v897_v13 = vrot.slane %v895_v10, 7 }
  0xff   : > { %v1039_v18 = vrot.slane %v898_v14, 1  ;;  %v635_v35 = vpop.f32.mrf.mxu0 }
 0x100   : > { %v1093_v4 = vsel %vm3258_vm4, %v1042_v61, 0  ;;  %v772_v8 = vmul.f32 %v3239_v22, %v729_v3  ;;  %v3358_v9 = vsel %vm3268_vm7, 0, %v907_v6  ;;  %v900_v17 = vor.u32 %v898_v14, %v897_v13 }
 0x101   : > { %1126 = vrot.lane.b32.xlu1 %v850_v11, %s4197_s23  ;;  %s4199_s23 = smov 64   ;;  %v1040_v23 = vor.u32 %v1039_v18, %v895_v10  ;;  %v2758_v39 = vpop.f32.mrf.mxu0  ;;  %v730_v58 = vmax.f32 %v635_v35, 0.0 }
 0x102   : > { %1350 = vrot.lane.b32.xlu0 %v850_v11, %s3076_s26  ;;  %v814_v11 = vadd.f32 %v3246_v29, %v771_v7  ;;  %v815_v12 = vadd.f32 %v3246_v29, %v772_v8  ;;  %v3372_v21 = vsel %vm3268_vm7, 0, %v900_v17  ;;  %v733_v41 = vmax.f32 %v2758_v39, 0.0 }
 0x103   : > { %v1092_v26 = vsel %vm3258_vm4, %v1040_v23, 0  ;;  %v638_v55 = vpop.f32.mrf.mxu0  ;;  %v773_v62 = vmul.f32 %v3239_v22, %v730_v58 }
 0x104   : > { %v855_v15 = vpack.c.bf16 %v815_v12, %v814_v11  ;;  %v776_v45 = vmul.f32 %v3239_v22, %v733_v41  ;;  %v731_v59 = vmax.f32 %v638_v55, 0.0 }
 0x105   : > { %1170 = vrot.lane.b32.xlu1 %v1088_v24, %s3075_s25  ;;  %v769_v24 = vmul.f32 %v3239_v22, %v726_v19  ;;  %v816_v6 = vadd.f32 %v3246_v29, %v773_v62 }
 0x106   : > { %1385 = vrot.lane.b32.xlu0 %v1091_v25, %s4199_s23  ;;  %s4209_s23 = smov 8   ;;  %v919_v27 = vshll.u32 %v855_v15, 16  ;;  %v916_v33 = vshrl.u32 %v855_v15, 16  ;;  %v819_v50 = vadd.f32 %v3246_v29, %v776_v45  ;;  %v774_v63 = vmul.f32 %v3239_v22, %v731_v59 }
 0x107   : > { %v812_v30 = vadd.f32 %v3246_v29, %v769_v24 }
 0x108   : > { %v1045_v34 = vrot.slane %v919_v27, 1  ;;  %v918_v38 = vrot.slane %v916_v33, 7  ;;  %v817_v7 = vadd.f32 %v3246_v29, %v774_v63 }
 0x109   : > { %1319 = vrot.lane.b32.xlu1 %v3309_v32, %s3080_s18 }
 0x10a   : > { %1222 = vrot.lane.b32.xlu0 %v3309_v32, %s3077_s27  ;;  %v1046_v37 = vor.u32 %v1045_v34, %v916_v33  ;;  %v921_v43 = vor.u32 %v919_v27, %v918_v38  ;;  %v856_v13 = vpack.c.bf16 %v817_v7, %v816_v6  ;;  %v1013_v6 = vsel %vm3268_vm7, 0, %v3272_v2 }
 0x10c   : > { %v1095_v42 = vsel %vm3258_vm4, %v1046_v37, 0  ;;  %v3398_v46 = vsel %vm3268_vm7, 0, %v921_v43  ;;  %v923_v33 = vshrl.u32 %v856_v13, 16  ;;  %v926_v39 = vshll.u32 %v856_v13, 16 }
 0x10d   : > { %1176 = vrot.lane.b32.xlu1 %v1091_v25, %s3075_s25 }
 0x10e   : > { %1288 = vrot.lane.b32.xlu0 %v1091_v25, %s3078_s28  ;;  %v770_v25 = vmul.f32 %v3239_v22, %v727_v20  ;;  %v925_v38 = vrot.slane %v923_v33, 7  ;;  %v1047_v45 = vrot.slane %v926_v39, 1 }
 0x110   : > { %v813_v31 = vadd.f32 %v3246_v29, %v770_v25 }
 0x111   : > { %1356 = vrot.lane.b32.xlu1 %v853_v40, %s3076_s26 }
 0x112   : > { %1259 = vrot.lane.b32.xlu0 %v853_v40, %s3074_s24  ;;  %v854_v36 = vpack.c.bf16 %v813_v31, %v812_v30 }
 0x114   : > { %v909_v48 = vshrl.u32 %v854_v36, 16  ;;  %v912_v52 = vshll.u32 %v854_v36, 16 }
 0x115   : > { %1132 = vrot.lane.b32.xlu1 %v853_v40, %s4209_s23  ;;  %v732_v40 = vmax.f32 %v2757_v28, 0.0 }
 0x116   : > { %1317 = vrot.lane.b32.xlu0 %v3332_v47, %s3080_s18  ;;  %v1043_v57 = vrot.slane %v912_v52, 1 }
 0x117   : > { %v775_v44 = vmul.f32 %v3239_v22, %v732_v40 }
 0x118   : > { %v1044_v61 = vor.u32 %v1043_v57, %v909_v48 }
 0x119   : > { %1220 = vrot.lane.b32.xlu1 %v3332_v47, %s3077_s27  ;;  %v818_v49 = vadd.f32 %v3246_v29, %v775_v44  ;;  %v928_v44 = vor.u32 %v926_v39, %v925_v38 }
 0x11a   : > { %1383 = vrot.lane.b32.xlu0 %v1090_v51, %s4210_s20  ;;  %v1094_v0 = vsel %vm3258_vm4, %v1044_v61, 0 }
 0x11b   : > { %v857_v53 = vpack.c.bf16 %v819_v50, %v818_v49 }
 0x11d   : > { %1286 = vrot.lane.b32.xlu1 %v1090_v51, %s3078_s28  ;;  %v933_v3 = vshll.u32 %v857_v53, 16  ;;  %v930_v10 = vshrl.u32 %v857_v53, 16 }
 0x11e   : > { %1174 = vrot.lane.b32.xlu0 %v1090_v51, %s3075_s25  ;;  %v911_v51 = vrot.slane %v909_v48, 7 }
 0x11f   : > { %v1049_v11 = vrot.slane %v933_v3, 1  ;;  %v932_v16 = vrot.slane %v930_v10, 7 }
 0x120   : > { %v914_v56 = vor.u32 %v912_v52, %v911_v51  ;;  %v3472_v52 = vsel %vm3268_vm7, 0, %v928_v44 }
 0x121   : > { %1257 = vrot.lane.b32.xlu1 %v852_v60, %s3074_s24  ;;  %v935_v25 = vor.u32 %v933_v3, %v932_v16 }
 0x122   : > { %1354 = vrot.lane.b32.xlu0 %v852_v60, %s3076_s26 }
 0x123   : > { %v3446_v31 = vsel %vm3268_vm7, 0, %v935_v25 }
 0x125   : > { %1130 = vrot.lane.b32.xlu1 %v852_v60, %s4209_s23  ;;  %v3412_v60 = vsel %vm3268_vm7, 0, %v914_v56 }
 0x126   : > { %1389 = vrot.lane.b32.xlu0 %v1093_v4, %s4210_s20 }
 0x129   : > { %1323 = vrot.lane.b32.xlu1 %v3358_v9, %s3080_s18 }
 0x12a   : > { %1226 = vrot.lane.b32.xlu0 %v3358_v9, %s3077_s27 }
 0x12d   : > { %1180 = vrot.lane.b32.xlu1 %v1093_v4, %s3075_s25 }
 0x12e   : > { %1292 = vrot.lane.b32.xlu0 %v1093_v4, %s3078_s28  ;;  %v2761_v4 = vpop.f32.mrf.mxu0 }
 0x12f   : > { %v736_v18 = vmax.f32 %v2761_v4, 0.0 }
 0x130   : > { %v651_v12 = vpop.f32.mrf.mxu0 }
 0x131   : > { %1360 = vrot.lane.b32.xlu1 %v855_v15, %s3076_s26  ;;  %v734_v48 = vmax.f32 %v651_v12, 0.0 }
 0x132   : > { %1263 = vrot.lane.b32.xlu0 %v855_v15, %s3074_s24  ;;  %v2762_v17 = vpop.f32.mrf.mxu0 }
 0x133   : > { %v737_v19 = vmax.f32 %v2762_v17, 0.0  ;;  %v777_v55 = vmul.f32 %v3239_v22, %v734_v48 }
 0x134   : > { %v654_v43 = vpop.f32.mrf.mxu0 }
 0x135   : > { %1136 = vrot.lane.b32.xlu1 %v855_v15, %s4209_s23  ;;  %v1050_v15 = vor.u32 %v1049_v11, %v930_v10  ;;  %v780_v27 = vmul.f32 %v3239_v22, %v737_v19  ;;  %v735_v49 = vmax.f32 %v654_v43, 0.0  ;;  %v820_v63 = vadd.f32 %v3246_v29, %v777_v55 }
 0x136   : > { %1321 = vrot.lane.b32.xlu0 %v3372_v21, %s3080_s18  ;;  %v2765_v62 = vpop.f32.mrf.mxu0 }
 0x137   : > { %v1097_v24 = vsel %vm3258_vm4, %v1050_v15, 0  ;;  %v823_v35 = vadd.f32 %v3246_v29, %v780_v27  ;;  %v778_v56 = vmul.f32 %v3239_v22, %v735_v49 }
 0x139   : > { %1224 = vrot.lane.b32.xlu1 %v3372_v21, %s3077_s27 }
 0x13a   : > { %1387 = vrot.lane.b32.xlu0 %v1092_v26, %s4210_s20 }
 0x13d   : > { %1290 = vrot.lane.b32.xlu1 %v1092_v26, %s3078_s28 }
 0x13e   : > { %1178 = vrot.lane.b32.xlu0 %v1092_v26, %s3075_s25  ;;  %v779_v26 = vmul.f32 %v3239_v22, %v736_v18 }
 0x140   : > { %v822_v34 = vadd.f32 %v3246_v29, %v779_v26 }
 0x141   : > { %1261 = vrot.lane.b32.xlu1 %v854_v36, %s3074_s24 }
 0x142   : > { %1358 = vrot.lane.b32.xlu0 %v854_v36, %s3076_s26  ;;  %v859_v40 = vpack.c.bf16 %v823_v35, %v822_v34 }
 0x144   : > { %v947_v61 = vshll.u32 %v859_v40, 16  ;;  %v944_v7 = vshrl.u32 %v859_v40, 16 }
 0x145   : > { %1134 = vrot.lane.b32.xlu1 %v854_v36, %s4209_s23 }
 0x146   : > { %1393 = vrot.lane.b32.xlu0 %v1095_v42, %s4210_s20  ;;  %v1053_v10 = vrot.slane %v947_v61, 1  ;;  %v946_v18 = vrot.slane %v944_v7, 7 }
 0x148   : > { %v1054_v2 = vor.u32 %v1053_v10, %v944_v7  ;;  %v949_v34 = vor.u32 %v947_v61, %v946_v18 }
 0x149   : > { %1327 = vrot.lane.b32.xlu1 %v3398_v46, %s3080_s18 }
 0x14a   : > { %1230 = vrot.lane.b32.xlu0 %v3398_v46, %s3077_s27  ;;  %v3532_v44 = vsel %vm3268_vm7, 0, %v949_v34 }
 0x14d   : > { %1184 = vrot.lane.b32.xlu1 %v1095_v42, %s3075_s25 }
 0x14e   : > { %1296 = vrot.lane.b32.xlu0 %v1095_v42, %s3078_s28 }
 0x151   : > { %1364 = vrot.lane.b32.xlu1 %v857_v53, %s3076_s26 }
 0x152   : > { %1267 = vrot.lane.b32.xlu0 %v857_v53, %s3074_s24 }
 0x155   : > { %1140 = vrot.lane.b32.xlu1 %v857_v53, %s4209_s23  ;;  %v1048_v53 = vor.u32 %v1047_v45, %v923_v33  ;;  %v1099_v33 = vsel %vm3258_vm4, %v1054_v2, 0 }
 0x156   : > { %1325 = vrot.lane.b32.xlu0 %v3412_v60, %s3080_s18 }
 0x157   : > { %v1096_v59 = vsel %vm3258_vm4, %v1048_v53, 0 }
 0x159   : > { %1228 = vrot.lane.b32.xlu1 %v3412_v60, %s3077_s27 }
 0x15a   : > { %1391 = vrot.lane.b32.xlu0 %v1094_v0, %s4210_s20 }
 0x15c   : > { %v3426_v8 = vpop.permute.xlu0 %1124 }
 0x15d   : > { %1294 = vrot.lane.b32.xlu1 %v1094_v0, %s3078_s28 }
 0x15e   : > { %1182 = vrot.lane.b32.xlu0 %v1094_v0, %s3075_s25  ;;  %v821_v0 = vadd.f32 %v3246_v29, %v778_v56 }
 0x160   : > { %v3430_v14 = vpop.permute.xlu0 %1251  ;;  %v3501_v15 = vpack.c.bf16 %v821_v0, %v820_v63 }
 0x161   : > { %1265 = vrot.lane.b32.xlu1 %v856_v13, %s3074_s24 }
 0x162   : > { %1362 = vrot.lane.b32.xlu0 %v856_v13, %s3076_s26  ;;  %v937_v45 = vshrl.u32 %v3501_v15, 16 }
 0x163   : > { %v3434_v20 = vpop.permute.xlu1 %1172 }
 0x164   : > { %v1123_v23 = vpop.permute.xlu0 %1122 }
 0x165   : > { %1138 = vrot.lane.b32.xlu1 %v856_v13, %s4209_s23  ;;  %v1418_v11 = vsel %vm1415_vm9, %v1013_v6, %v1123_v23  ;;  %v3499_v13 = vpop.f32.mrf.mxu0 }
 0x166   : > { %1397 = vrot.lane.b32.xlu0 %v1097_v24, %s4210_s20 }
 0x167   : > { %v3442_v28 = vpop.permute.xlu1 %1352  ;;  %v2766_v23 = vpop.f32.mrf.mxu0 }
 0x168   : > { %v1219_v30 = vpop.permute.xlu0 %1218  ;;  %v741_v25 = vmax.f32 %v2766_v23, 0.0 }
 0x169   : > { %1331 = vrot.lane.b32.xlu1 %v3446_v31, %s3080_s18 }
 0x16a   : > { %1234 = vrot.lane.b32.xlu0 %v3446_v31, %s3077_s27  ;;  %v784_v38 = vmul.f32 %v3239_v22, %v741_v25 }
 0x16b   : > { %v3454_v36 = vpop.permute.xlu1 %1128 }
 0x16c   : > { %v3456_v37 = vpop.permute.xlu0 %1284  ;;  %v827_v53 = vadd.f32 %v3246_v29, %v784_v38 }
 0x16d   : > { %1188 = vrot.lane.b32.xlu1 %v1097_v24, %s3075_s25 }
 0x16e   : > { %1300 = vrot.lane.b32.xlu0 %v1097_v24, %s3078_s28  ;;  %v740_v24 = vmax.f32 %v2765_v62, 0.0 }
 0x16f   : > { %v3460_v41 = vpop.permute.xlu1 %1253 }
 0x170   : > { %v3462_v42 = vpop.permute.xlu0 %1255  ;;  %v783_v35 = vmul.f32 %v3239_v22, %v740_v24 }
 0x171   : > { %1368 = vrot.lane.b32.xlu1 %v859_v40, %s3076_s26 }
 0x172   : > { %1271 = vrot.lane.b32.xlu0 %v859_v40, %s3074_s24  ;;  %v826_v49 = vadd.f32 %v3246_v29, %v783_v35 }
 0x173   : > { %v3466_v50 = vpop.permute.xlu1 %1126 }
 0x174   : > { %v3468_v51 = vpop.permute.xlu0 %1350 }
 0x175   : > { %1144 = vrot.lane.b32.xlu1 %v859_v40, %s4209_s23 }
 0x176   : > { %1329 = vrot.lane.b32.xlu0 %v3472_v52, %s3080_s18 }
 0x177   : > { %v1171_v57 = vpop.permute.xlu1 %1170 }
 0x178   : > { %v3479_v58 = vpop.permute.xlu0 %1385  ;;  %v1466_v12 = vsel %vm1464_vm10, %v1418_v11, %v1171_v57 }
 0x179   : > { %1232 = vrot.lane.b32.xlu1 %v3472_v52, %s3077_s27  ;;  %v1499_v19 = vsel %vm1497_vm11, %v1466_v12, %v1219_v30 }
 0x17a   : > { %1395 = vrot.lane.b32.xlu0 %v1096_v59, %s4210_s20  ;;  %v1532_v30 = vsel %vm1530_vm12, %v1499_v19, %v3430_v14 }
 0x17b   : > { %v3488_v3 = vpop.permute.xlu1 %1319  ;;  %v1565_v40 = vsel %vm1563_vm13, %v1532_v30, %v3456_v37  ;;  %v1421_v37 = vsel %vm1415_vm9, %v3277_v5, %v3426_v8  ;;  %v939_v5 = vrot.slane %v937_v45, 7  ;;  %v940_v8 = vshll.u32 %v3501_v15, 16 }
 0x17c   : > { %v3490_v4 = vpop.permute.xlu0 %1222  ;;  %v1468_v48 = vsel %vm1464_vm10, %v1421_v37, %v3434_v20  ;;  %v861_v20 = vpack.c.bf16 %v827_v53, %v826_v49 }
 0x17d   : > { %1298 = vrot.lane.b32.xlu1 %v1096_v59, %s3078_s28  ;;  %v942_v10 = vor.u32 %v940_v8, %v939_v5  ;;  %v1051_v11 = vrot.slane %v940_v8, 1 }
 0x17e   : > { %1186 = vrot.lane.b32.xlu0 %v1096_v59, %s3075_s25 }
 0x17f   : > { %v3503_v16 = vpop.permute.xlu1 %1176  ;;  %v1052_v23 = vor.u32 %v1051_v11, %v937_v45 }
 0x180   : > { %v3505_v17 = vpop.permute.xlu0 %1288 }
 0x181   : > { %1269 = vrot.lane.b32.xlu1 %v3501_v15, %s3074_s24  ;;  %v1098_v25 = vsel %vm3258_vm4, %v1052_v23, 0 }
 0x182   : > { %1366 = vrot.lane.b32.xlu0 %v3501_v15, %s3076_s26 }
 0x183   : > { %v3512_v26 = vpop.permute.xlu1 %1356 }
 0x184   : > { %v3514_v27 = vpop.permute.xlu0 %1259 }
 0x185   : > { %1142 = vrot.lane.b32.xlu1 %v3501_v15, %s4209_s23  ;;  %v738_v15 = vmax.f32 %v3499_v13, 0.0 }
 0x186   : > { %1401 = vrot.lane.b32.xlu0 %v1099_v33, %s4210_s20 }
 0x187   : > { %v3525_v39 = vpop.permute.xlu1 %1132 }
 0x188   : > { %v1318_v43 = vpop.permute.xlu0 %1317 }
 0x189   : > { %v1598_v14 = vsel %vm1596_vm14, %v1565_v40, %v1318_v43  ;;  %1335 = vrot.lane.b32.xlu1 %v3532_v44, %s3080_s18  ;;  %v958_v43 = vshrl.u32 %v861_v20, 16 }
 0x18a   : > { %1238 = vrot.lane.b32.xlu0 %v3532_v44, %s3077_s27  ;;  %v1631_v57 = vsel %vm1629_vm15, %v1598_v14, %v3468_v51  ;;  %v670_v51 = vpop.f32.mrf.mxu0  ;;  %v1424_v14 = vsel %vm1415_vm9, %v3332_v47, %v3466_v50 }
 0x18b   : > { %v1221_v55 = vpop.permute.xlu1 %1220 }
 0x18c   : > { %v1384_v56 = vpop.permute.xlu0 %1383  ;;  %v1501_v59 = vsel %vm1497_vm11, %v1468_v48, %v1221_v55  ;;  %v2769_v30 = vpop.f32.mrf.mxu0 }
 0x18d   : > { %v1664_v61 = vsel %vm1662_vm2, %v1631_v57, %v1384_v56  ;;  %1192 = vrot.lane.b32.xlu1 %v1099_v33, %s3075_s25  ;;  %v1534_v62 = vsel %vm1530_vm12, %v1501_v59, %v3460_v41  ;;  %v739_v41 = vmax.f32 %v670_v51, 0.0  ;;  %v960_v56 = vrot.slane %v958_v43, 7 }
 0x18e   : > { %2785 = vmatprep.mubr.msk.bf16.mxu1 %vm1731_vm3, %v1664_v61  ;;  %1304 = vrot.lane.b32.xlu0 %v1099_v33, %s3078_s28  ;;  %v961_v33 = vshll.u32 %v861_v20, 16  ;;  %v3597_v48 = vpop.f32.mrf.mxu0  ;;  %v744_v59 = vmax.f32 %v2769_v30, 0.0 }
 0x18f   : > { %v1287_v63 = vpop.permute.xlu1 %1286  ;;  %v782_v13 = vmul.f32 %v3239_v22, %v739_v41 }
 0x190   : > { %v1175_v0 = vpop.permute.xlu0 %1174  ;;  %v1567_v6 = vsel %vm1563_vm13, %v1534_v62, %v1287_v63  ;;  %v1057_v45 = vrot.slane %v961_v33, 1  ;;  %v2770_v50 = vpop.f32.mrf.mxu0  ;;  %v963_v62 = vor.u32 %v961_v33, %v960_v56  ;;  %v787_v63 = vmul.f32 %v3239_v22, %v744_v59 }
 0x191   : > { %v1600_v7 = vsel %vm1596_vm14, %v1567_v6, %v3488_v3  ;;  %1372 = vrot.lane.b32.xlu1 %v861_v20, %s3076_s26  ;;  %v3572_v3 = vsel %vm3268_vm7, 0, %v942_v10  ;;  %v825_v35 = vadd.f32 %v3246_v29, %v782_v13  ;;  %v1470_v37 = vsel %vm1464_vm10, %v1424_v14, %v1175_v0 }
 0x192   : > { %1275 = vrot.lane.b32.xlu0 %v861_v20, %s3074_s24  ;;  %v1633_v12 = vsel %vm1629_vm15, %v1600_v7, %v3442_v28  ;;  %v781_v28 = vmul.f32 %v3239_v22, %v738_v15  ;;  %v1503_v57 = vsel %vm1497_vm11, %v1470_v37, %v3490_v4  ;;  %v1058_v47 = vor.u32 %v1057_v45, %v958_v43 }
 0x193   : > { %v3564_v2 = vpop.permute.xlu1 %1257  ;;  %v1666_v18 = vsel %vm1662_vm2, %v1633_v12, %v3479_v58  ;;  %v745_v61 = vmax.f32 %v2770_v50, 0.0  ;;  %v3631_v10 = vsel %vm3268_vm7, 0, %v963_v62  ;;  %v1427_v12 = vsel %vm1415_vm9, %v3309_v32, %v3454_v36 }
 0x194   : > { %v1355_v19 = vpop.permute.xlu0 %1354  ;;  %2786 = vmatmul.mubr.msk.bf16.vlgmr.msra.gmra.mxu1 %vm1731_vm3, %v1666_v18  ;;  %v824_v34 = vadd.f32 %v3246_v29, %v781_v28  ;;  %v1101_v4 = vsel %vm3258_vm4, %v1058_v47, 0  ;;  %v830_v15 = vadd.f32 %v3246_v29, %v787_v63  ;;  %v742_v37 = vmax.f32 %v3597_v48, 0.0 }
 0x195   : > { %1148 = vrot.lane.b32.xlu1 %v861_v20, %s4209_s23  ;;  %v1536_v20 = vsel %vm1530_vm12, %v1503_v57, %v3462_v42  ;;  %v788_v0 = vmul.f32 %v3239_v22, %v745_v61 }
 0x196   : > { %1333 = vrot.lane.b32.xlu0 %v3572_v3, %s3080_s18  ;;  %v3599_v49 = vpack.c.bf16 %v825_v35, %v824_v34  ;;  %v1569_v6 = vsel %vm1563_vm13, %v1536_v20, %v3505_v17  ;;  %v1472_v17 = vsel %vm1464_vm10, %v1427_v12, %v3503_v16  ;;  %v686_v16 = vpop.f32.mrf.mxu0  ;;  %v785_v59 = vmul.f32 %v3239_v22, %v742_v37 }
 0x197   : > { %v3578_v24 = vpop.permute.xlu1 %1130  ;;  %v831_v41 = vadd.f32 %v3246_v29, %v788_v0 }
 0x198   : > { %v3580_v58 = vpop.permute.xlu0 %1389  ;;  %v951_v11 = vshrl.u32 %v3599_v49, 16  ;;  %v954_v36 = vshll.u32 %v3599_v49, 16  ;;  %v2773_v50 = vpop.f32.mrf.mxu0  ;;  %v828_v63 = vadd.f32 %v3246_v29, %v785_v59 }
 0x199   : > { %1236 = vrot.lane.b32.xlu1 %v3572_v3, %s3077_s27  ;;  %v863_v33 = vpack.c.bf16 %v831_v41, %v830_v15 }
 0x19a   : > { %1399 = vrot.lane.b32.xlu0 %v1098_v25, %s4210_s20  ;;  %v953_v32 = vrot.slane %v951_v11, 7  ;;  %v1055_v45 = vrot.slane %v954_v36, 1  ;;  %v699_v62 = vpop.f32.mrf.mxu0 }
 0x19b   : > { %v1324_v38 = vpop.permute.xlu1 %1323 }
 0x19c   : > { %v3589_v40 = vpop.permute.xlu0 %1226  ;;  %v956_v14 = vor.u32 %v954_v36, %v953_v32  ;;  %v1056_v48 = vor.u32 %v1055_v45, %v951_v11  ;;  %v2774_v12 = vpop.f32.mrf.mxu0  ;;  %v746_v32 = vmax.f32 %v699_v62, 0.0 }
 0x19d   : > { %1302 = vrot.lane.b32.xlu1 %v1098_v25, %s3078_s28  ;;  %v749_v37 = vmax.f32 %v2774_v12, 0.0 }
 0x19e   : > { %1190 = vrot.lane.b32.xlu0 %v1098_v25, %s3075_s25  ;;  %v1100_v20 = vsel %vm3258_vm4, %v1056_v48, 0  ;;  %v1433_v48 = vsel %vm1415_vm9, %v3358_v9, %v3525_v39 }
 0x19f   : > { %v3601_v53 = vpop.permute.xlu1 %1180 }
 0x1a0   : > { %v3603_v55 = vpop.permute.xlu0 %1292  ;;  %v1476_v59 = vsel %vm1464_vm10, %v1433_v48, %v3601_v53 }
 0x1a1   : > { %1273 = vrot.lane.b32.xlu1 %v3599_v49, %s3074_s24 }
 0x1a2   : > { %1370 = vrot.lane.b32.xlu0 %v3599_v49, %s3076_s26 }
 0x1a3   : > { %v3611_v5 = vpop.permute.xlu1 %1360 }
 0x1a4   : > { %v3613_v8 = vpop.permute.xlu0 %1263 }
 0x1a5   : > { %1146 = vrot.lane.b32.xlu1 %v3599_v49, %s4209_s23  ;;  %v743_v49 = vmax.f32 %v686_v16, 0.0 }
 0x1a6   : > { %1405 = vrot.lane.b32.xlu0 %v1101_v4, %s4210_s20 }
 0x1a7   : > { %v3624_v51 = vpop.permute.xlu1 %1136 }
 0x1a8   : > { %v1322_v7 = vpop.permute.xlu0 %1321 }
 0x1a9   : > { %v1602_v42 = vsel %vm1596_vm14, %v1569_v6, %v1322_v7  ;;  %1339 = vrot.lane.b32.xlu1 %v3631_v10, %s3080_s18  ;;  %v972_v7 = vshrl.u32 %v863_v33, 16 }
 0x1aa   : > { %1242 = vrot.lane.b32.xlu0 %v3631_v10, %s3077_s27  ;;  %v1635_v23 = vsel %vm1629_vm15, %v1602_v42, %v1355_v19  ;;  %v1430_v42 = vsel %vm1415_vm9, %v3372_v21, %v3578_v24  ;;  %v702_v24 = vpop.f32.mrf.mxu0 }
 0x1ab   : > { %v1225_v18 = vpop.permute.xlu1 %1224  ;;  %v747_v16 = vmax.f32 %v702_v24, 0.0 }
 0x1ac   : > { %v1388_v28 = vpop.permute.xlu0 %1387  ;;  %v1505_v13 = vsel %vm1497_vm11, %v1472_v17, %v1225_v18  ;;  %v974_v18 = vrot.slane %v972_v7, 7 }
 0x1ad   : > { %v1668_v25 = vsel %vm1662_vm2, %v1635_v23, %v1388_v28  ;;  %1196 = vrot.lane.b32.xlu1 %v1101_v4, %s3075_s25  ;;  %v1538_v30 = vsel %vm1530_vm12, %v1505_v13, %v3564_v2 }
 0x1ae   : > { %2789 = vmatprep.mubr.msk.bf16.mxu1 %vm1731_vm3, %v1668_v25  ;;  %1308 = vrot.lane.b32.xlu0 %v1101_v4, %s3078_s28  ;;  %v975_v4 = vshll.u32 %v863_v33, 16 }
 0x1af   : > { %v1291_v19 = vpop.permute.xlu1 %1290 }
 0x1b0   : > { %v1179_v34 = vpop.permute.xlu0 %1178  ;;  %v1571_v35 = vsel %vm1563_vm13, %v1538_v30, %v1291_v19  ;;  %v1061_v11 = vrot.slane %v975_v4, 1 }
 0x1b1   : > { %v1604_v43 = vsel %vm1596_vm14, %v1571_v35, %v1324_v38  ;;  %1376 = vrot.lane.b32.xlu1 %v863_v33, %s3076_s26  ;;  %v3671_v38 = vsel %vm3268_vm7, 0, %v956_v14  ;;  %v1474_v15 = vsel %vm1464_vm10, %v1430_v42, %v1179_v34  ;;  %v748_v34 = vmax.f32 %v2773_v50, 0.0  ;;  %v2977_v35 = vld [vmem:[%s4189_s2] ss:$0 sm:$0xff] }
 0x1b2   : > { %1279 = vrot.lane.b32.xlu0 %v863_v33, %s3074_s24  ;;  %v1637_v56 = vsel %vm1629_vm15, %v1604_v43, %v3512_v26  ;;  %v786_v26 = vmul.f32 %v3239_v22, %v743_v49  ;;  %v1507_v23 = vsel %vm1497_vm11, %v1474_v15, %v3589_v40  ;;  %v1062_v21 = vor.u32 %v1061_v11, %v972_v7 }
 0x1b3   : > { %v3661_v57 = vpop.permute.xlu1 %1261  ;;  %v1670_v2 = vsel %vm1662_vm2, %v1637_v56, %v3580_v58  ;;  %v1540_v36 = vsel %vm1530_vm12, %v1507_v23, %v3514_v27  ;;  %v789_v43 = vmul.f32 %v2977_v35, %v746_v32  ;;  %v790_v56 = vmul.f32 %v2977_v35, %v747_v16 }
 0x1b4   : > { %v3665_v47 = vpop.permute.xlu0 %1358  ;;  %2790 = vmatmul.mubr.msk.bf16.gmra.mxu1 %vm1731_vm3, %v1670_v2  ;;  %v829_v0 = vadd.f32 %v3246_v29, %v786_v26  ;;  %v1103_v40 = vsel %vm3258_vm4, %v1062_v21, 0  ;;  %v1573_v27 = vsel %vm1563_vm13, %v1540_v36, %v3603_v55  ;;  %v791_v26 = vmul.f32 %v2977_v35, %v748_v34 }
 0x1b5   : > { %1152 = vrot.lane.b32.xlu1 %v863_v33, %s4209_s23  ;;  %v977_v33 = vor.u32 %v975_v4, %v974_v18  ;;  %v792_v9 = vmul.f32 %v2977_v35, %v749_v37 }
 0x1b6   : > { %1337 = vrot.lane.b32.xlu0 %v3671_v38, %s3080_s18  ;;  %v862_v17 = vpack.c.bf16 %v829_v0, %v828_v63 }
 0x1b7   : > { %v3677_v58 = vpop.permute.xlu1 %1134  ;;  %v3726_v2 = vsel %vm3268_vm7, 0, %v977_v33 }
 0x1b8   : > { %v3679_v61 = vpop.permute.xlu0 %1393  ;;  %v965_v28 = vshrl.u32 %v862_v17, 16  ;;  %v968_v19 = vshll.u32 %v862_v17, 16 }
 0x1b9   : > { %1240 = vrot.lane.b32.xlu1 %v3671_v38, %s3077_s27 }
 0x1ba   : > { %1403 = vrot.lane.b32.xlu0 %v1100_v20, %s4210_s20  ;;  %v967_v30 = vrot.slane %v965_v28, 7  ;;  %v1059_v50 = vrot.slane %v968_v19, 1 }
 0x1bb   : > { %v3688_v22 = vpop.permute.xlu1 %1327 }
 0x1bc   : > { %v3690_v6 = vpop.permute.xlu0 %1230  ;;  %v970_v55 = vor.u32 %v968_v19, %v967_v30 }
 0x1bd   : > { %1306 = vrot.lane.b32.xlu1 %v1100_v20, %s3078_s28 }
 0x1be   : > { %1194 = vrot.lane.b32.xlu0 %v1100_v20, %s3075_s25  ;;  %v2978_v20 = vld [vmem:[%s4190_s3] ss:$0 sm:$0xff] }
 0x1bf   : > { %v3698_v29 = vpop.permute.xlu1 %1184  ;;  %v832_v62 = vadd.f32 %v2978_v20, %v789_v43  ;;  %v833_v39 = vadd.f32 %v2978_v20, %v790_v56  ;;  %v834_v15 = vadd.f32 %v2978_v20, %v791_v26  ;;  %v835_v18 = vadd.f32 %v2978_v20, %v792_v9  ;;  %v1977_v56 = vld [vmem:[%s4192_s5] sm:$0xf] }
 0x1c0   : > { %v3700_v41 = vpop.permute.xlu0 %1296  ;;  %2887 = vmatprep.subr.msk.bf16.mxu0 %vm1764_vm8, %v1977_v56 }
 0x1c1   : > { %1277 = vrot.lane.b32.xlu1 %v862_v17, %s3074_s24  ;;  %v864_v23 = vpack.c.bf16 %v833_v39, %v832_v62  ;;  %v846_v16 = vmul.f32 0.0, %v834_v15  ;;  %v847_v33 = vmul.f32 0.0, %v835_v18 }
 0x1c2   : > { %1374 = vrot.lane.b32.xlu0 %v862_v17, %s3076_s26 }
 0x1c3   : > { %v3706_v13 = vpop.permute.xlu1 %1364  ;;  %v865_v19 = vpack.c.bf16 %v847_v33, %v846_v16 }
 0x1c4   : > { %v3708_v25 = vpop.permute.xlu0 %1267 }
 0x1c5   : > { %1150 = vrot.lane.b32.xlu1 %v862_v17, %s4209_s23  ;;  %v1060_v17 = vor.u32 %v1059_v50, %v965_v28  ;;  %v986_v37 = vshrl.u32 %v865_v19, 16  ;;  %v989_v20 = vshll.u32 %v865_v19, 16 }
 0x1c6   : > { %1409 = vrot.lane.b32.xlu0 %v1103_v40, %s4210_s20 }
 0x1c7   : > { %v3719_v14 = vpop.permute.xlu1 %1140  ;;  %v988_v26 = vrot.slane %v986_v37, 7 }
 0x1c8   : > { %v1326_v45 = vpop.permute.xlu0 %1325 }
 0x1c9   : > { %v1606_v49 = vsel %vm1596_vm14, %v1573_v27, %v1326_v45  ;;  %1343 = vrot.lane.b32.xlu1 %v3726_v2, %s3080_s18 }
 0x1ca   : > { %1246 = vrot.lane.b32.xlu0 %v3726_v2, %s3077_s27  ;;  %v1639_v63 = vsel %vm1629_vm15, %v1606_v49, %v3665_v47  ;;  %v3751_v47 = vsel %vm3268_vm7, 0, %v970_v55  ;;  %v1436_v49 = vsel %vm1415_vm9, %v3412_v60, %v3677_v58  ;;  %v2034_v55 = vsel %vm1764_vm8, %v1977_v56, 0 }
 0x1cb   : > { %v1229_v4 = vpop.permute.xlu1 %1228  ;;  %2818 = vmatpush3.bf16.msra.mxu0 %v2034_v55 }
 0x1cc   : > { %v1392_v0 = vpop.permute.xlu0 %1391  ;;  %v1509_v7 = vsel %vm1497_vm11, %v1476_v59, %v1229_v4  ;;  %v2197_v4 = vld [vmem:[%s4194_s7] sm:$0x3] }
 0x1cd   : > { %v1672_v42 = vsel %vm1662_vm2, %v1639_v63, %v1392_v0  ;;  %1200 = vrot.lane.b32.xlu1 %v1103_v40, %s3075_s25  ;;  %v1542_v53 = vsel %vm1530_vm12, %v1509_v7, %v3661_v57  ;;  %2888 = vmatprep.subr.msk.bf16.mxu1 %vm533_vm0, %v2197_v4  ;;  %v2206_v63 = vsel %vm533_vm0, %v2197_v4, 0  ;;  %v991_v7 = vor.u32 %v989_v20, %v988_v26 }
 0x1ce   : > { %2793 = vmatprep.mubr.msk.bf16.mxu1 %vm1731_vm3, %v1672_v42  ;;  %1312 = vrot.lane.b32.xlu0 %v1103_v40, %s3078_s28  ;;  %v979_v40 = vshrl.u32 %v864_v23, 16  ;;  %v1065_v42 = vrot.slane %v989_v20, 1 }
 0x1cf   : > { %v1295_v11 = vpop.permute.xlu1 %1294  ;;  %2852 = vmatpush3.bf16.msra.mxu1 %v2206_v63  ;;  %v1030_v15 = vsel %vm3268_vm7, 0, %v991_v7 }
 0x1d0   : > { %v1183_v12 = vpop.permute.xlu0 %1182  ;;  %v1575_v21 = vsel %vm1563_vm13, %v1542_v53, %v1295_v11  ;;  %v981_v34 = vrot.slane %v979_v40, 7  ;;  %v1066_v18 = vor.u32 %v1065_v42, %v986_v37 }
 0x1d1   : > { %v1608_v24 = vsel %vm1596_vm14, %v1575_v21, %v3688_v22  ;;  %1244 = vrot.lane.b32.xlu1 %v3751_v47, %s3077_s27  ;;  %v1102_v22 = vsel %vm3258_vm4, %v1060_v17, 0  ;;  %v1478_v48 = vsel %vm1464_vm10, %v1436_v49, %v1183_v12 }
 0x1d2   : > { %1341 = vrot.lane.b32.xlu0 %v3751_v47, %s3080_s18  ;;  %v1641_v57 = vsel %vm1629_vm15, %v1608_v24, %v3611_v5  ;;  %v1511_v62 = vsel %vm1497_vm11, %v1478_v48, %v3690_v6  ;;  %v1105_v1 = vsel %vm3258_vm4, %v1066_v18, 0 }
 0x1d3   : > { %v3762_v32 = vpop.permute.xlu1 %1265  ;;  %v1674_v28 = vsel %vm1662_vm2, %v1641_v57, %v3679_v61  ;;  %v982_v61 = vshll.u32 %v864_v23, 16  ;;  %v1544_v39 = vsel %vm1530_vm12, %v1511_v62, %v3613_v8  ;;  %v1439_v8 = vsel %vm1415_vm9, %v3398_v46, %v3624_v51 }
 0x1d4   : > { %v1363_v36 = vpop.permute.xlu0 %1362  ;;  %2794 = vmatmul.mubr.msk.bf16.gmra.mxu1 %vm1731_vm3, %v1674_v28  ;;  %v1577_v11 = vsel %vm1563_vm13, %v1544_v39, %v3700_v41 }
 0x1d5   : > { %1310 = vrot.lane.b32.xlu1 %v1102_v22, %s3078_s28  ;;  %v984_v27 = vor.u32 %v982_v61, %v981_v34  ;;  %v1063_v45 = vrot.slane %v982_v61, 1 }
 0x1d6   : > { %1407 = vrot.lane.b32.xlu0 %v1102_v22, %s4210_s20 }
 0x1d7   : > { %v3771_v30 = vpop.permute.xlu1 %1138  ;;  %v1029_v60 = vsel %vm3268_vm7, 0, %v984_v27  ;;  %v1064_v58 = vor.u32 %v1063_v45, %v979_v40 }
 0x1d8   : > { %v3773_v5 = vpop.permute.xlu0 %1397  ;;  %v1442_v27 = vsel %vm1415_vm9, %v3472_v52, %v3771_v30  ;;  %v1445_v30 = vsel %vm1415_vm9, %v3446_v31, %v3719_v14 }
 0x1d9   : > { %1281 = vrot.lane.b32.xlu1 %v864_v23, %s3074_s24  ;;  %v1104_v6 = vsel %vm3258_vm4, %v1064_v58, 0 }
 0x1da   : > { %1198 = vrot.lane.b32.xlu0 %v1102_v22, %s3075_s25 }
 0x1db   : > { %v1332_v35 = vpop.permute.xlu1 %1331 }
 0x1dc   : > { %v3777_v43 = vpop.permute.xlu0 %1234 }
 0x1dd   : > { %1380 = vrot.lane.b32.xlu1 %v865_v19, %s3076_s26 }
 0x1de   : > { %1378 = vrot.lane.b32.xlu0 %v864_v23, %s3076_s26  ;;  %v1480_v23 = vsel %vm1464_vm10, %v1439_v8, %v3698_v29  ;;  %s4131_s26 = scalar_lea.hbm %s4196_s9, %s2662_s16 }
 0x1df   : > { %v3790_v50 = vpop.permute.xlu1 %1188 }
 0x1e0   : > { %v1301_v59 = vpop.permute.xlu0 %1300 }
 0x1e1   : > { %1248 = vrot.lane.b32.xlu1 %v1029_v60, %s3077_s27  ;;  %s337_s27 = sand.u32 1, %s3055_s10  }
 0x1e2   : > { %1345 = vrot.lane.b32.xlu0 %v1029_v60, %s3080_s18  ;;  %s4141_s12 = scalar_lea.sflag [#allocation3], %s337_s27 }
 0x1e3   : > { %v3803_v0 = vpop.permute.xlu1 %1368 }
 0x1e4   : > { %v3805_v9 = vpop.permute.xlu0 %1271 }
 0x1e5   : > { %1314 = vrot.lane.b32.xlu1 %v1104_v6, %s3078_s28 }
 0x1e6   : > { %1411 = vrot.lane.b32.xlu0 %v1104_v6, %s4210_s20 }
 0x1e7   : > { %v3813_v53 = vpop.permute.xlu1 %1144 }
 0x1e8   : > { %v1330_v12 = vpop.permute.xlu0 %1329 }
 0x1e9   : > { %v1610_v17 = vsel %vm1596_vm14, %v1577_v11, %v1330_v12  ;;  %1347 = vrot.lane.b32.xlu1 %v1030_v15, %s3080_s18  ;;  %s3081_s18 = smov [#allocation2]  }
 0x1ea   : > { %v1643_v24 = vsel %vm1629_vm15, %v1610_v17, %v1363_v36 }
 0x1eb   : > { %v1233_v21 = vpop.permute.xlu1 %1232 }
 0x1ec   : > { %v1396_v41 = vpop.permute.xlu0 %1395  ;;  %v1513_v57 = vsel %vm1497_vm11, %v1480_v23, %v1233_v21 }
 0x1ed   : > { %v1676_v28 = vsel %vm1662_vm2, %v1643_v24, %v1396_v41  ;;  %1413 = vrot.lane.b32.xlu1 %v1105_v1, %s4210_s20  ;;  %v1546_v46 = vsel %vm1530_vm12, %v1513_v57, %v3762_v32  ;;  %s2562_s20 = sshll.u32 %s337_s27, 8 }
 0x1ee   : > { %2797 = vmatprep.mubr.msk.bf16.mxu1 %vm1731_vm3, %v1676_v28  ;;  %s4007_s15 = scalar_lea.vmem [#allocation2], %s2562_s20  ;;  %s2999_s20 = sshll.u32 %s3081_s18, 4  ;;  %s3000_s20 = int_to_ptr.vmem [resolvable:$false] %s2999_s20 }
 0x1ef   : > { %v1299_v51 = vpop.permute.xlu1 %1298  ;;  %s2482_s24 = sshll.u32 %s4007_s15, 4  ;;  %s3001_s16 = scalar_lea.vmem %s3000_s20, 8192  ;;  %s4135_s24 = int_to_ptr.vmem [resolvable:$true] %s2482_s24 }
 0x1f0   : > { %v1187_v29 = vpop.permute.xlu0 %1186  ;;  %v1579_v16 = vsel %vm1563_vm13, %v1546_v46, %v1299_v51  ;;  %s2995_s28 = scalar_lea.vmem %s4135_s24, 4096  ;;  %p3002_p1 = scmp.lt.s32.totalorder %s4135_s24, %s3000_s20 }
 0x1f1   : > { %v1612_v36 = vsel %vm1596_vm14, %v1579_v16, %v1332_v35  ;;  %v1482_v35 = vsel %vm1464_vm10, %v1442_v27, %v1187_v29  ;;  %p2996_p12 = scmp.ne.s32.totalorder %s4135_s24, %s2995_s28  ;;  %p3003_p2 = scmp.lt.s32.totalorder %s3001_s16, %s2995_s28 }
 0x1f2   : > { %v1645_v33 = vsel %vm1629_vm15, %v1612_v36, %v3706_v13  ;;  %v1515_v13 = vsel %vm1497_vm11, %v1482_v35, %v3777_v43  ;;  %v1484_v43 = vsel %vm1464_vm10, %v1445_v30, %v3790_v50 }
 0x1f3   : > { %v1270_v22 = vpop.permute.xlu1 %1269  ;;  %v1678_v54 = vsel %vm1662_vm2, %v1645_v33, %v3773_v5  ;;  %v1548_v56 = vsel %vm1530_vm12, %v1515_v13, %v3708_v25  ;;  %p2997_p13 = pnand %p2996_p12, %p3173_p4  ;;  %p3004_p3 = por %p3003_p2, %p3002_p1 }
 0x1f4   : > { %v1367_v40 = vpop.permute.xlu0 %1366  ;;  %2798 = vmatmul.mubr.msk.bf16.gmra.mxu1 %vm1731_vm3, %v1678_v54  ;;  %v1581_v55 = vsel %vm1563_vm13, %v1548_v56, %v1301_v59 }
 0x1f5   : > { %p2998_p0 = pneg %p2997_p13 }
 0x1f7   : > { %v1143_v19 = vpop.permute.xlu1 %1142  ;;  %p3005_p5 = pnand %p3004_p3, %p2998_p0 }
 0x1f8   : > { %v1402_v34 = vpop.permute.xlu0 %1401  ;;  %v1448_v15 = vsel %vm1415_vm9, %v3572_v3, %v1143_v19  ;;  %v1451_v3 = vsel %vm1415_vm9, %v3532_v44, %v3813_v53 }
 0x1fb   : > { %v1336_v61 = vpop.permute.xlu1 %1335 }
 0x1fc   : > { %v1239_v32 = vpop.permute.xlu0 %1238 }
 0x1ff   : > { %v1193_v45 = vpop.permute.xlu1 %1192 }
 0x200   : > { %v1305_v37 = vpop.permute.xlu0 %1304  ;;  %v1488_v51 = vsel %vm1464_vm10, %v1451_v3, %v1193_v45 }
 0x203   : > { %v1373_v49 = vpop.permute.xlu1 %1372 }
 0x204   : > { %v3848_v5 = vpop.permute.xlu0 %1275 }
 0x207   : > { %v3852_v48 = vpop.permute.xlu1 %1148 }
 0x208   : > { %v1334_v60 = vpop.permute.xlu0 %1333  ;;  %v1457_v30 = vsel %vm1415_vm9, %v3631_v10, %v3852_v48 }
 0x209   : > { %v1614_v52 = vsel %vm1596_vm14, %v1581_v55, %v1334_v60 }
 0x20a   : > { %v1647_v20 = vsel %vm1629_vm15, %v1614_v52, %v1367_v40 }
 0x20b   : > { %v1237_v58 = vpop.permute.xlu1 %1236 }
 0x20c   : > { %v1517_v26 = vsel %vm1497_vm11, %v1484_v43, %v1237_v58  ;;  %v1400_v25 = vpop.permute.xlu0 %1399 }
 0x20d   : > { %v1680_v62 = vsel %vm1662_vm2, %v1647_v20, %v1400_v25  ;;  %v1550_v59 = vsel %vm1530_vm12, %v1517_v26, %v1270_v22 }
 0x20e   : > { %2801 = vmatprep.mubr.msk.bf16.mxu1 %vm1731_vm3, %v1680_v62 }
 0x20f   : > { %v1303_v4 = vpop.permute.xlu1 %1302 }
 0x210   : > { %v1583_v63 = vsel %vm1563_vm13, %v1550_v59, %v1303_v4  ;;  %v1191_v6 = vpop.permute.xlu0 %1190 }
 0x211   : > { %v1616_v31 = vsel %vm1596_vm14, %v1583_v63, %v1336_v61  ;;  %v1486_v18 = vsel %vm1464_vm10, %v1448_v15, %v1191_v6 }
 0x212   : > { %v1649_v14 = vsel %vm1629_vm15, %v1616_v31, %v3803_v0  ;;  %v1519_v21 = vsel %vm1497_vm11, %v1486_v18, %v1239_v32 }
 0x213   : > { %v1274_v50 = vpop.permute.xlu1 %1273  ;;  %v1682_v39 = vsel %vm1662_vm2, %v1649_v14, %v1402_v34  ;;  %v1552_v41 = vsel %vm1530_vm12, %v1519_v21, %v3805_v9 }
 0x214   : > { %2802 = vmatmul.mubr.msk.bf16.gmra.mxu1 %vm1731_vm3, %v1682_v39  ;;  %v1371_v7 = vpop.permute.xlu0 %1370  ;;  %v1585_v28 = vsel %vm1563_vm13, %v1552_v41, %v1305_v37 }
 0x217   : > { %v1147_v42 = vpop.permute.xlu1 %1146 }
 0x218   : > { %v1406_v11 = vpop.permute.xlu0 %1405  ;;  %v1454_v45 = vsel %vm1415_vm9, %v3671_v38, %v1147_v42 }
 0x21b   : > { %v1340_v12 = vpop.permute.xlu1 %1339 }
 0x21c   : > { %v1243_v17 = vpop.permute.xlu0 %1242 }
 0x21f   : > { %v1197_v8 = vpop.permute.xlu1 %1196 }
 0x220   : > { %v1309_v23 = vpop.permute.xlu0 %1308  ;;  %v1492_v43 = vsel %vm1464_vm10, %v1457_v30, %v1197_v8 }
 0x223   : > { %v1377_v0 = vpop.permute.xlu1 %1376 }
 0x224   : > { %v1280_v24 = vpop.permute.xlu0 %1279 }
 0x227   : > { %v3878_v57 = vpop.permute.xlu1 %1152 }
 0x228   : > { %v1338_v1 = vpop.permute.xlu0 %1337 }
 0x229   : > { %v1618_v46 = vsel %vm1596_vm14, %v1585_v28, %v1338_v1 }
 0x22a   : > { %v1651_v36 = vsel %vm1629_vm15, %v1618_v46, %v1371_v7 }
 0x22b   : > { %v1241_v29 = vpop.permute.xlu1 %1240 }
 0x22c   : > { %v1521_v16 = vsel %vm1497_vm11, %v1488_v51, %v1241_v29  ;;  %v1404_v33 = vpop.permute.xlu0 %1403 }
 0x22d   : > { %v1684_v9 = vsel %vm1662_vm2, %v1651_v36, %v1404_v33  ;;  %v1554_v22 = vsel %vm1530_vm12, %v1521_v16, %v1274_v50 }
 0x22e   : > { %2805 = vmatprep.mubr.msk.bf16.mxu1 %vm1731_vm3, %v1684_v9 }
 0x22f   : > { %v1307_v54 = vpop.permute.xlu1 %1306 }
 0x230   : > { %v1587_v40 = vsel %vm1563_vm13, %v1554_v22, %v1307_v54  ;;  %v1195_v19 = vpop.permute.xlu0 %1194 }
 0x231   : > { %v1620_v44 = vsel %vm1596_vm14, %v1587_v40, %v1340_v12  ;;  %v1490_v37 = vsel %vm1464_vm10, %v1454_v45, %v1195_v19  ;;  %v2983_v45 = vld [vmem:[%s3198_s29 + $0x28] sm:$0xff]  }
 0x232   : > { %v1653_v53 = vsel %vm1629_vm15, %v1620_v44, %v1373_v49  ;;  %v1523_v55 = vsel %vm1497_vm11, %v1490_v37, %v1243_v17 }
 0x233   : > { %v1278_v34 = vpop.permute.xlu1 %1277  ;;  %v1686_v61 = vsel %vm1662_vm2, %v1653_v53, %v1406_v11  ;;  %v1556_v49 = vsel %vm1530_vm12, %v1523_v55, %v3848_v5  ;;  %v2984_v55 = vld [vmem:[%s3198_s29 + $0x30] sm:$0xff]  }
 0x234   : > { %2806 = vmatmul.mubr.msk.bf16.gmra.mxu1 %vm1731_vm3, %v1686_v61  ;;  %v1375_v32 = vpop.permute.xlu0 %1374  ;;  %v1589_v26 = vsel %vm1563_vm13, %v1556_v49, %v1309_v23  ;;  %v2979_v61 = vld [vmem:[%s3198_s29 + $0x8] sm:$0xff]   ;;  %v2985_v49 = vld [vmem:[%s3198_s29 + $0x38] sm:$0xff]  }
 0x237   : > { %v1151_v27 = vpop.permute.xlu1 %1150 }
 0x238   : > { %v1410_v35 = vpop.permute.xlu0 %1409  ;;  %v1460_v50 = vsel %vm1415_vm9, %v3751_v47, %v1151_v27  ;;  %v1463_v47 = vsel %vm1415_vm9, %v3726_v2, %v3878_v57  ;;  %v2981_v27 = vld [vmem:[%s3198_s29 + $0x18] sm:$0xff]  }
 0x23b   : > { %v1344_v13 = vpop.permute.xlu1 %1343 }
 0x23c   : > { %v1247_v56 = vpop.permute.xlu0 %1246 }
 0x23f   : > { %v1201_v60 = vpop.permute.xlu1 %1200 }
 0x240   : > { %v1313_v52 = vpop.permute.xlu0 %1312 }
 0x243   : > { %v1245_v58 = vpop.permute.xlu1 %1244 }
 0x244   : > { %v1525_v38 = vsel %vm1497_vm11, %v1492_v43, %v1245_v58  ;;  %v1342_v20 = vpop.permute.xlu0 %1341 }
 0x245   : > { %v1622_v25 = vsel %vm1596_vm14, %v1589_v26, %v1342_v20  ;;  %v1558_v62 = vsel %vm1530_vm12, %v1525_v38, %v1278_v34  ;;  %v2986_v20 = vld [vmem:[%s3198_s29 + $0x40] sm:$0xff]  }
 0x246   : > { %v1655_v5 = vsel %vm1629_vm15, %v1622_v25, %v1375_v32  ;;  %v2980_v32 = vld [vmem:[%s3198_s29 + $0x10] sm:$0xff]   ;;  %v2987_v25 = vld [vmem:[%s3198_s29 + $0x48] sm:$0xff]  }
 0x247   : > { %v1311_v59 = vpop.permute.xlu1 %1310 }
 0x248   : > { %v1591_v4 = vsel %vm1563_vm13, %v1558_v62, %v1311_v59  ;;  %v1408_v63 = vpop.permute.xlu0 %1407  ;;  %v2988_v62 = vld [vmem:[%s3198_s29 + $0x50] sm:$0xff]   ;;  %v2989_v59 = vld [vmem:[%s3198_s29 + $0x58] sm:$0xff]  }
 0x249   : > { %v1624_v10 = vsel %vm1596_vm14, %v1591_v4, %v1344_v13  ;;  %v1688_v48 = vsel %vm1662_vm2, %v1655_v5, %v1408_v63  ;;  %v2990_v4 = vld [vmem:[%s3198_s29 + $0x60] sm:$0xff]   ;;  %v2991_v5 = vld [vmem:[%s3198_s29 + $0x68] sm:$0xff]  }
 0x24a   : > { %2809 = vmatprep.mubr.msk.bf16.mxu1 %vm1731_vm3, %v1688_v48  ;;  %v1657_v6 = vsel %vm1629_vm15, %v1624_v10, %v1377_v0  ;;  %v1496_v0 = vsel %vm1464_vm10, %v1463_v47, %v1201_v60 }
 0x24b   : > { %v1282_v31 = vpop.permute.xlu1 %1281  ;;  %v1690_v14 = vsel %vm1662_vm2, %v1657_v6, %v1410_v35  ;;  %v2982_v35 = vld [vmem:[%s3198_s29 + $0x20] sm:$0xff]   ;;  %v2992_v6 = vld [vmem:[%s3198_s29 + $0x70] sm:$0xff]  }
 0x24c   : > { %v1199_v39 = vpop.permute.xlu0 %1198  ;;  %2810 = vmatmul.mubr.msk.bf16.gmra.mxu1 %vm1731_vm3, %v1690_v14 }
 0x24d   : > { %v1494_v7 = vsel %vm1464_vm10, %v1460_v50, %v1199_v39  ;;  %v2993_v50 = vld [vmem:[%s3198_s29 + $0x78] sm:$0xff]  }
 0x24e   : > { %v1527_v42 = vsel %vm1497_vm11, %v1494_v7, %v1247_v56 }
 0x24f   : > { %v1381_v11 = vpop.permute.xlu1 %1380  ;;  %v1560_v17 = vsel %vm1530_vm12, %v1527_v42, %v1280_v24 }
 0x250   : > { %v1379_v12 = vpop.permute.xlu0 %1378  ;;  %v1593_v8 = vsel %vm1563_vm13, %v1560_v17, %v1313_v52  ;;  %v2994_v17 = vld [vmem:[%s3198_s29 + $0x80] sm:$0xff]  }
 0x253   : > { %v1249_v15 = vpop.permute.xlu1 %1248 }
 0x254   : > { %v2787_v18 = vpop.f32.mrf.mxu1  ;;  %v1346_v23 = vpop.permute.xlu0 %1345  ;;  %v1529_v28 = vsel %vm1497_vm11, %v1496_v0, %v1249_v15 }
 0x255   : > { %v1626_v21 = vsel %vm1596_vm14, %v1593_v8, %v1346_v23  ;;  %v1562_v29 = vsel %vm1530_vm12, %v1529_v28, %v1282_v31  ;;  %v1931_v22 = vmax.f32 %v2787_v18, 0.0 }
 0x256   : > { %v1802_v41 = vpop.f32.mrf.mxu1  ;;  %v1659_v24 = vsel %vm1629_vm15, %v1626_v21, %v1379_v12 }
 0x257   : > { %v1315_v1 = vpop.permute.xlu1 %1314  ;;  %v1929_v2 = vmax.f32 %v1802_v41, 0.0 }
 0x258   : > { %v2788_v46 = vpop.f32.mrf.mxu1  ;;  %v1412_v3 = vpop.permute.xlu0 %1411  ;;  %v1595_v57 = vsel %vm1563_vm13, %v1562_v29, %v1315_v1 }
 0x259   : > { %v1692_v51 = vsel %vm1662_vm2, %v1659_v24, %v1412_v3  ;;  %v1932_v16 = vmax.f32 %v2788_v46, 0.0 }
 0x25a   : > { %v1805_v36 = vpop.f32.mrf.mxu1  ;;  %2813 = vmatprep.mubr.msk.bf16.mxu1 %vm1731_vm3, %v1692_v51 }
 0x25b   : > { %v1930_v33 = vmax.f32 %v1805_v36, 0.0  ;;  %v1348_v9 = vpop.permute.xlu1 %1347  ;;  %v1962_v19 = vpack.c.bf16 %v1932_v16, %v1931_v22 }
 0x25c   : > { %v1628_v54 = vsel %vm1596_vm14, %v1595_v57, %v1348_v9 }
 0x25d   : > { %v1961_v40 = vpack.c.bf16 %v1930_v33, %v1929_v2  ;;  %v1661_v44 = vsel %vm1629_vm15, %v1628_v54, %v1381_v11 }
 0x25f   : > { %2819 = vmatprep.mubr.msk.bf16.mxu0 %vm1415_vm9, %v1961_v40  ;;  %v1414_v53 = vpop.permute.xlu1 %1413 }
 0x260   : > { %v1694_v34 = vsel %vm1662_vm2, %v1661_v44, %v1414_v53  ;;  %2820 = vmatmul.mubr.msk.bf16.vlgmr.msra.gmra.mxu0 %vm1415_vm9, %v1962_v19 }
 0x261   : > { %2814 = vmatmul.mubr.msk.bf16.gmra.mxu1 %vm1731_vm3, %v1694_v34 }
 0x262   : > { %2853 = vmatprep.mubr.msk.bf16.mxu1 %vm478_vm1, %v2979_v61 }
 0x269   : > { %2854 = vmatmul.mubr.msk.bf16.vlgmr.msra.gmra.mxu1 %vm478_vm1, %v2980_v32 }
 0x26a   : > { %2857 = vmatprep.mubr.msk.bf16.mxu1 %vm478_vm1, %v2981_v27 }
 0x271   : > { %2858 = vmatmul.mubr.msk.bf16.gmra.mxu1 %vm478_vm1, %v2982_v35 }
 0x272   : > { %2861 = vmatprep.mubr.msk.bf16.mxu1 %vm478_vm1, %v2983_v45 }
 0x274   : > { %v2791_v37 = vpop.f32.mrf.mxu1 }
 0x275   : > { %v1935_v58 = vmax.f32 %v2791_v37, 0.0 }
 0x276   : > { %v1818_v13 = vpop.f32.mrf.mxu1 }
 0x277   : > { %v1933_v30 = vmax.f32 %v1818_v13, 0.0 }
 0x278   : > { %v2792_v56 = vpop.f32.mrf.mxu1 }
 0x279   : > { %2862 = vmatmul.mubr.msk.bf16.gmra.mxu1 %vm478_vm1, %v2984_v55  ;;  %v1936_v60 = vmax.f32 %v2792_v56, 0.0 }
 0x27a   : > { %v1821_v52 = vpop.f32.mrf.mxu1  ;;  %2865 = vmatprep.mubr.msk.bf16.mxu1 %vm478_vm1, %v2985_v49 }
 0x27b   : > { %v1934_v43 = vmax.f32 %v1821_v52, 0.0  ;;  %v1964_v26 = vpack.c.bf16 %v1936_v60, %v1935_v58 }
 0x27d   : > { %v1963_v38 = vpack.c.bf16 %v1934_v43, %v1933_v30 }
 0x27f   : > { %2823 = vmatprep.mubr.msk.bf16.mxu0 %vm1415_vm9, %v1963_v38 }
 0x280   : > { %2824 = vmatmul.mubr.msk.bf16.gmra.mxu0 %vm1415_vm9, %v1964_v26 }
 0x281   : > { %2866 = vmatmul.mubr.msk.bf16.gmra.mxu1 %vm478_vm1, %v2986_v20  ;;  %v3988_v20 = vld [vmem:[%s4193_s6] ss:$0 sm:$0xff] }
 0x282   : > { %2869 = vmatprep.mubr.msk.bf16.mxu1 %vm478_vm1, %v2987_v25 }
 0x289   : > { %2870 = vmatmul.mubr.msk.bf16.gmra.mxu1 %vm478_vm1, %v2988_v62 }
 0x28a   : > { %2873 = vmatprep.mubr.msk.bf16.mxu1 %vm478_vm1, %v2989_v59  ;;  %v3994_v59 = vld [vmem:[%s4195_s8] ss:$0 sm:$0xff] }
 0x291   : > { %2874 = vmatmul.mubr.msk.bf16.gmra.mxu1 %vm478_vm1, %v2990_v4 }
 0x292   : > { %2877 = vmatprep.mubr.msk.bf16.mxu1 %vm478_vm1, %v2991_v5 }
 0x294   : > { %v2795_v63 = vpop.f32.mrf.mxu1 }
 0x295   : > { %v1939_v42 = vmax.f32 %v2795_v63, 0.0 }
 0x296   : > { %v1834_v10 = vpop.f32.mrf.mxu1 }
 0x297   : > { %v1937_v39 = vmax.f32 %v1834_v10, 0.0 }
 0x298   : > { %v2796_v48 = vpop.f32.mrf.mxu1 }
 0x299   : > { %2878 = vmatmul.mubr.msk.bf16.gmra.mxu1 %vm478_vm1, %v2992_v6  ;;  %v1940_v31 = vmax.f32 %v2796_v48, 0.0 }
 0x29a   : > { %v1837_v14 = vpop.f32.mrf.mxu1  ;;  %2881 = vmatprep.mubr.msk.bf16.mxu1 %vm478_vm1, %v2993_v50 }
 0x29b   : > { %v1938_v7 = vmax.f32 %v1837_v14, 0.0  ;;  %v1966_v12 = vpack.c.bf16 %v1940_v31, %v1939_v42 }
 0x29d   : > { %v1965_v11 = vpack.c.bf16 %v1938_v7, %v1937_v39 }
 0x29f   : > { %2827 = vmatprep.mubr.msk.bf16.mxu0 %vm1415_vm9, %v1965_v11 }
 0x2a0   : > { %2828 = vmatmul.mubr.msk.bf16.gmra.mxu0 %vm1415_vm9, %v1966_v12 }
 0x2a1   : > { %2882 = vmatmul.mubr.msk.bf16.gmra.mxu1 %vm478_vm1, %v2994_v17 }
 0x2b4   : > { %v2799_v15 = vpop.f32.mrf.mxu1 }
 0x2b5   : > { %v1943_v41 = vmax.f32 %v2799_v15, 0.0 }
 0x2b6   : > { %v1850_v18 = vpop.f32.mrf.mxu1 }
 0x2b7   : > { %v1941_v21 = vmax.f32 %v1850_v18, 0.0 }
 0x2b8   : > { %v2800_v8 = vpop.f32.mrf.mxu1 }
 0x2b9   : > { %v1944_v23 = vmax.f32 %v2800_v8, 0.0 }
 0x2ba   : > { %v1853_v47 = vpop.f32.mrf.mxu1 }
 0x2bb   : > { %v1942_v0 = vmax.f32 %v1853_v47, 0.0  ;;  %v1968_v1 = vpack.c.bf16 %v1944_v23, %v1943_v41 }
 0x2bd   : > { %v1967_v28 = vpack.c.bf16 %v1942_v0, %v1941_v21 }
 0x2bf   : > { %2831 = vmatprep.mubr.msk.bf16.mxu0 %vm1415_vm9, %v1967_v28 }
 0x2c0   : > { %2832 = vmatmul.mubr.msk.bf16.gmra.mxu0 %vm1415_vm9, %v1968_v1 }
 0x2d4   : > { %v2803_v46 = vpop.f32.mrf.mxu1 }
 0x2d5   : > { %v1947_v2 = vmax.f32 %v2803_v46, 0.0 }
 0x2d6   : > { %v1866_v24 = vpop.f32.mrf.mxu1 }
 0x2d7   : > { %v1945_v16 = vmax.f32 %v1866_v24, 0.0 }
 0x2d8   : > { %v2804_v3 = vpop.f32.mrf.mxu1 }
 0x2d9   : > { %v1948_v51 = vmax.f32 %v2804_v3, 0.0 }
 0x2da   : > { %v1869_v29 = vpop.f32.mrf.mxu1 }
 0x2db   : > { %v1946_v36 = vmax.f32 %v1869_v29, 0.0  ;;  %v1970_v33 = vpack.c.bf16 %v1948_v51, %v1947_v2 }
 0x2dd   : > { %v1969_v57 = vpack.c.bf16 %v1946_v36, %v1945_v16 }
 0x2df   : > { %2835 = vmatprep.mubr.msk.bf16.mxu0 %vm1415_vm9, %v1969_v57 }
 0x2e0   : > { %2836 = vmatmul.mubr.msk.bf16.gmra.mxu0 %vm1415_vm9, %v1970_v33 }
 0x2f4   : > { %v2807_v9 = vpop.f32.mrf.mxu1 }
 0x2f5   : > { %v1951_v34 = vmax.f32 %v2807_v9, 0.0 }
 0x2f6   : > { %v1882_v22 = vpop.f32.mrf.mxu1 }
 0x2f7   : > { %v1949_v44 = vmax.f32 %v1882_v22, 0.0 }
 0x2f8   : > { %v2808_v54 = vpop.f32.mrf.mxu1 }
 0x2f9   : > { %v1952_v40 = vmax.f32 %v2808_v54, 0.0 }
 0x2fa   : > { %v1885_v19 = vpop.f32.mrf.mxu1 }
 0x2fb   : > { %v1950_v53 = vmax.f32 %v1885_v19, 0.0  ;;  %v1972_v32 = vpack.c.bf16 %v1952_v40, %v1951_v34 }
 0x2fd   : > { %v1971_v61 = vpack.c.bf16 %v1950_v53, %v1949_v44 }
 0x2ff   : > { %2839 = vmatprep.mubr.msk.bf16.mxu0 %vm1415_vm9, %v1971_v61 }
 0x300   : > { %2840 = vmatmul.mubr.msk.bf16.gmra.mxu0 %vm1415_vm9, %v1972_v32 }
 0x30c   : > { %v2811_v27 = vpop.f32.mrf.mxu1 }
 0x30d   : > { %v1955_v60 = vmax.f32 %v2811_v27, 0.0 }
 0x30e   : > { %v1898_v35 = vpop.f32.mrf.mxu1 }
 0x30f   : > { %v1953_v56 = vmax.f32 %v1898_v35, 0.0 }
 0x310   : > { %v2812_v45 = vpop.f32.mrf.mxu1 }
 0x311   : > { %v1956_v37 = vmax.f32 %v2812_v45, 0.0 }
 0x312   : > { %v1901_v13 = vpop.f32.mrf.mxu1 }
 0x313   : > { %v1954_v55 = vmax.f32 %v1901_v13, 0.0  ;;  %v1974_v49 = vpack.c.bf16 %v1956_v37, %v1955_v60 }
 0x315   : > { %v1973_v52 = vpack.c.bf16 %v1954_v55, %v1953_v56 }
 0x317   : > { %2843 = vmatprep.mubr.msk.bf16.mxu0 %vm1415_vm9, %v1973_v52 }
 0x318   : > { %2844 = vmatmul.mubr.msk.bf16.gmra.mxu0 %vm1415_vm9, %v1974_v49 }
 0x320   : > { %v2821_v30 = vpop.f32.mrf.mxu0 }
 0x321   : > { %v2815_v43 = vpop.f32.mrf.mxu1  ;;  %v2079_v6 = vadd.f32 %v2821_v30, %v3988_v20 }
 0x322   : > { %v2070_v38 = vpop.f32.mrf.mxu0  ;;  %v1959_v63 = vmax.f32 %v2815_v43, 0.0 }
 0x323   : > { %v1914_v58 = vpop.f32.mrf.mxu1  ;;  %v2071_v7 = vadd.f32 %v3988_v20, %v2070_v38 }
 0x324   : > { %v1957_v4 = vmax.f32 %v1914_v58, 0.0  ;;  %v2822_v10 = vpop.f32.mrf.mxu0 }
 0x325   : > { %v2816_v26 = vpop.f32.mrf.mxu1  ;;  %v2082_v15 = vadd.f32 %v2822_v10, %v3988_v20 }
 0x326   : > { %v1960_v25 = vmax.f32 %v2816_v26, 0.0  ;;  %v2073_v12 = vpop.f32.mrf.mxu0 }
 0x327   : > { %v1917_v62 = vpop.f32.mrf.mxu1  ;;  %v2074_v21 = vadd.f32 %v3988_v20, %v2073_v12 }
 0x328   : > { %v1958_v5 = vmax.f32 %v1917_v62, 0.0  ;;  %v1976_v50 = vpack.c.bf16 %v1960_v25, %v1959_v63 }
 0x329   : > { %v2855_v48 = vpop.f32.mrf.mxu1 }
 0x32a   : > { %v1975_v31 = vpack.c.bf16 %v1958_v5, %v1957_v4  ;;  %v2251_v14 = vadd.f32 %v2855_v48, %v3994_v59 }
 0x32b   : > { %v2242_v39 = vpop.f32.mrf.mxu1 }
 0x32c   : > { %v2371_v42 = vadd.f32 %v2251_v14, %v2079_v6  ;;  %v2243_v11 = vadd.f32 %v3994_v59, %v2242_v39  ;;  %2847 = vmatprep.mubr.msk.bf16.mxu0 %vm1415_vm9, %v1975_v31 }
 0x32d   : > { %2848 = vmatmul.mubr.msk.bf16.gmra.mxu0 %vm1415_vm9, %v1976_v50  ;;  %v2856_v17 = vpop.f32.mrf.mxu1 }
 0x32e   : > { %v2403_v18 = vmax.f32 %v2371_v42, 0.0  ;;  %v2369_v8 = vadd.f32 %v2243_v11, %v2071_v7  ;;  %v2254_v23 = vadd.f32 %v2856_v17, %v3994_v59 }
 0x32f   : > { %v2245_v47 = vpop.f32.mrf.mxu1 }
 0x330   : > { %2435 = vst.msk [vmem:[%s4007_s15 + $0x10] sm:$0xff] %vm1464_vm10, %v2403_v18  ;;  %v2401_v0 = vmax.f32 %v2369_v8, 0.0  ;;  %v2372_v41 = vadd.f32 %v2254_v23, %v2082_v15  ;;  %v2246_v28 = vadd.f32 %v3994_v59, %v2245_v47 }
 0x331   : > { %v2859_v3 = vpop.f32.mrf.mxu1 }
 0x332   : > { %2433 = vst.msk [vmem:[%s4007_s15] sm:$0xff] %vm1464_vm10, %v2401_v0  ;;  %v2404_v1 = vmax.f32 %v2372_v41, 0.0  ;;  %v2370_v46 = vadd.f32 %v2246_v28, %v2074_v21  ;;  %v2267_v16 = vadd.f32 %v2859_v3, %v3994_v59 }
 0x333   : > { %v2258_v51 = vpop.f32.mrf.mxu1 }
 0x334   : > { %2436 = vst.msk [vmem:[%s4007_s15 + $0x18] sm:$0xff] %vm1464_vm10, %v2404_v1  ;;  %v2402_v24 = vmax.f32 %v2370_v46, 0.0  ;;  %v2259_v57 = vadd.f32 %v3994_v59, %v2258_v51 }
 0x335   : > { %v2860_v29 = vpop.f32.mrf.mxu1 }
 0x336   : > { %2434 = vst.msk [vmem:[%s4007_s15 + $0x8] sm:$0xff] %vm1464_vm10, %v2402_v24  ;;  %v2270_v40 = vadd.f32 %v2860_v29, %v3994_v59 }
 0x337   : > { %v2261_v9 = vpop.f32.mrf.mxu1 }
 0x338   : > { %v2262_v61 = vadd.f32 %v3994_v59, %v2261_v9 }
 0x339   : > { %v2863_v55 = vpop.f32.mrf.mxu1 }
 0x33a   : > { %v2283_v49 = vadd.f32 %v2863_v55, %v3994_v59 }
 0x33b   : > { %v2274_v60 = vpop.f32.mrf.mxu1 }
 0x33c   : > { %v2275_v58 = vadd.f32 %v3994_v59, %v2274_v60 }
 0x33d   : > { %v2864_v52 = vpop.f32.mrf.mxu1 }
 0x33e   : > { %v2286_v4 = vadd.f32 %v2864_v52, %v3994_v59 }
 0x33f   : > { %v2277_v26 = vpop.f32.mrf.mxu1 }
 0x340   : > { %v2825_v36 = vpop.f32.mrf.mxu0  ;;  %v2278_v6 = vadd.f32 %v3994_v59, %v2277_v26 }
 0x341   : > { %v2095_v2 = vadd.f32 %v2825_v36, %v3988_v20  ;;  %v2867_v12 = vpop.f32.mrf.mxu1 }
 0x342   : > { %v2086_v33 = vpop.f32.mrf.mxu0  ;;  %v2299_v18 = vadd.f32 %v2867_v12, %v3994_v59 }
 0x343   : > { %v2375_v22 = vadd.f32 %v2267_v16, %v2095_v2  ;;  %v2087_v54 = vadd.f32 %v3988_v20, %v2086_v33  ;;  %v2290_v17 = vpop.f32.mrf.mxu1 }
 0x344   : > { %v2826_v19 = vpop.f32.mrf.mxu0  ;;  %v2291_v47 = vadd.f32 %v3994_v59, %v2290_v17 }
 0x345   : > { %v2407_v44 = vmax.f32 %v2375_v22, 0.0  ;;  %v2373_v53 = vadd.f32 %v2259_v57, %v2087_v54  ;;  %v2098_v34 = vadd.f32 %v2826_v19, %v3988_v20  ;;  %v2868_v15 = vpop.f32.mrf.mxu1 }
 0x346   : > { %v2089_v32 = vpop.f32.mrf.mxu0  ;;  %v2302_v1 = vadd.f32 %v2868_v15, %v3994_v59 }
 0x347   : > { %2439 = vst.msk [vmem:[%s4007_s15 + $0x30] sm:$0xff] %vm1464_vm10, %v2407_v44  ;;  %v2405_v27 = vmax.f32 %v2373_v53, 0.0  ;;  %v2376_v35 = vadd.f32 %v2270_v40, %v2098_v34  ;;  %v2090_v45 = vadd.f32 %v3988_v20, %v2089_v32  ;;  %v2293_v0 = vpop.f32.mrf.mxu1 }
 0x348   : > { %v2294_v29 = vadd.f32 %v3994_v59, %v2293_v0 }
 0x349   : > { %2437 = vst.msk [vmem:[%s4007_s15 + $0x20] sm:$0xff] %vm1464_vm10, %v2405_v27  ;;  %v2408_v37 = vmax.f32 %v2376_v35, 0.0  ;;  %v2374_v13 = vadd.f32 %v2262_v61, %v2090_v45  ;;  %v2871_v54 = vpop.f32.mrf.mxu1 }
 0x34a   : > { %v2315_v44 = vadd.f32 %v2871_v54, %v3994_v59 }
 0x34b   : > { %2440 = vst.msk [vmem:[%s4007_s15 + $0x38] sm:$0xff] %vm1464_vm10, %v2408_v37  ;;  %v2406_v56 = vmax.f32 %v2374_v13, 0.0  ;;  %v2306_v40 = vpop.f32.mrf.mxu1 }
 0x34c   : > { %v2307_v61 = vadd.f32 %v3994_v59, %v2306_v40 }
 0x34d   : > { %2438 = vst.msk [vmem:[%s4007_s15 + $0x28] sm:$0xff] %vm1464_vm10, %v2406_v56  ;;  %v2872_v19 = vpop.f32.mrf.mxu1 }
 0x34e   : > { %v2318_v37 = vadd.f32 %v2872_v19, %v3994_v59 }
 0x34f   : > { %v2309_v27 = vpop.f32.mrf.mxu1 }
 0x350   : > { %v2310_v52 = vadd.f32 %v3994_v59, %v2309_v27 }
 0x360   : > { %v2829_v30 = vpop.f32.mrf.mxu0 }
 0x361   : > { %v2111_v43 = vadd.f32 %v2829_v30, %v3988_v20 }
 0x362   : > { %v2102_v38 = vpop.f32.mrf.mxu0 }
 0x363   : > { %v2379_v25 = vadd.f32 %v2283_v49, %v2111_v43  ;;  %v2103_v62 = vadd.f32 %v3988_v20, %v2102_v38 }
 0x364   : > { %v2830_v5 = vpop.f32.mrf.mxu0 }
 0x365   : > { %v2411_v63 = vmax.f32 %v2379_v25, 0.0  ;;  %v2377_v10 = vadd.f32 %v2275_v58, %v2103_v62  ;;  %v2114_v48 = vadd.f32 %v2830_v5, %v3988_v20  ;;  %v2875_v62 = vpop.f32.mrf.mxu1 }
 0x366   : > { %v2105_v31 = vpop.f32.mrf.mxu0 }
 0x367   : > { %2443 = vst.msk [vmem:[%s4007_s15 + $0x50] sm:$0xff] %vm1464_vm10, %v2411_v63  ;;  %v2409_v14 = vmax.f32 %v2377_v10, 0.0  ;;  %v2380_v50 = vadd.f32 %v2286_v4, %v2114_v48  ;;  %v2106_v39 = vadd.f32 %v3988_v20, %v2105_v31  ;;  %v2322_v4 = vpop.f32.mrf.mxu1  ;;  %v2331_v63 = vadd.f32 %v2875_v62, %v3994_v59 }
 0x369   : > { %2441 = vst.msk [vmem:[%s4007_s15 + $0x40] sm:$0xff] %vm1464_vm10, %v2409_v14  ;;  %v2412_v7 = vmax.f32 %v2380_v50, 0.0  ;;  %v2378_v42 = vadd.f32 %v2278_v6, %v2106_v39  ;;  %v2876_v5 = vpop.f32.mrf.mxu1  ;;  %v2323_v6 = vadd.f32 %v3994_v59, %v2322_v4 }
 0x36b   : > { %2444 = vst.msk [vmem:[%s4007_s15 + $0x58] sm:$0xff] %vm1464_vm10, %v2412_v7  ;;  %v2410_v11 = vmax.f32 %v2378_v42, 0.0  ;;  %v2325_v14 = vpop.f32.mrf.mxu1  ;;  %v2334_v7 = vadd.f32 %v2876_v5, %v3994_v59 }
 0x36c   : > { %v2326_v15 = vadd.f32 %v3994_v59, %v2325_v14 }
 0x36d   : > { %2442 = vst.msk [vmem:[%s4007_s15 + $0x48] sm:$0xff] %vm1464_vm10, %v2410_v11 }
 0x380   : > { %v2833_v8 = vpop.f32.mrf.mxu0 }
 0x381   : > { %v2127_v23 = vadd.f32 %v2833_v8, %v3988_v20 }
 0x382   : > { %v2118_v21 = vpop.f32.mrf.mxu0 }
 0x383   : > { %v2383_v41 = vadd.f32 %v2299_v18, %v2127_v23  ;;  %v2119_v28 = vadd.f32 %v3988_v20, %v2118_v21 }
 0x384   : > { %v2834_v46 = vpop.f32.mrf.mxu0 }
 0x385   : > { %v2415_v24 = vmax.f32 %v2383_v41, 0.0  ;;  %v2381_v3 = vadd.f32 %v2291_v47, %v2119_v28  ;;  %v2130_v51 = vadd.f32 %v2834_v46, %v3988_v20  ;;  %v2879_v28 = vpop.f32.mrf.mxu1 }
 0x386   : > { %v2121_v16 = vpop.f32.mrf.mxu0 }
 0x387   : > { %2447 = vst.msk [vmem:[%s4007_s15 + $0x70] sm:$0xff] %vm1464_vm10, %v2415_v24  ;;  %v2413_v36 = vmax.f32 %v2381_v3, 0.0  ;;  %v2384_v2 = vadd.f32 %v2302_v1, %v2130_v51  ;;  %v2122_v57 = vadd.f32 %v3988_v20, %v2121_v16  ;;  %v2338_v1 = vpop.f32.mrf.mxu1  ;;  %v2347_v24 = vadd.f32 %v2879_v28, %v3994_v59 }
 0x389   : > { %2445 = vst.msk [vmem:[%s4007_s15 + $0x60] sm:$0xff] %vm1464_vm10, %v2413_v36  ;;  %v2416_v33 = vmax.f32 %v2384_v2, 0.0  ;;  %v2382_v9 = vadd.f32 %v2294_v29, %v2122_v57  ;;  %v2880_v46 = vpop.f32.mrf.mxu1  ;;  %v2339_v29 = vadd.f32 %v3994_v59, %v2338_v1 }
 0x38b   : > { %2448 = vst.msk [vmem:[%s4007_s15 + $0x78] sm:$0xff] %vm1464_vm10, %v2416_v33  ;;  %v2414_v22 = vmax.f32 %v2382_v9, 0.0  ;;  %v2341_v36 = vpop.f32.mrf.mxu1  ;;  %v2350_v33 = vadd.f32 %v2880_v46, %v3994_v59 }
 0x38c   : > { %v2342_v19 = vadd.f32 %v3994_v59, %v2341_v36 }
 0x38d   : > { %2446 = vst.msk [vmem:[%s4007_s15 + $0x68] sm:$0xff] %vm1464_vm10, %v2414_v22 }
 0x3a0   : > { %v2837_v53 = vpop.f32.mrf.mxu0 }
 0x3a1   : > { %v2143_v34 = vadd.f32 %v2837_v53, %v3988_v20 }
 0x3a2   : > { %v2134_v32 = vpop.f32.mrf.mxu0 }
 0x3a3   : > { %v2387_v35 = vadd.f32 %v2315_v44, %v2143_v34  ;;  %v2135_v45 = vadd.f32 %v3988_v20, %v2134_v32 }
 0x3a4   : > { %v2838_v13 = vpop.f32.mrf.mxu0 }
 0x3a5   : > { %v2419_v56 = vmax.f32 %v2387_v35, 0.0  ;;  %v2385_v55 = vadd.f32 %v2307_v61, %v2135_v45  ;;  %v2146_v60 = vadd.f32 %v2838_v13, %v3988_v20  ;;  %v2883_v45 = vpop.f32.mrf.mxu1 }
 0x3a6   : > { %v2137_v49 = vpop.f32.mrf.mxu0  ;;  %v2363_v13 = vadd.f32 %v2883_v45, %v3994_v59 }
 0x3a7   : > { %2451 = vst.msk [vmem:[%s4007_s15 + $0x90] sm:$0xff] %vm1464_vm10, %v2419_v56  ;;  %v2417_v30 = vmax.f32 %v2385_v55, 0.0  ;;  %v2388_v43 = vadd.f32 %v2318_v37, %v2146_v60  ;;  %v2138_v58 = vadd.f32 %v3988_v20, %v2137_v49  ;;  %v2354_v37 = vpop.f32.mrf.mxu1 }
 0x3a8   : > { %v2355_v49 = vadd.f32 %v3994_v59, %v2354_v37 }
 0x3a9   : > { %2449 = vst.msk [vmem:[%s4007_s15 + $0x80] sm:$0xff] %vm1464_vm10, %v2417_v30  ;;  %v2420_v38 = vmax.f32 %v2388_v43, 0.0  ;;  %v2386_v26 = vadd.f32 %v2310_v52, %v2138_v58  ;;  %v2884_v56 = vpop.f32.mrf.mxu1 }
 0x3ab   : > { %2452 = vst.msk [vmem:[%s4007_s15 + $0x98] sm:$0xff] %vm1464_vm10, %v2420_v38  ;;  %v2418_v25 = vmax.f32 %v2386_v26, 0.0  ;;  %v2357_v58 = vpop.f32.mrf.mxu1  ;;  %v2366_v26 = vadd.f32 %v2884_v56, %v3994_v59 }
 0x3ad   : > { %2450 = vst.msk [vmem:[%s4007_s15 + $0x88] sm:$0xff] %vm1464_vm10, %v2418_v25 }
 0x3c0   : > { %v2841_v10 = vpop.f32.mrf.mxu0 }
 0x3c1   : > { %v2159_v48 = vadd.f32 %v2841_v10, %v3988_v20 }
 0x3c2   : > { %v2150_v31 = vpop.f32.mrf.mxu0 }
 0x3c3   : > { %v2391_v50 = vadd.f32 %v2331_v63, %v2159_v48  ;;  %v2151_v39 = vadd.f32 %v3988_v20, %v2150_v31  ;;  %v2358_v63 = vadd.f32 %v3994_v59, %v2357_v58 }
 0x3c4   : > { %v2842_v42 = vpop.f32.mrf.mxu0 }
 0x3c5   : > { %v2423_v11 = vmax.f32 %v2391_v50, 0.0  ;;  %v2389_v12 = vadd.f32 %v2323_v6, %v2151_v39  ;;  %v2162_v17 = vadd.f32 %v2842_v42, %v3988_v20 }
 0x3c6   : > { %v2153_v18 = vpop.f32.mrf.mxu0 }
 0x3c7   : > { %2455 = vst.msk [vmem:[%s4007_s15 + $0xb0] sm:$0xff] %vm1464_vm10, %v2423_v11  ;;  %v2421_v8 = vmax.f32 %v2389_v12, 0.0  ;;  %v2392_v23 = vadd.f32 %v2334_v7, %v2162_v17  ;;  %v2154_v47 = vadd.f32 %v3988_v20, %v2153_v18 }
 0x3c9   : > { %2453 = vst.msk [vmem:[%s4007_s15 + $0xa0] sm:$0xff] %vm1464_vm10, %v2421_v8  ;;  %v2424_v21 = vmax.f32 %v2392_v23, 0.0  ;;  %v2390_v0 = vadd.f32 %v2326_v15, %v2154_v47 }
 0x3cb   : > { %2456 = vst.msk [vmem:[%s4007_s15 + $0xb8] sm:$0xff] %vm1464_vm10, %v2424_v21  ;;  %v2422_v41 = vmax.f32 %v2390_v0, 0.0 }
 0x3cd   : > { %2454 = vst.msk [vmem:[%s4007_s15 + $0xa8] sm:$0xff] %vm1464_vm10, %v2422_v41 }
 0x3d8   : > { %v2845_v3 = vpop.f32.mrf.mxu0 }
 0x3d9   : > { %v2175_v51 = vadd.f32 %v2845_v3, %v3988_v20 }
 0x3da   : > { %v2166_v16 = vpop.f32.mrf.mxu0 }
 0x3db   : > { %v2395_v2 = vadd.f32 %v2347_v24, %v2175_v51  ;;  %v2167_v57 = vadd.f32 %v3988_v20, %v2166_v16 }
 0x3dc   : > { %v2846_v9 = vpop.f32.mrf.mxu0 }
 0x3dd   : > { %v2427_v22 = vmax.f32 %v2395_v2, 0.0  ;;  %v2393_v54 = vadd.f32 %v2339_v29, %v2167_v57  ;;  %v2178_v40 = vadd.f32 %v2846_v9, %v3988_v20 }
 0x3de   : > { %v2169_v44 = vpop.f32.mrf.mxu0 }
 0x3df   : > { %2459 = vst.msk [vmem:[%s4007_s15 + $0xd0] sm:$0xff] %vm1464_vm10, %v2427_v22  ;;  %v2425_v53 = vmax.f32 %v2393_v54, 0.0  ;;  %v2396_v34 = vadd.f32 %v2350_v33, %v2178_v40  ;;  %v2170_v61 = vadd.f32 %v3988_v20, %v2169_v44 }
 0x3e1   : > { %2457 = vst.msk [vmem:[%s4007_s15 + $0xc0] sm:$0xff] %vm1464_vm10, %v2425_v53  ;;  %v2428_v32 = vmax.f32 %v2396_v34, 0.0  ;;  %v2394_v27 = vadd.f32 %v2342_v19, %v2170_v61 }
 0x3e3   : > { %2460 = vst.msk [vmem:[%s4007_s15 + $0xd8] sm:$0xff] %vm1464_vm10, %v2428_v32  ;;  %v2426_v35 = vmax.f32 %v2394_v27, 0.0 }
 0x3e5   : > { %2458 = vst.msk [vmem:[%s4007_s15 + $0xc8] sm:$0xff] %vm1464_vm10, %v2426_v35 }
 0x3ed   : > { %v2849_v55 = vpop.f32.mrf.mxu0 }
 0x3ee   : > { %v2191_v60 = vadd.f32 %v2849_v55, %v3988_v20 }
 0x3ef   : > { %v2182_v52 = vpop.f32.mrf.mxu0 }
 0x3f0   : > { %v2399_v30 = vadd.f32 %v2363_v13, %v2191_v60  ;;  %v2183_v43 = vadd.f32 %v3988_v20, %v2182_v52 }
 0x3f1   : > { %v2850_v38 = vpop.f32.mrf.mxu0 }
 0x3f2   : > { %v2431_v25 = vmax.f32 %v2399_v30, 0.0  ;;  %v2397_v62 = vadd.f32 %v2355_v49, %v2183_v43  ;;  %v2194_v4 = vadd.f32 %v2850_v38, %v3988_v20 }
 0x3f3   : > { %v2185_v5 = vpop.f32.mrf.mxu0 }
 0x3f4   : > { %2463 = vst.msk [vmem:[%s4007_s15 + $0xf0] sm:$0xff] %vm1464_vm10, %v2431_v25  ;;  %v2429_v10 = vmax.f32 %v2397_v62, 0.0  ;;  %v2400_v48 = vadd.f32 %v2366_v26, %v2194_v4  ;;  %v2186_v6 = vadd.f32 %v3988_v20, %v2185_v5 }
 0x3f6   : > { %2461 = vst.msk [vmem:[%s4007_s15 + $0xe0] sm:$0xff] %vm1464_vm10, %v2429_v10  ;;  %v2432_v31 = vmax.f32 %v2400_v48, 0.0  ;;  %v2398_v14 = vadd.f32 %v2358_v63, %v2186_v6 }
 0x3f8   : > { %2464 = vst.msk [vmem:[%s4007_s15 + $0xf8] sm:$0xff] %vm1464_vm10, %v2432_v31  ;;  %v2430_v50 = vmax.f32 %v2398_v14, 0.0 }
 0x3fa   : > { %2462 = vst.msk [vmem:[%s4007_s15 + $0xe8] sm:$0xff] %vm1464_vm10, %v2430_v50 }
 0x3fb   : > { %3008 = shalt.err (!%p3005_p5)
}
 0x3fc   : > { %s3009_s27 = scalar_lea.hbm %s4131_s26, 4096  ;;  %s3013_s29 = scalar_lea.hbm %s4196_s9, 8192 }
 0x3fd   : > { %p3010_p6 = scmp.ne.s32.totalorder %s4131_s26, %s3009_s27  ;;  %p3014_p10 = scmp.lt.s32.totalorder %s4131_s26, %s4196_s9 }
 0x3fe   : > { %p3015_p11 = scmp.lt.s32.totalorder %s3013_s29, %s3009_s27 }
 0x3ff   : > { %p3011_p7 = pnand %p3010_p6, %p3173_p4 }
 0x400   : > { %p3016_p12 = por %p3015_p11, %p3014_p10 }
 0x401   : > { %p3012_p9 = pneg %p3011_p7 }
 0x403   : > { %p3017_p13 = pnand %p3016_p12, %p3012_p9 }
 0x405   : > { %3020 = shalt.err (!%p3017_p13)
}
 0x406   : > { %s3082_s28 = smov 128  }
 0x407   : > { %2890 = dma.vmem_to_hbm [thread:$0]  (%p3173_p4), %s4135_s24, 4096, %s4131_s26, %s4141_s12, %s3082_s28, %s3082_s28, %s4209_s23  }
 0x408 PF: > { %p2896_p0 = scmp.ge.s32.totalorder %s3071_s14, 2  ;;  %s2497_s20 = sand.u32 1, %s3051_s30  }
 0x409   : > { %s2498_s0 = scalar_lea.sflag [#allocation3], %s2497_s20 }
 0x40a   : > { %p2893_p1 = pnand %p2896_p0, %p3180_p8 }
 0x40c   : > { %p2894_p2 = pneg %p2893_p1 }
 0x40e   : > { %3046 = dma.done.wait (%p2894_p2), %s2498_s0, 4096  }
 0x40f   : > { %3048 = vsyncadd (%p2894_p2), %s2498_s0, 4294963200  ;;  %s22_s14 = sadd.s32 1, %s3071_s14   ;;  %s4211_s30 = smov %s3055_s10 }
 0x410   : > { %p19_p3 = scmp.ge.s32.totalorder %s22_s14, 4   ;;  %s4212_s10 = smov %s3059_s11 }
 0x411   : > { %s4213_s11 = smov %s3186_s22  ;;  %s4214_s12 = smov %s3067_s13 }
 0x412   : > { %s4215_s13 = smov %s4217_s17  ;;  %21 = sbr.rel (!%p19_p3) target bundleno = 6 (0x6), region = 92 }
 0x417   :  { %2503 = vsyncpa [#allocation3], 1 }
 0x418   :  { %2505 = vsyncpa [#allocation3 + $0x1], 1 }

// kernel: tpu_custom_call.1
= control target key start
LH: loop header
LB: loop body
LE: loop exit
PB: predicated region body
PF: predicated region fallthrough
CT: control target
= control target key end

     0   :  { %s4187_s0 = inlined_call_operand.vmem [shape: bf16[2,18,16,4], index: 0, kind: input, shape index: {}]   ;;  %s4188_s1 = inlined_call_operand.vmem [shape: bf16[4,8], index: 1, kind: input, shape index: {}]   ;;  %s4189_s2 = inlined_call_operand.vmem [shape: f32[1,8], index: 2, kind: input, shape index: {}]   ;;  %s4190_s3 = inlined_call_operand.vmem [shape: f32[1,8], index: 3, kind: input, shape index: {}]   ;;  %s4191_s4 = inlined_call_operand.vmem [shape: bf16[72,8], index: 4, kind: input, shape index: {}]   ;;  %s4192_s5 = inlined_call_operand.vmem [shape: bf16[8,16], index: 5, kind: input, shape index: {}]   ;;  %s4193_s6 = inlined_call_operand.vmem [shape: f32[1,16], index: 6, kind: input, shape index: {}]   ;;  %s4194_s7 = inlined_call_operand.vmem [shape: bf16[4,16], index: 7, kind: input, shape index: {}]   ;;  %s4195_s8 = inlined_call_operand.vmem [shape: f32[1,16], index: 8, kind: input, shape index: {}]   ;;  %s4196_s9 = inlined_call_operand.hbm [shape: f32[2,16,16,16], index: 9, kind: output, shape index: {}]  }
   0x1   :  { %4201 = sst [smem:[#allocation5_spill]] %s4187_s0 }
   0x2   :  { %14 = vsyncpa [#allocation3], 0 }
   0x3   :  { %16 = vsyncpa [#allocation3 + $0x1], 0  ;;  %s3133_s30 = smov 0   ;;  %s3135_s10 = smov 0  }
   0x4   :  { %s3137_s11 = smov 0   ;;  %s3139_s12 = smov 0  }
   0x5   :  { %s3141_s13 = smov 0   ;;  %s3143_s14 = smov 0  }
   0x6 LB: > { %s2557_s15 = sadd.s32 4294967295, %s3071_s14   ;;  %s2558_s16 = sadd.s32 4294967294, %s3071_s14   ;;  %s3071_s14 = sphi %s3143_s14, %s22_s14   ;;  %s3067_s13 = sphi %s3141_s13, %s4215_s13   ;;  %s3063_s12 = sphi %s3139_s12, %s4214_s12   ;;  %s3059_s11 = sphi %s3137_s11, %s4213_s11   ;;  %s3055_s10 = sphi %s3135_s10, %s4212_s10   ;;  %s3051_s30 = sphi %s3133_s30, %s4211_s30  }
   0x7   : > { %s34_s17 = sadd.s32 1, %s3067_s13  ;;  %s237_s18 = sadd.s32 1, %s3059_s11 }
   0x8   : > { %p36_p0 = scmp.ge.s32.totalorder %s34_s17, 2  ;;  %p247_p1 = scmp.ne.s32.totalorder %s3059_s11, %s3055_s10 }
   0x9   : > { %p248_p2 = scmp.eq.s32.totalorder %s2557_s15, 1  ;;  %p253_p3 = scmp.ne.s32.totalorder %s3055_s10, %s3051_s30 }
   0xa   : > { %s4217_s17 = smov (%p36_p0, %s34_s17), 0  ;;  %p254_p5 = scmp.eq.s32.totalorder %s2558_s16, 1 }
   0xb   : > { %p3173_p4 = por %p248_p2, %p247_p1  ;;  %s232_s20 = ssub.s32 %s3067_s13, %s4217_s17 }
   0xc   : > { %p2561_p6 = scmp.ge.s32.totalorder %s3071_s14, 1  ;;  %p235_p7 = scmp.eq.s32.totalorder %s232_s20, 0 }
   0xd   : > { %p3180_p8 = por %p254_p5, %p253_p3  ;;  %p304_p9 = scmp.lt.s32.totalorder %s3071_s14, 3 }
   0xe   : > { %s3186_s22 = scalar_select %p235_p7, %s3059_s11, %s237_s18  }
   0xf   : > { %p305_p10 = pnand %p2561_p6, %p304_p9 }
  0x10   : > { %p340_p11 = scmp.lt.s32.totalorder (!%p305_p10), %s3063_s12, 1  ;;  %s4204_s0 = sld [smem:[#allocation5_spill]] (!%p305_p10) }
  0x11   : > { %308 = sbr.rel (%p305_p10) target bundleno = 1032 (0x408), region = 56  ;;  %s4197_s23 = smov (!%p305_p10), 8  }
  0x12   : > { %s3074_s24 = smov (!%p305_p10), 32   ;;  %s3077_s27 = smov (!%p305_p10), 24  }
  0x13   : > { %s3078_s28 = smov (!%p305_p10), 40   ;;  %s3080_s18 = smov (!%p305_p10), 48  }
  0x14   : > { %s4210_s20 = smov (!%p305_p10), 64   ;;  %s2662_s16 = sshll.u32 (!%p305_p10), %s3063_s12, 12 }
  0x16   : > { %v387_v0 = vld [vmem:[%s4188_s1] sm:$0x3]  ;;  %vm533_vm0 = vcmask 1041408   ;;  %s341_s25 = scalar_select %p340_p11, %s3063_s12, 1  ;;  %vm478_vm1 = vcmask 31744   ;;  %vm1085_vm2 = vcmask 1047552  }
  0x17   : > { %2885 = vmatprep.subr.msk.bf16.mxu0 %vm533_vm0, %v387_v0  ;;  %v535_v1 = vsel %vm533_vm0, %v387_v0, 0  ;;  %v3239_v22 = vld [vmem:[%s4189_s2] ss:$0 sm:$0xff]  ;;  %vm1086_vm3 = vsmask.f32 7424  ;;  %vm1010_vm5 = vcmask 1040384  }
  0x18   : > { %2738 = vmatpush3.bf16.msra.mxu0 %v535_v1  ;;  %s2889_s26 = smul.u32 144, %s341_s25  ;;  %v3246_v29 = vld [vmem:[%s4190_s3] ss:$0 sm:$0xff]  ;;  %vm3258_vm4 = vmand %vm1085_vm2, %vm1086_vm3  ;;  %vm1011_vm6 = vsmask.f32 256  ;;  %s3075_s25 = smov 16  }
  0x19   : > { %vm3268_vm7 = vmand %vm1010_vm5, %vm1011_vm6  ;;  %vm1764_vm8 = vcmask 1043456   ;;  %vm1415_vm9 = vcmask 64512   ;;  %vm1464_vm10 = vcmask 130048   ;;  %vm1497_vm11 = vcmask 195584  }
  0x1a   : > { %s3198_s29 = scalar_lea.vmem %s4204_s0, %s2889_s26  ;;  %s3076_s26 = smov 56   ;;  %vm1530_vm12 = vcmask 261120   ;;  %vm1563_vm13 = vcmask 326656   ;;  %vm1596_vm14 = vcmask 392192   ;;  %vm1629_vm15 = vcmask 457728  }
  0x1b   : > { %v2954_v2 = vld [vmem:[%s3198_s29] sm:$0xff]   ;;  %v2955_v3 = vld [vmem:[%s3198_s29 + $0x8] sm:$0xff]   ;;  %v2956_v4 = vld [vmem:[%s3198_s29 + $0x10] sm:$0xff]   ;;  %vm1662_vm2 = vcmask 523264   ;;  %vm1731_vm3 = vcmask 588800  }
  0x1c   : > { %2739 = vmatprep.mubr.msk.bf16.mxu0 %vm478_vm1, %v2954_v2  ;;  %v2957_v5 = vld [vmem:[%s3198_s29 + $0x18] sm:$0xff]   ;;  %v2958_v6 = vld [vmem:[%s3198_s29 + $0x20] sm:$0xff]   ;;  %v2959_v7 = vld [vmem:[%s3198_s29 + $0x28] sm:$0xff]  }
  0x1d   : > { %2740 = vmatmul.mubr.msk.bf16.vlgmr.msra.gmra.mxu0 %vm478_vm1, %v2955_v3  ;;  %v2960_v8 = vld [vmem:[%s3198_s29 + $0x30] sm:$0xff]   ;;  %v2961_v9 = vld [vmem:[%s3198_s29 + $0x38] sm:$0xff]   ;;  %v2962_v10 = vld [vmem:[%s3198_s29 + $0x40] sm:$0xff]  }
  0x1e   : > { %2743 = vmatprep.mubr.msk.bf16.mxu0 %vm478_vm1, %v2956_v4  ;;  %v2963_v11 = vld [vmem:[%s3198_s29 + $0x48] sm:$0xff]   ;;  %v2964_v12 = vld [vmem:[%s3198_s29 + $0x50] sm:$0xff]   ;;  %v2965_v13 = vld [vmem:[%s3198_s29 + $0x58] sm:$0xff]  }
  0x1f   : > { %v2966_v14 = vld [vmem:[%s3198_s29 + $0x60] sm:$0xff]   ;;  %v2967_v15 = vld [vmem:[%s3198_s29 + $0x68] sm:$0xff]   ;;  %v2968_v16 = vld [vmem:[%s3198_s29 + $0x70] sm:$0xff]  }
  0x20   : > { %v2969_v17 = vld [vmem:[%s3198_s29 + $0x78] sm:$0xff]   ;;  %v2970_v18 = vld [vmem:[%s3198_s29 + $0x80] sm:$0xff]   ;;  %v2971_v19 = vld [vmem:[%s3198_s29 + $0x88] sm:$0xff]  }
  0x25   : > { %2744 = vmatmul.mubr.msk.bf16.gmra.mxu0 %vm478_vm1, %v2957_v5 }
  0x26   : > { %2747 = vmatprep.mubr.msk.bf16.mxu0 %vm478_vm1, %v2958_v6 }
  0x2d   : > { %2748 = vmatmul.mubr.msk.bf16.gmra.mxu0 %vm478_vm1, %v2959_v7 }
  0x2e   : > { %2751 = vmatprep.mubr.msk.bf16.mxu0 %vm478_vm1, %v2960_v8 }
  0x35   : > { %2752 = vmatmul.mubr.msk.bf16.gmra.mxu0 %vm478_vm1, %v2961_v9 }
  0x36   : > { %2755 = vmatprep.mubr.msk.bf16.mxu0 %vm478_vm1, %v2962_v10 }
  0x3d   : > { %2756 = vmatmul.mubr.msk.bf16.gmra.mxu0 %vm478_vm1, %v2963_v11 }
  0x3e   : > { %2759 = vmatprep.mubr.msk.bf16.mxu0 %vm478_vm1, %v2964_v12 }
  0x45   : > { %2760 = vmatmul.mubr.msk.bf16.gmra.mxu0 %vm478_vm1, %v2965_v13 }
  0x46   : > { %2763 = vmatprep.mubr.msk.bf16.mxu0 %vm478_vm1, %v2966_v14 }
  0x4d   : > { %2764 = vmatmul.mubr.msk.bf16.gmra.mxu0 %vm478_vm1, %v2967_v15 }
  0x4e   : > { %2767 = vmatprep.mubr.msk.bf16.mxu0 %vm478_vm1, %v2968_v16 }
  0x55   : > { %2768 = vmatmul.mubr.msk.bf16.gmra.mxu0 %vm478_vm1, %v2969_v17 }
  0x56   : > { %2771 = vmatprep.mubr.msk.bf16.mxu0 %vm478_vm1, %v2970_v18 }
  0x5d   : > { %2772 = vmatmul.mubr.msk.bf16.gmra.mxu0 %vm478_vm1, %v2971_v19 }
  0xdd   : > { %v2741_v20 = vpop.f32.mrf.mxu0 }
  0xde   : > { %v716_v21 = vmax.f32 %v2741_v20, 0.0  ;;  %v2972_v20 = vld [vmem:[%s4191_s4 + $0x20] ss:$0 sps:$4 sm:$0xff]  }
  0xdf   : > { %v571_v23 = vpop.f32.mrf.mxu0  ;;  %2886 = vmatprep.subr.msk.bf16.mxu1 %vm1764_vm8, %v2972_v20 }
  0xe0   : > { %v714_v24 = vmax.f32 %v571_v23, 0.0  ;;  %v759_v26 = vmul.f32 %v3239_v22, %v716_v21 }
  0xe1   : > { %v2742_v25 = vpop.f32.mrf.mxu0 }
  0xe2   : > { %v757_v27 = vmul.f32 %v3239_v22, %v714_v24  ;;  %v717_v28 = vmax.f32 %v2742_v25, 0.0  ;;  %v802_v34 = vadd.f32 %v3246_v29, %v759_v26 }
  0xe3   : > { %v574_v30 = vpop.f32.mrf.mxu0 }
  0xe4   : > { %v760_v31 = vmul.f32 %v3239_v22, %v717_v28  ;;  %v715_v32 = vmax.f32 %v574_v30, 0.0  ;;  %v800_v35 = vadd.f32 %v3246_v29, %v757_v27  ;;  %v2973_v27 = vld [vmem:[%s4191_s4 + $0x18] sm:$0xff]   ;;  %v1766_v28 = vsel %vm1764_vm8, %v2972_v20, 0 }
  0xe5   : > { %v2745_v33 = vpop.f32.mrf.mxu0  ;;  %2776 = vmatpush3.bf16.msra.mxu1 %v1766_v28 }
  0xe6   : > { %v803_v36 = vadd.f32 %v3246_v29, %v760_v31  ;;  %v758_v37 = vmul.f32 %v3239_v22, %v715_v32  ;;  %v720_v41 = vmax.f32 %v2745_v33, 0.0  ;;  %v843_v43 = vmul.f32 0.0, %v800_v35  ;;  %2777 = vmatprep.subr.bf16.mxu1 %v2973_v27 }
  0xe7   : > { %v587_v38 = vpop.f32.mrf.mxu0 }
  0xe8   : > { %v849_v39 = vpack.c.bf16 %v803_v36, %v802_v34  ;;  %v801_v40 = vadd.f32 %v3246_v29, %v758_v37  ;;  %v763_v48 = vmul.f32 %v3239_v22, %v720_v41  ;;  %v718_v0 = vmax.f32 %v587_v38, 0.0  ;;  %v2974_v34 = vld [vmem:[%s4191_s4 + $0x10] sm:$0xff]  }
  0xe9   : > { %v2746_v42 = vpop.f32.mrf.mxu0  ;;  %2778 = vmatpush3.bf16.msra.mxu1 %v2973_v27 }
  0xea   : > { %v844_v44 = vmul.f32 0.0, %v801_v40  ;;  %v721_v45 = vmax.f32 %v2746_v42, 0.0  ;;  %1124 = vrot.lane.b32.xlu0 %v849_v39, %s4197_s23  ;;  %v874_v46 = vshrl.u32 %v849_v39, 16  ;;  %v877_v47 = vshll.u32 %v849_v39, 16  ;;  %2779 = vmatprep.subr.bf16.mxu1 %v2974_v34 }
  0xeb   : > { %v590_v51 = vpop.f32.mrf.mxu0  ;;  %v806_v57 = vadd.f32 %v3246_v29, %v763_v48  ;;  %v761_v6 = vmul.f32 %v3239_v22, %v718_v0 }
  0xec   : > { %v764_v49 = vmul.f32 %v3239_v22, %v721_v45  ;;  %v848_v50 = vpack.c.bf16 %v844_v44, %v843_v43  ;;  %v1033_v52 = vrot.slane %v877_v47, 1  ;;  %v876_v53 = vrot.slane %v874_v46, 7  ;;  %v2976_v44 = vld [vmem:[%s4191_s4] sm:$0xff]  }
  0xed   : > { %v719_v59 = vmax.f32 %v590_v51, 0.0  ;;  %v804_v9 = vadd.f32 %v3246_v29, %v761_v6  ;;  %v2749_v10 = vpop.f32.mrf.mxu0  ;;  %2780 = vmatpush3.bf16.msra.mxu1 %v2974_v34 }
  0xee   : > { %1251 = vrot.lane.b32.xlu0 %v849_v39, %s3074_s24  ;;  %v867_v55 = vshrl.u32 %v848_v50, 16  ;;  %v1034_v56 = vor.u32 %v1033_v52, %v874_v46  ;;  %v807_v58 = vadd.f32 %v3246_v29, %v764_v49  ;;  %v879_v61 = vor.u32 %v877_v47, %v876_v53  ;;  %v2975_v39 = vld [vmem:[%s4191_s4 + $0x8] sm:$0xff]  }
  0xef   : > { %v870_v63 = vshll.u32 %v848_v50, 16  ;;  %v762_v4 = vmul.f32 %v3239_v22, %v719_v59  ;;  %v603_v15 = vpop.f32.mrf.mxu0  ;;  %v724_v21 = vmax.f32 %v2749_v10, 0.0  ;;  %2781 = vmatprep.subr.bf16.mxu1 %v2975_v39 }
  0xf0   : > { %v1089_v60 = vsel %vm3258_vm4, %v1034_v56, 0  ;;  %v869_v62 = vrot.slane %v867_v55, 7  ;;  %v851_v3 = vpack.c.bf16 %v807_v58, %v806_v57  ;;  %v3277_v5 = vsel %vm3268_vm7, 0, %v879_v61 }
  0xf1   : > { %1172 = vrot.lane.b32.xlu1 %v1089_v60, %s3075_s25  ;;  %v805_v7 = vadd.f32 %v3246_v29, %v762_v4  ;;  %v1031_v12 = vrot.slane %v870_v63, 1  ;;  %v2750_v19 = vpop.f32.mrf.mxu0  ;;  %v767_v30 = vmul.f32 %v3239_v22, %v724_v21  ;;  %v722_v45 = vmax.f32 %v603_v15, 0.0  ;;  %2782 = vmatpush3.bf16.msra.mxu1 %v2975_v39 }
  0xf2   : > { %1122 = vrot.lane.b32.xlu0 %v848_v50, %s4197_s23  ;;  %v3272_v2 = vor.u32 %v870_v63, %v869_v62  ;;  %v891_v8 = vshll.u32 %v851_v3, 16  ;;  %v888_v13 = vshrl.u32 %v851_v3, 16  ;;  %v725_v23 = vmax.f32 %v2750_v19, 0.0  ;;  %2783 = vmatprep.subr.bf16.mxu1 %v2976_v44 }
  0xf3   : > { %v850_v11 = vpack.c.bf16 %v805_v7, %v804_v9  ;;  %v1032_v16 = vor.u32 %v1031_v12, %v867_v55  ;;  %v810_v35 = vadd.f32 %v3246_v29, %v767_v30  ;;  %v606_v41 = vpop.f32.mrf.mxu0  ;;  %v765_v49 = vmul.f32 %v3239_v22, %v722_v45 }
  0xf4   : > { %v1037_v14 = vrot.slane %v891_v8, 1  ;;  %v890_v18 = vrot.slane %v888_v13, 7  ;;  %v768_v31 = vmul.f32 %v3239_v22, %v725_v23  ;;  %v723_v46 = vmax.f32 %v606_v41, 0.0 }
  0xf5   : > { %1352 = vrot.lane.b32.xlu1 %v851_v3, %s3076_s26  ;;  %v1088_v24 = vsel %vm3258_vm4, %v1032_v16, 0  ;;  %v881_v33 = vshrl.u32 %v850_v11, 16  ;;  %v884_v38 = vshll.u32 %v850_v11, 16  ;;  %2784 = vmatpush3.bf16.msra.mxu1 %v2976_v44  ;;  %v2753_v53 = vpop.f32.mrf.mxu0  ;;  %v808_v55 = vadd.f32 %v3246_v29, %v765_v49 }
  0xf6   : > { %1218 = vrot.lane.b32.xlu0 %v3277_v5, %s3077_s27  ;;  %v1038_v17 = vor.u32 %v1037_v14, %v888_v13  ;;  %v893_v26 = vor.u32 %v891_v8, %v890_v18  ;;  %v811_v36 = vadd.f32 %v3246_v29, %v768_v31  ;;  %v766_v50 = vmul.f32 %v3239_v22, %v723_v46 }
  0xf7   : > { %v883_v37 = vrot.slane %v881_v33, 7  ;;  %v1035_v43 = vrot.slane %v884_v38, 1  ;;  %v619_v59 = vpop.f32.mrf.mxu0  ;;  %v728_v0 = vmax.f32 %v2753_v53, 0.0 }
  0xf8   : > { %v1091_v25 = vsel %vm3258_vm4, %v1038_v17, 0  ;;  %v3309_v32 = vsel %vm3268_vm7, 0, %v893_v26  ;;  %v853_v40 = vpack.c.bf16 %v811_v36, %v810_v35  ;;  %v809_v56 = vadd.f32 %v3246_v29, %v766_v50 }
  0xf9   : > { %1128 = vrot.lane.b32.xlu1 %v851_v3, %s4197_s23  ;;  %v886_v42 = vor.u32 %v884_v38, %v883_v37  ;;  %v1036_v48 = vor.u32 %v1035_v43, %v881_v33  ;;  %v2754_v63 = vpop.f32.mrf.mxu0  ;;  %v771_v7 = vmul.f32 %v3239_v22, %v728_v0  ;;  %v726_v19 = vmax.f32 %v619_v59, 0.0 }
  0xfa   : > { %1284 = vrot.lane.b32.xlu0 %v1089_v60, %s3078_s28  ;;  %v905_v52 = vshll.u32 %v853_v40, 16  ;;  %v902_v57 = vshrl.u32 %v853_v40, 16  ;;  %v852_v60 = vpack.c.bf16 %v809_v56, %v808_v55 }
  0xfb   : > { %v3332_v47 = vsel %vm3268_vm7, 0, %v886_v42  ;;  %v1090_v51 = vsel %vm3258_vm4, %v1036_v48, 0  ;;  %v622_v16 = vpop.f32.mrf.mxu0 }
  0xfc   : > { %v1041_v58 = vrot.slane %v905_v52, 1  ;;  %v904_v62 = vrot.slane %v902_v57, 7  ;;  %v895_v10 = vshrl.u32 %v852_v60, 16  ;;  %v898_v14 = vshll.u32 %v852_v60, 16 }
  0xfd   : > { %1253 = vrot.lane.b32.xlu1 %v850_v11, %s3074_s24  ;;  %v727_v20 = vmax.f32 %v622_v16, 0.0  ;;  %v2757_v28 = vpop.f32.mrf.mxu0 }
  0xfe   : > { %1255 = vrot.lane.b32.xlu0 %v851_v3, %s3074_s24  ;;  %v1042_v61 = vor.u32 %v1041_v58, %v902_v57  ;;  %v729_v3 = vmax.f32 %v2754_v63, 0.0  ;;  %v907_v6 = vor.u32 %v905_v52, %v904_v62  ;;  %v897_v13 = vrot.slane %v895_v10, 7 }
  0xff   : > { %v1039_v18 = vrot.slane %v898_v14, 1  ;;  %v635_v35 = vpop.f32.mrf.mxu0 }
 0x100   : > { %v1093_v4 = vsel %vm3258_vm4, %v1042_v61, 0  ;;  %v772_v8 = vmul.f32 %v3239_v22, %v729_v3  ;;  %v3358_v9 = vsel %vm3268_vm7, 0, %v907_v6  ;;  %v900_v17 = vor.u32 %v898_v14, %v897_v13 }
 0x101   : > { %1126 = vrot.lane.b32.xlu1 %v850_v11, %s4197_s23  ;;  %s4199_s23 = smov 64   ;;  %v1040_v23 = vor.u32 %v1039_v18, %v895_v10  ;;  %v2758_v39 = vpop.f32.mrf.mxu0  ;;  %v730_v58 = vmax.f32 %v635_v35, 0.0 }
 0x102   : > { %1350 = vrot.lane.b32.xlu0 %v850_v11, %s3076_s26  ;;  %v814_v11 = vadd.f32 %v3246_v29, %v771_v7  ;;  %v815_v12 = vadd.f32 %v3246_v29, %v772_v8  ;;  %v3372_v21 = vsel %vm3268_vm7, 0, %v900_v17  ;;  %v733_v41 = vmax.f32 %v2758_v39, 0.0 }
 0x103   : > { %v1092_v26 = vsel %vm3258_vm4, %v1040_v23, 0  ;;  %v638_v55 = vpop.f32.mrf.mxu0  ;;  %v773_v62 = vmul.f32 %v3239_v22, %v730_v58 }
 0x104   : > { %v855_v15 = vpack.c.bf16 %v815_v12, %v814_v11  ;;  %v776_v45 = vmul.f32 %v3239_v22, %v733_v41  ;;  %v731_v59 = vmax.f32 %v638_v55, 0.0 }
 0x105   : > { %1170 = vrot.lane.b32.xlu1 %v1088_v24, %s3075_s25  ;;  %v769_v24 = vmul.f32 %v3239_v22, %v726_v19  ;;  %v816_v6 = vadd.f32 %v3246_v29, %v773_v62 }
 0x106   : > { %1385 = vrot.lane.b32.xlu0 %v1091_v25, %s4199_s23  ;;  %s4209_s23 = smov 8   ;;  %v919_v27 = vshll.u32 %v855_v15, 16  ;;  %v916_v33 = vshrl.u32 %v855_v15, 16  ;;  %v819_v50 = vadd.f32 %v3246_v29, %v776_v45  ;;  %v774_v63 = vmul.f32 %v3239_v22, %v731_v59 }
 0x107   : > { %v812_v30 = vadd.f32 %v3246_v29, %v769_v24 }
 0x108   : > { %v1045_v34 = vrot.slane %v919_v27, 1  ;;  %v918_v38 = vrot.slane %v916_v33, 7  ;;  %v817_v7 = vadd.f32 %v3246_v29, %v774_v63 }
 0x109   : > { %1319 = vrot.lane.b32.xlu1 %v3309_v32, %s3080_s18 }
 0x10a   : > { %1222 = vrot.lane.b32.xlu0 %v3309_v32, %s3077_s27  ;;  %v1046_v37 = vor.u32 %v1045_v34, %v916_v33  ;;  %v921_v43 = vor.u32 %v919_v27, %v918_v38  ;;  %v856_v13 = vpack.c.bf16 %v817_v7, %v816_v6  ;;  %v1013_v6 = vsel %vm3268_vm7, 0, %v3272_v2 }
 0x10c   : > { %v1095_v42 = vsel %vm3258_vm4, %v1046_v37, 0  ;;  %v3398_v46 = vsel %vm3268_vm7, 0, %v921_v43  ;;  %v923_v33 = vshrl.u32 %v856_v13, 16  ;;  %v926_v39 = vshll.u32 %v856_v13, 16 }
 0x10d   : > { %1176 = vrot.lane.b32.xlu1 %v1091_v25, %s3075_s25 }
 0x10e   : > { %1288 = vrot.lane.b32.xlu0 %v1091_v25, %s3078_s28  ;;  %v770_v25 = vmul.f32 %v3239_v22, %v727_v20  ;;  %v925_v38 = vrot.slane %v923_v33, 7  ;;  %v1047_v45 = vrot.slane %v926_v39, 1 }
 0x110   : > { %v813_v31 = vadd.f32 %v3246_v29, %v770_v25 }
 0x111   : > { %1356 = vrot.lane.b32.xlu1 %v853_v40, %s3076_s26 }
 0x112   : > { %1259 = vrot.lane.b32.xlu0 %v853_v40, %s3074_s24  ;;  %v854_v36 = vpack.c.bf16 %v813_v31, %v812_v30 }
 0x114   : > { %v909_v48 = vshrl.u32 %v854_v36, 16  ;;  %v912_v52 = vshll.u32 %v854_v36, 16 }
 0x115   : > { %1132 = vrot.lane.b32.xlu1 %v853_v40, %s4209_s23  ;;  %v732_v40 = vmax.f32 %v2757_v28, 0.0 }
 0x116   : > { %1317 = vrot.lane.b32.xlu0 %v3332_v47, %s3080_s18  ;;  %v1043_v57 = vrot.slane %v912_v52, 1 }
 0x117   : > { %v775_v44 = vmul.f32 %v3239_v22, %v732_v40 }
 0x118   : > { %v1044_v61 = vor.u32 %v1043_v57, %v909_v48 }
 0x119   : > { %1220 = vrot.lane.b32.xlu1 %v3332_v47, %s3077_s27  ;;  %v818_v49 = vadd.f32 %v3246_v29, %v775_v44  ;;  %v928_v44 = vor.u32 %v926_v39, %v925_v38 }
 0x11a   : > { %1383 = vrot.lane.b32.xlu0 %v1090_v51, %s4210_s20  ;;  %v1094_v0 = vsel %vm3258_vm4, %v1044_v61, 0 }
 0x11b   : > { %v857_v53 = vpack.c.bf16 %v819_v50, %v818_v49 }
 0x11d   : > { %1286 = vrot.lane.b32.xlu1 %v1090_v51, %s3078_s28  ;;  %v933_v3 = vshll.u32 %v857_v53, 16  ;;  %v930_v10 = vshrl.u32 %v857_v53, 16 }
 0x11e   : > { %1174 = vrot.lane.b32.xlu0 %v1090_v51, %s3075_s25  ;;  %v911_v51 = vrot.slane %v909_v48, 7 }
 0x11f   : > { %v1049_v11 = vrot.slane %v933_v3, 1  ;;  %v932_v16 = vrot.slane %v930_v10, 7 }
 0x120   : > { %v914_v56 = vor.u32 %v912_v52, %v911_v51  ;;  %v3472_v52 = vsel %vm3268_vm7, 0, %v928_v44 }
 0x121   : > { %1257 = vrot.lane.b32.xlu1 %v852_v60, %s3074_s24  ;;  %v935_v25 = vor.u32 %v933_v3, %v932_v16 }
 0x122   : > { %1354 = vrot.lane.b32.xlu0 %v852_v60, %s3076_s26 }
 0x123   : > { %v3446_v31 = vsel %vm3268_vm7, 0, %v935_v25 }
 0x125   : > { %1130 = vrot.lane.b32.xlu1 %v852_v60, %s4209_s23  ;;  %v3412_v60 = vsel %vm3268_vm7, 0, %v914_v56 }
 0x126   : > { %1389 = vrot.lane.b32.xlu0 %v1093_v4, %s4210_s20 }
 0x129   : > { %1323 = vrot.lane.b32.xlu1 %v3358_v9, %s3080_s18 }
 0x12a   : > { %1226 = vrot.lane.b32.xlu0 %v3358_v9, %s3077_s27 }
 0x12d   : > { %1180 = vrot.lane.b32.xlu1 %v1093_v4, %s3075_s25 }
 0x12e   : > { %1292 = vrot.lane.b32.xlu0 %v1093_v4, %s3078_s28  ;;  %v2761_v4 = vpop.f32.mrf.mxu0 }
 0x12f   : > { %v736_v18 = vmax.f32 %v2761_v4, 0.0 }
 0x130   : > { %v651_v12 = vpop.f32.mrf.mxu0 }
 0x131   : > { %1360 = vrot.lane.b32.xlu1 %v855_v15, %s3076_s26  ;;  %v734_v48 = vmax.f32 %v651_v12, 0.0 }
 0x132   : > { %1263 = vrot.lane.b32.xlu0 %v855_v15, %s3074_s24  ;;  %v2762_v17 = vpop.f32.mrf.mxu0 }
 0x133   : > { %v737_v19 = vmax.f32 %v2762_v17, 0.0  ;;  %v777_v55 = vmul.f32 %v3239_v22, %v734_v48 }
 0x134   : > { %v654_v43 = vpop.f32.mrf.mxu0 }
 0x135   : > { %1136 = vrot.lane.b32.xlu1 %v855_v15, %s4209_s23  ;;  %v1050_v15 = vor.u32 %v1049_v11, %v930_v10  ;;  %v780_v27 = vmul.f32 %v3239_v22, %v737_v19  ;;  %v735_v49 = vmax.f32 %v654_v43, 0.0  ;;  %v820_v63 = vadd.f32 %v3246_v29, %v777_v55 }
 0x136   : > { %1321 = vrot.lane.b32.xlu0 %v3372_v21, %s3080_s18  ;;  %v2765_v62 = vpop.f32.mrf.mxu0 }
 0x137   : > { %v1097_v24 = vsel %vm3258_vm4, %v1050_v15, 0  ;;  %v823_v35 = vadd.f32 %v3246_v29, %v780_v27  ;;  %v778_v56 = vmul.f32 %v3239_v22, %v735_v49 }
 0x139   : > { %1224 = vrot.lane.b32.xlu1 %v3372_v21, %s3077_s27 }
 0x13a   : > { %1387 = vrot.lane.b32.xlu0 %v1092_v26, %s4210_s20 }
 0x13d   : > { %1290 = vrot.lane.b32.xlu1 %v1092_v26, %s3078_s28 }
 0x13e   : > { %1178 = vrot.lane.b32.xlu0 %v1092_v26, %s3075_s25  ;;  %v779_v26 = vmul.f32 %v3239_v22, %v736_v18 }
 0x140   : > { %v822_v34 = vadd.f32 %v3246_v29, %v779_v26 }
 0x141   : > { %1261 = vrot.lane.b32.xlu1 %v854_v36, %s3074_s24 }
 0x142   : > { %1358 = vrot.lane.b32.xlu0 %v854_v36, %s3076_s26  ;;  %v859_v40 = vpack.c.bf16 %v823_v35, %v822_v34 }
 0x144   : > { %v947_v61 = vshll.u32 %v859_v40, 16  ;;  %v944_v7 = vshrl.u32 %v859_v40, 16 }
 0x145   : > { %1134 = vrot.lane.b32.xlu1 %v854_v36, %s4209_s23 }
 0x146   : > { %1393 = vrot.lane.b32.xlu0 %v1095_v42, %s4210_s20  ;;  %v1053_v10 = vrot.slane %v947_v61, 1  ;;  %v946_v18 = vrot.slane %v944_v7, 7 }
 0x148   : > { %v1054_v2 = vor.u32 %v1053_v10, %v944_v7  ;;  %v949_v34 = vor.u32 %v947_v61, %v946_v18 }
 0x149   : > { %1327 = vrot.lane.b32.xlu1 %v3398_v46, %s3080_s18 }
 0x14a   : > { %1230 = vrot.lane.b32.xlu0 %v3398_v46, %s3077_s27  ;;  %v3532_v44 = vsel %vm3268_vm7, 0, %v949_v34 }
 0x14d   : > { %1184 = vrot.lane.b32.xlu1 %v1095_v42, %s3075_s25 }
 0x14e   : > { %1296 = vrot.lane.b32.xlu0 %v1095_v42, %s3078_s28 }
 0x151   : > { %1364 = vrot.lane.b32.xlu1 %v857_v53, %s3076_s26 }
 0x152   : > { %1267 = vrot.lane.b32.xlu0 %v857_v53, %s3074_s24 }
 0x155   : > { %1140 = vrot.lane.b32.xlu1 %v857_v53, %s4209_s23  ;;  %v1048_v53 = vor.u32 %v1047_v45, %v923_v33  ;;  %v1099_v33 = vsel %vm3258_vm4, %v1054_v2, 0 }
 0x156   : > { %1325 = vrot.lane.b32.xlu0 %v3412_v60, %s3080_s18 }
 0x157   : > { %v1096_v59 = vsel %vm3258_vm4, %v1048_v53, 0 }
 0x159   : > { %1228 = vrot.lane.b32.xlu1 %v3412_v60, %s3077_s27 }
 0x15a   : > { %1391 = vrot.lane.b32.xlu0 %v1094_v0, %s4210_s20 }
 0x15c   : > { %v3426_v8 = vpop.permute.xlu0 %1124 }
 0x15d   : > { %1294 = vrot.lane.b32.xlu1 %v1094_v0, %s3078_s28 }
 0x15e   : > { %1182 = vrot.lane.b32.xlu0 %v1094_v0, %s3075_s25  ;;  %v821_v0 = vadd.f32 %v3246_v29, %v778_v56 }
 0x160   : > { %v3430_v14 = vpop.permute.xlu0 %1251  ;;  %v3501_v15 = vpack.c.bf16 %v821_v0, %v820_v63 }
 0x161   : > { %1265 = vrot.lane.b32.xlu1 %v856_v13, %s3074_s24 }
 0x162   : > { %1362 = vrot.lane.b32.xlu0 %v856_v13, %s3076_s26  ;;  %v937_v45 = vshrl.u32 %v3501_v15, 16 }
 0x163   : > { %v3434_v20 = vpop.permute.xlu1 %1172 }
 0x164   : > { %v1123_v23 = vpop.permute.xlu0 %1122 }
 0x165   : > { %1138 = vrot.lane.b32.xlu1 %v856_v13, %s4209_s23  ;;  %v1418_v11 = vsel %vm1415_vm9, %v1013_v6, %v1123_v23  ;;  %v3499_v13 = vpop.f32.mrf.mxu0 }
 0x166   : > { %1397 = vrot.lane.b32.xlu0 %v1097_v24, %s4210_s20 }
 0x167   : > { %v3442_v28 = vpop.permute.xlu1 %1352  ;;  %v2766_v23 = vpop.f32.mrf.mxu0 }
 0x168   : > { %v1219_v30 = vpop.permute.xlu0 %1218  ;;  %v741_v25 = vmax.f32 %v2766_v23, 0.0 }
 0x169   : > { %1331 = vrot.lane.b32.xlu1 %v3446_v31, %s3080_s18 }
 0x16a   : > { %1234 = vrot.lane.b32.xlu0 %v3446_v31, %s3077_s27  ;;  %v784_v38 = vmul.f32 %v3239_v22, %v741_v25 }
 0x16b   : > { %v3454_v36 = vpop.permute.xlu1 %1128 }
 0x16c   : > { %v3456_v37 = vpop.permute.xlu0 %1284  ;;  %v827_v53 = vadd.f32 %v3246_v29, %v784_v38 }
 0x16d   : > { %1188 = vrot.lane.b32.xlu1 %v1097_v24, %s3075_s25 }
 0x16e   : > { %1300 = vrot.lane.b32.xlu0 %v1097_v24, %s3078_s28  ;;  %v740_v24 = vmax.f32 %v2765_v62, 0.0 }
 0x16f   : > { %v3460_v41 = vpop.permute.xlu1 %1253 }
 0x170   : > { %v3462_v42 = vpop.permute.xlu0 %1255  ;;  %v783_v35 = vmul.f32 %v3239_v22, %v740_v24 }
 0x171   : > { %1368 = vrot.lane.b32.xlu1 %v859_v40, %s3076_s26 }
 0x172   : > { %1271 = vrot.lane.b32.xlu0 %v859_v40, %s3074_s24  ;;  %v826_v49 = vadd.f32 %v3246_v29, %v783_v35 }
 0x173   : > { %v3466_v50 = vpop.permute.xlu1 %1126 }
 0x174   : > { %v3468_v51 = vpop.permute.xlu0 %1350 }
 0x175   : > { %1144 = vrot.lane.b32.xlu1 %v859_v40, %s4209_s23 }
 0x176   : > { %1329 = vrot.lane.b32.xlu0 %v3472_v52, %s3080_s18 }
 0x177   : > { %v1171_v57 = vpop.permute.xlu1 %1170 }
 0x178   : > { %v3479_v58 = vpop.permute.xlu0 %1385  ;;  %v1466_v12 = vsel %vm1464_vm10, %v1418_v11, %v1171_v57 }
 0x179   : > { %1232 = vrot.lane.b32.xlu1 %v3472_v52, %s3077_s27  ;;  %v1499_v19 = vsel %vm1497_vm11, %v1466_v12, %v1219_v30 }
 0x17a   : > { %1395 = vrot.lane.b32.xlu0 %v1096_v59, %s4210_s20  ;;  %v1532_v30 = vsel %vm1530_vm12, %v1499_v19, %v3430_v14 }
 0x17b   : > { %v3488_v3 = vpop.permute.xlu1 %1319  ;;  %v1565_v40 = vsel %vm1563_vm13, %v1532_v30, %v3456_v37  ;;  %v1421_v37 = vsel %vm1415_vm9, %v3277_v5, %v3426_v8  ;;  %v939_v5 = vrot.slane %v937_v45, 7  ;;  %v940_v8 = vshll.u32 %v3501_v15, 16 }
 0x17c   : > { %v3490_v4 = vpop.permute.xlu0 %1222  ;;  %v1468_v48 = vsel %vm1464_vm10, %v1421_v37, %v3434_v20  ;;  %v861_v20 = vpack.c.bf16 %v827_v53, %v826_v49 }
 0x17d   : > { %1298 = vrot.lane.b32.xlu1 %v1096_v59, %s3078_s28  ;;  %v942_v10 = vor.u32 %v940_v8, %v939_v5  ;;  %v1051_v11 = vrot.slane %v940_v8, 1 }
 0x17e   : > { %1186 = vrot.lane.b32.xlu0 %v1096_v59, %s3075_s25 }
 0x17f   : > { %v3503_v16 = vpop.permute.xlu1 %1176  ;;  %v1052_v23 = vor.u32 %v1051_v11, %v937_v45 }
 0x180   : > { %v3505_v17 = vpop.permute.xlu0 %1288 }
 0x181   : > { %1269 = vrot.lane.b32.xlu1 %v3501_v15, %s3074_s24  ;;  %v1098_v25 = vsel %vm3258_vm4, %v1052_v23, 0 }
 0x182   : > { %1366 = vrot.lane.b32.xlu0 %v3501_v15, %s3076_s26 }
 0x183   : > { %v3512_v26 = vpop.permute.xlu1 %1356 }
 0x184   : > { %v3514_v27 = vpop.permute.xlu0 %1259 }
 0x185   : > { %1142 = vrot.lane.b32.xlu1 %v3501_v15, %s4209_s23  ;;  %v738_v15 = vmax.f32 %v3499_v13, 0.0 }
 0x186   : > { %1401 = vrot.lane.b32.xlu0 %v1099_v33, %s4210_s20 }
 0x187   : > { %v3525_v39 = vpop.permute.xlu1 %1132 }
 0x188   : > { %v1318_v43 = vpop.permute.xlu0 %1317 }
 0x189   : > { %v1598_v14 = vsel %vm1596_vm14, %v1565_v40, %v1318_v43  ;;  %1335 = vrot.lane.b32.xlu1 %v3532_v44, %s3080_s18  ;;  %v958_v43 = vshrl.u32 %v861_v20, 16 }
 0x18a   : > { %1238 = vrot.lane.b32.xlu0 %v3532_v44, %s3077_s27  ;;  %v1631_v57 = vsel %vm1629_vm15, %v1598_v14, %v3468_v51  ;;  %v670_v51 = vpop.f32.mrf.mxu0  ;;  %v1424_v14 = vsel %vm1415_vm9, %v3332_v47, %v3466_v50 }
 0x18b   : > { %v1221_v55 = vpop.permute.xlu1 %1220 }
 0x18c   : > { %v1384_v56 = vpop.permute.xlu0 %1383  ;;  %v1501_v59 = vsel %vm1497_vm11, %v1468_v48, %v1221_v55  ;;  %v2769_v30 = vpop.f32.mrf.mxu0 }
 0x18d   : > { %v1664_v61 = vsel %vm1662_vm2, %v1631_v57, %v1384_v56  ;;  %1192 = vrot.lane.b32.xlu1 %v1099_v33, %s3075_s25  ;;  %v1534_v62 = vsel %vm1530_vm12, %v1501_v59, %v3460_v41  ;;  %v739_v41 = vmax.f32 %v670_v51, 0.0  ;;  %v960_v56 = vrot.slane %v958_v43, 7 }
 0x18e   : > { %2785 = vmatprep.mubr.msk.bf16.mxu1 %vm1731_vm3, %v1664_v61  ;;  %1304 = vrot.lane.b32.xlu0 %v1099_v33, %s3078_s28  ;;  %v961_v33 = vshll.u32 %v861_v20, 16  ;;  %v3597_v48 = vpop.f32.mrf.mxu0  ;;  %v744_v59 = vmax.f32 %v2769_v30, 0.0 }
 0x18f   : > { %v1287_v63 = vpop.permute.xlu1 %1286  ;;  %v782_v13 = vmul.f32 %v3239_v22, %v739_v41 }
 0x190   : > { %v1175_v0 = vpop.permute.xlu0 %1174  ;;  %v1567_v6 = vsel %vm1563_vm13, %v1534_v62, %v1287_v63  ;;  %v1057_v45 = vrot.slane %v961_v33, 1  ;;  %v2770_v50 = vpop.f32.mrf.mxu0  ;;  %v963_v62 = vor.u32 %v961_v33, %v960_v56  ;;  %v787_v63 = vmul.f32 %v3239_v22, %v744_v59 }
 0x191   : > { %v1600_v7 = vsel %vm1596_vm14, %v1567_v6, %v3488_v3  ;;  %1372 = vrot.lane.b32.xlu1 %v861_v20, %s3076_s26  ;;  %v3572_v3 = vsel %vm3268_vm7, 0, %v942_v10  ;;  %v825_v35 = vadd.f32 %v3246_v29, %v782_v13  ;;  %v1470_v37 = vsel %vm1464_vm10, %v1424_v14, %v1175_v0 }
 0x192   : > { %1275 = vrot.lane.b32.xlu0 %v861_v20, %s3074_s24  ;;  %v1633_v12 = vsel %vm1629_vm15, %v1600_v7, %v3442_v28  ;;  %v781_v28 = vmul.f32 %v3239_v22, %v738_v15  ;;  %v1503_v57 = vsel %vm1497_vm11, %v1470_v37, %v3490_v4  ;;  %v1058_v47 = vor.u32 %v1057_v45, %v958_v43 }
 0x193   : > { %v3564_v2 = vpop.permute.xlu1 %1257  ;;  %v1666_v18 = vsel %vm1662_vm2, %v1633_v12, %v3479_v58  ;;  %v745_v61 = vmax.f32 %v2770_v50, 0.0  ;;  %v3631_v10 = vsel %vm3268_vm7, 0, %v963_v62  ;;  %v1427_v12 = vsel %vm1415_vm9, %v3309_v32, %v3454_v36 }
 0x194   : > { %v1355_v19 = vpop.permute.xlu0 %1354  ;;  %2786 = vmatmul.mubr.msk.bf16.vlgmr.msra.gmra.mxu1 %vm1731_vm3, %v1666_v18  ;;  %v824_v34 = vadd.f32 %v3246_v29, %v781_v28  ;;  %v1101_v4 = vsel %vm3258_vm4, %v1058_v47, 0  ;;  %v830_v15 = vadd.f32 %v3246_v29, %v787_v63  ;;  %v742_v37 = vmax.f32 %v3597_v48, 0.0 }
 0x195   : > { %1148 = vrot.lane.b32.xlu1 %v861_v20, %s4209_s23  ;;  %v1536_v20 = vsel %vm1530_vm12, %v1503_v57, %v3462_v42  ;;  %v788_v0 = vmul.f32 %v3239_v22, %v745_v61 }
 0x196   : > { %1333 = vrot.lane.b32.xlu0 %v3572_v3, %s3080_s18  ;;  %v3599_v49 = vpack.c.bf16 %v825_v35, %v824_v34  ;;  %v1569_v6 = vsel %vm1563_vm13, %v1536_v20, %v3505_v17  ;;  %v1472_v17 = vsel %vm1464_vm10, %v1427_v12, %v3503_v16  ;;  %v686_v16 = vpop.f32.mrf.mxu0  ;;  %v785_v59 = vmul.f32 %v3239_v22, %v742_v37 }
 0x197   : > { %v3578_v24 = vpop.permute.xlu1 %1130  ;;  %v831_v41 = vadd.f32 %v3246_v29, %v788_v0 }
 0x198   : > { %v3580_v58 = vpop.permute.xlu0 %1389  ;;  %v951_v11 = vshrl.u32 %v3599_v49, 16  ;;  %v954_v36 = vshll.u32 %v3599_v49, 16  ;;  %v2773_v50 = vpop.f32.mrf.mxu0  ;;  %v828_v63 = vadd.f32 %v3246_v29, %v785_v59 }
 0x199   : > { %1236 = vrot.lane.b32.xlu1 %v3572_v3, %s3077_s27  ;;  %v863_v33 = vpack.c.bf16 %v831_v41, %v830_v15 }
 0x19a   : > { %1399 = vrot.lane.b32.xlu0 %v1098_v25, %s4210_s20  ;;  %v953_v32 = vrot.slane %v951_v11, 7  ;;  %v1055_v45 = vrot.slane %v954_v36, 1  ;;  %v699_v62 = vpop.f32.mrf.mxu0 }
 0x19b   : > { %v1324_v38 = vpop.permute.xlu1 %1323 }
 0x19c   : > { %v3589_v40 = vpop.permute.xlu0 %1226  ;;  %v956_v14 = vor.u32 %v954_v36, %v953_v32  ;;  %v1056_v48 = vor.u32 %v1055_v45, %v951_v11  ;;  %v2774_v12 = vpop.f32.mrf.mxu0  ;;  %v746_v32 = vmax.f32 %v699_v62, 0.0 }
 0x19d   : > { %1302 = vrot.lane.b32.xlu1 %v1098_v25, %s3078_s28  ;;  %v749_v37 = vmax.f32 %v2774_v12, 0.0 }
 0x19e   : > { %1190 = vrot.lane.b32.xlu0 %v1098_v25, %s3075_s25  ;;  %v1100_v20 = vsel %vm3258_vm4, %v1056_v48, 0  ;;  %v1433_v48 = vsel %vm1415_vm9, %v3358_v9, %v3525_v39 }
 0x19f   : > { %v3601_v53 = vpop.permute.xlu1 %1180 }
 0x1a0   : > { %v3603_v55 = vpop.permute.xlu0 %1292  ;;  %v1476_v59 = vsel %vm1464_vm10, %v1433_v48, %v3601_v53 }
 0x1a1   : > { %1273 = vrot.lane.b32.xlu1 %v3599_v49, %s3074_s24 }
 0x1a2   : > { %1370 = vrot.lane.b32.xlu0 %v3599_v49, %s3076_s26 }
 0x1a3   : > { %v3611_v5 = vpop.permute.xlu1 %1360 }
 0x1a4   : > { %v3613_v8 = vpop.permute.xlu0 %1263 }
 0x1a5   : > { %1146 = vrot.lane.b32.xlu1 %v3599_v49, %s4209_s23  ;;  %v743_v49 = vmax.f32 %v686_v16, 0.0 }
 0x1a6   : > { %1405 = vrot.lane.b32.xlu0 %v1101_v4, %s4210_s20 }
 0x1a7   : > { %v3624_v51 = vpop.permute.xlu1 %1136 }
 0x1a8   : > { %v1322_v7 = vpop.permute.xlu0 %1321 }
 0x1a9   : > { %v1602_v42 = vsel %vm1596_vm14, %v1569_v6, %v1322_v7  ;;  %1339 = vrot.lane.b32.xlu1 %v3631_v10, %s3080_s18  ;;  %v972_v7 = vshrl.u32 %v863_v33, 16 }
 0x1aa   : > { %1242 = vrot.lane.b32.xlu0 %v3631_v10, %s3077_s27  ;;  %v1635_v23 = vsel %vm1629_vm15, %v1602_v42, %v1355_v19  ;;  %v1430_v42 = vsel %vm1415_vm9, %v3372_v21, %v3578_v24  ;;  %v702_v24 = vpop.f32.mrf.mxu0 }
 0x1ab   : > { %v1225_v18 = vpop.permute.xlu1 %1224  ;;  %v747_v16 = vmax.f32 %v702_v24, 0.0 }
 0x1ac   : > { %v1388_v28 = vpop.permute.xlu0 %1387  ;;  %v1505_v13 = vsel %vm1497_vm11, %v1472_v17, %v1225_v18  ;;  %v974_v18 = vrot.slane %v972_v7, 7 }
 0x1ad   : > { %v1668_v25 = vsel %vm1662_vm2, %v1635_v23, %v1388_v28  ;;  %1196 = vrot.lane.b32.xlu1 %v1101_v4, %s3075_s25  ;;  %v1538_v30 = vsel %vm1530_vm12, %v1505_v13, %v3564_v2 }
 0x1ae   : > { %2789 = vmatprep.mubr.msk.bf16.mxu1 %vm1731_vm3, %v1668_v25  ;;  %1308 = vrot.lane.b32.xlu0 %v1101_v4, %s3078_s28  ;;  %v975_v4 = vshll.u32 %v863_v33, 16 }
 0x1af   : > { %v1291_v19 = vpop.permute.xlu1 %1290 }
 0x1b0   : > { %v1179_v34 = vpop.permute.xlu0 %1178  ;;  %v1571_v35 = vsel %vm1563_vm13, %v1538_v30, %v1291_v19  ;;  %v1061_v11 = vrot.slane %v975_v4, 1 }
 0x1b1   : > { %v1604_v43 = vsel %vm1596_vm14, %v1571_v35, %v1324_v38  ;;  %1376 = vrot.lane.b32.xlu1 %v863_v33, %s3076_s26  ;;  %v3671_v38 = vsel %vm3268_vm7, 0, %v956_v14  ;;  %v1474_v15 = vsel %vm1464_vm10, %v1430_v42, %v1179_v34  ;;  %v748_v34 = vmax.f32 %v2773_v50, 0.0  ;;  %v2977_v35 = vld [vmem:[%s4189_s2] ss:$0 sm:$0xff] }
 0x1b2   : > { %1279 = vrot.lane.b32.xlu0 %v863_v33, %s3074_s24  ;;  %v1637_v56 = vsel %vm1629_vm15, %v1604_v43, %v3512_v26  ;;  %v786_v26 = vmul.f32 %v3239_v22, %v743_v49  ;;  %v1507_v23 = vsel %vm1497_vm11, %v1474_v15, %v3589_v40  ;;  %v1062_v21 = vor.u32 %v1061_v11, %v972_v7 }
 0x1b3   : > { %v3661_v57 = vpop.permute.xlu1 %1261  ;;  %v1670_v2 = vsel %vm1662_vm2, %v1637_v56, %v3580_v58  ;;  %v1540_v36 = vsel %vm1530_vm12, %v1507_v23, %v3514_v27  ;;  %v789_v43 = vmul.f32 %v2977_v35, %v746_v32  ;;  %v790_v56 = vmul.f32 %v2977_v35, %v747_v16 }
 0x1b4   : > { %v3665_v47 = vpop.permute.xlu0 %1358  ;;  %2790 = vmatmul.mubr.msk.bf16.gmra.mxu1 %vm1731_vm3, %v1670_v2  ;;  %v829_v0 = vadd.f32 %v3246_v29, %v786_v26  ;;  %v1103_v40 = vsel %vm3258_vm4, %v1062_v21, 0  ;;  %v1573_v27 = vsel %vm1563_vm13, %v1540_v36, %v3603_v55  ;;  %v791_v26 = vmul.f32 %v2977_v35, %v748_v34 }
 0x1b5   : > { %1152 = vrot.lane.b32.xlu1 %v863_v33, %s4209_s23  ;;  %v977_v33 = vor.u32 %v975_v4, %v974_v18  ;;  %v792_v9 = vmul.f32 %v2977_v35, %v749_v37 }
 0x1b6   : > { %1337 = vrot.lane.b32.xlu0 %v3671_v38, %s3080_s18  ;;  %v862_v17 = vpack.c.bf16 %v829_v0, %v828_v63 }
 0x1b7   : > { %v3677_v58 = vpop.permute.xlu1 %1134  ;;  %v3726_v2 = vsel %vm3268_vm7, 0, %v977_v33 }
 0x1b8   : > { %v3679_v61 = vpop.permute.xlu0 %1393  ;;  %v965_v28 = vshrl.u32 %v862_v17, 16  ;;  %v968_v19 = vshll.u32 %v862_v17, 16 }
 0x1b9   : > { %1240 = vrot.lane.b32.xlu1 %v3671_v38, %s3077_s27 }
 0x1ba   : > { %1403 = vrot.lane.b32.xlu0 %v1100_v20, %s4210_s20  ;;  %v967_v30 = vrot.slane %v965_v28, 7  ;;  %v1059_v50 = vrot.slane %v968_v19, 1 }
 0x1bb   : > { %v3688_v22 = vpop.permute.xlu1 %1327 }
 0x1bc   : > { %v3690_v6 = vpop.permute.xlu0 %1230  ;;  %v970_v55 = vor.u32 %v968_v19, %v967_v30 }
 0x1bd   : > { %1306 = vrot.lane.b32.xlu1 %v1100_v20, %s3078_s28 }
 0x1be   : > { %1194 = vrot.lane.b32.xlu0 %v1100_v20, %s3075_s25  ;;  %v2978_v20 = vld [vmem:[%s4190_s3] ss:$0 sm:$0xff] }
 0x1bf   : > { %v3698_v29 = vpop.permute.xlu1 %1184  ;;  %v832_v62 = vadd.f32 %v2978_v20, %v789_v43  ;;  %v833_v39 = vadd.f32 %v2978_v20, %v790_v56  ;;  %v834_v15 = vadd.f32 %v2978_v20, %v791_v26  ;;  %v835_v18 = vadd.f32 %v2978_v20, %v792_v9  ;;  %v1977_v56 = vld [vmem:[%s4192_s5] sm:$0xf] }
 0x1c0   : > { %v3700_v41 = vpop.permute.xlu0 %1296  ;;  %2887 = vmatprep.subr.msk.bf16.mxu0 %vm1764_vm8, %v1977_v56 }
 0x1c1   : > { %1277 = vrot.lane.b32.xlu1 %v862_v17, %s3074_s24  ;;  %v864_v23 = vpack.c.bf16 %v833_v39, %v832_v62  ;;  %v846_v16 = vmul.f32 0.0, %v834_v15  ;;  %v847_v33 = vmul.f32 0.0, %v835_v18 }
 0x1c2   : > { %1374 = vrot.lane.b32.xlu0 %v862_v17, %s3076_s26 }
 0x1c3   : > { %v3706_v13 = vpop.permute.xlu1 %1364  ;;  %v865_v19 = vpack.c.bf16 %v847_v33, %v846_v16 }
 0x1c4   : > { %v3708_v25 = vpop.permute.xlu0 %1267 }
 0x1c5   : > { %1150 = vrot.lane.b32.xlu1 %v862_v17, %s4209_s23  ;;  %v1060_v17 = vor.u32 %v1059_v50, %v965_v28  ;;  %v986_v37 = vshrl.u32 %v865_v19, 16  ;;  %v989_v20 = vshll.u32 %v865_v19, 16 }
 0x1c6   : > { %1409 = vrot.lane.b32.xlu0 %v1103_v40, %s4210_s20 }
 0x1c7   : > { %v3719_v14 = vpop.permute.xlu1 %1140  ;;  %v988_v26 = vrot.slane %v986_v37, 7 }
 0x1c8   : > { %v1326_v45 = vpop.permute.xlu0 %1325 }
 0x1c9   : > { %v1606_v49 = vsel %vm1596_vm14, %v1573_v27, %v1326_v45  ;;  %1343 = vrot.lane.b32.xlu1 %v3726_v2, %s3080_s18 }
 0x1ca   : > { %1246 = vrot.lane.b32.xlu0 %v3726_v2, %s3077_s27  ;;  %v1639_v63 = vsel %vm1629_vm15, %v1606_v49, %v3665_v47  ;;  %v3751_v47 = vsel %vm3268_vm7, 0, %v970_v55  ;;  %v1436_v49 = vsel %vm1415_vm9, %v3412_v60, %v3677_v58  ;;  %v2034_v55 = vsel %vm1764_vm8, %v1977_v56, 0 }
 0x1cb   : > { %v1229_v4 = vpop.permute.xlu1 %1228  ;;  %2818 = vmatpush3.bf16.msra.mxu0 %v2034_v55 }
 0x1cc   : > { %v1392_v0 = vpop.permute.xlu0 %1391  ;;  %v1509_v7 = vsel %vm1497_vm11, %v1476_v59, %v1229_v4  ;;  %v2197_v4 = vld [vmem:[%s4194_s7] sm:$0x3] }
 0x1cd   : > { %v1672_v42 = vsel %vm1662_vm2, %v1639_v63, %v1392_v0  ;;  %1200 = vrot.lane.b32.xlu1 %v1103_v40, %s3075_s25  ;;  %v1542_v53 = vsel %vm1530_vm12, %v1509_v7, %v3661_v57  ;;  %2888 = vmatprep.subr.msk.bf16.mxu1 %vm533_vm0, %v2197_v4  ;;  %v2206_v63 = vsel %vm533_vm0, %v2197_v4, 0  ;;  %v991_v7 = vor.u32 %v989_v20, %v988_v26 }
 0x1ce   : > { %2793 = vmatprep.mubr.msk.bf16.mxu1 %vm1731_vm3, %v1672_v42  ;;  %1312 = vrot.lane.b32.xlu0 %v1103_v40, %s3078_s28  ;;  %v979_v40 = vshrl.u32 %v864_v23, 16  ;;  %v1065_v42 = vrot.slane %v989_v20, 1 }
 0x1cf   : > { %v1295_v11 = vpop.permute.xlu1 %1294  ;;  %2852 = vmatpush3.bf16.msra.mxu1 %v2206_v63  ;;  %v1030_v15 = vsel %vm3268_vm7, 0, %v991_v7 }
 0x1d0   : > { %v1183_v12 = vpop.permute.xlu0 %1182  ;;  %v1575_v21 = vsel %vm1563_vm13, %v1542_v53, %v1295_v11  ;;  %v981_v34 = vrot.slane %v979_v40, 7  ;;  %v1066_v18 = vor.u32 %v1065_v42, %v986_v37 }
 0x1d1   : > { %v1608_v24 = vsel %vm1596_vm14, %v1575_v21, %v3688_v22  ;;  %1244 = vrot.lane.b32.xlu1 %v3751_v47, %s3077_s27  ;;  %v1102_v22 = vsel %vm3258_vm4, %v1060_v17, 0  ;;  %v1478_v48 = vsel %vm1464_vm10, %v1436_v49, %v1183_v12 }
 0x1d2   : > { %1341 = vrot.lane.b32.xlu0 %v3751_v47, %s3080_s18  ;;  %v1641_v57 = vsel %vm1629_vm15, %v1608_v24, %v3611_v5  ;;  %v1511_v62 = vsel %vm1497_vm11, %v1478_v48, %v3690_v6  ;;  %v1105_v1 = vsel %vm3258_vm4, %v1066_v18, 0 }
 0x1d3   : > { %v3762_v32 = vpop.permute.xlu1 %1265  ;;  %v1674_v28 = vsel %vm1662_vm2, %v1641_v57, %v3679_v61  ;;  %v982_v61 = vshll.u32 %v864_v23, 16  ;;  %v1544_v39 = vsel %vm1530_vm12, %v1511_v62, %v3613_v8  ;;  %v1439_v8 = vsel %vm1415_vm9, %v3398_v46, %v3624_v51 }
 0x1d4   : > { %v1363_v36 = vpop.permute.xlu0 %1362  ;;  %2794 = vmatmul.mubr.msk.bf16.gmra.mxu1 %vm1731_vm3, %v1674_v28  ;;  %v1577_v11 = vsel %vm1563_vm13, %v1544_v39, %v3700_v41 }
 0x1d5   : > { %1310 = vrot.lane.b32.xlu1 %v1102_v22, %s3078_s28  ;;  %v984_v27 = vor.u32 %v982_v61, %v981_v34  ;;  %v1063_v45 = vrot.slane %v982_v61, 1 }
 0x1d6   : > { %1407 = vrot.lane.b32.xlu0 %v1102_v22, %s4210_s20 }
 0x1d7   : > { %v3771_v30 = vpop.permute.xlu1 %1138  ;;  %v1029_v60 = vsel %vm3268_vm7, 0, %v984_v27  ;;  %v1064_v58 = vor.u32 %v1063_v45, %v979_v40 }
 0x1d8   : > { %v3773_v5 = vpop.permute.xlu0 %1397  ;;  %v1442_v27 = vsel %vm1415_vm9, %v3472_v52, %v3771_v30  ;;  %v1445_v30 = vsel %vm1415_vm9, %v3446_v31, %v3719_v14 }
 0x1d9   : > { %1281 = vrot.lane.b32.xlu1 %v864_v23, %s3074_s24  ;;  %v1104_v6 = vsel %vm3258_vm4, %v1064_v58, 0 }
 0x1da   : > { %1198 = vrot.lane.b32.xlu0 %v1102_v22, %s3075_s25 }
 0x1db   : > { %v1332_v35 = vpop.permute.xlu1 %1331 }
 0x1dc   : > { %v3777_v43 = vpop.permute.xlu0 %1234 }
 0x1dd   : > { %1380 = vrot.lane.b32.xlu1 %v865_v19, %s3076_s26 }
 0x1de   : > { %1378 = vrot.lane.b32.xlu0 %v864_v23, %s3076_s26  ;;  %v1480_v23 = vsel %vm1464_vm10, %v1439_v8, %v3698_v29  ;;  %s4131_s26 = scalar_lea.hbm %s4196_s9, %s2662_s16 }
 0x1df   : > { %v3790_v50 = vpop.permute.xlu1 %1188 }
 0x1e0   : > { %v1301_v59 = vpop.permute.xlu0 %1300 }
 0x1e1   : > { %1248 = vrot.lane.b32.xlu1 %v1029_v60, %s3077_s27  ;;  %s337_s27 = sand.u32 1, %s3055_s10  }
 0x1e2   : > { %1345 = vrot.lane.b32.xlu0 %v1029_v60, %s3080_s18  ;;  %s4141_s12 = scalar_lea.sflag [#allocation3], %s337_s27 }
 0x1e3   : > { %v3803_v0 = vpop.permute.xlu1 %1368 }
 0x1e4   : > { %v3805_v9 = vpop.permute.xlu0 %1271 }
 0x1e5   : > { %1314 = vrot.lane.b32.xlu1 %v1104_v6, %s3078_s28 }
 0x1e6   : > { %1411 = vrot.lane.b32.xlu0 %v1104_v6, %s4210_s20 }
 0x1e7   : > { %v3813_v53 = vpop.permute.xlu1 %1144 }
 0x1e8   : > { %v1330_v12 = vpop.permute.xlu0 %1329 }
 0x1e9   : > { %v1610_v17 = vsel %vm1596_vm14, %v1577_v11, %v1330_v12  ;;  %1347 = vrot.lane.b32.xlu1 %v1030_v15, %s3080_s18  ;;  %s3081_s18 = smov [#allocation2]  }
 0x1ea   : > { %v1643_v24 = vsel %vm1629_vm15, %v1610_v17, %v1363_v36 }
 0x1eb   : > { %v1233_v21 = vpop.permute.xlu1 %1232 }
 0x1ec   : > { %v1396_v41 = vpop.permute.xlu0 %1395  ;;  %v1513_v57 = vsel %vm1497_vm11, %v1480_v23, %v1233_v21 }
 0x1ed   : > { %v1676_v28 = vsel %vm1662_vm2, %v1643_v24, %v1396_v41  ;;  %1413 = vrot.lane.b32.xlu1 %v1105_v1, %s4210_s20  ;;  %v1546_v46 = vsel %vm1530_vm12, %v1513_v57, %v3762_v32  ;;  %s2562_s20 = sshll.u32 %s337_s27, 8 }
 0x1ee   : > { %2797 = vmatprep.mubr.msk.bf16.mxu1 %vm1731_vm3, %v1676_v28  ;;  %s4007_s15 = scalar_lea.vmem [#allocation2], %s2562_s20  ;;  %s2999_s20 = sshll.u32 %s3081_s18, 4  ;;  %s3000_s20 = int_to_ptr.vmem [resolvable:$false] %s2999_s20 }
 0x1ef   : > { %v1299_v51 = vpop.permute.xlu1 %1298  ;;  %s2482_s24 = sshll.u32 %s4007_s15, 4  ;;  %s3001_s16 = scalar_lea.vmem %s3000_s20, 8192  ;;  %s4135_s24 = int_to_ptr.vmem [resolvable:$true] %s2482_s24 }
 0x1f0   : > { %v1187_v29 = vpop.permute.xlu0 %1186  ;;  %v1579_v16 = vsel %vm1563_vm13, %v1546_v46, %v1299_v51  ;;  %s2995_s28 = scalar_lea.vmem %s4135_s24, 4096  ;;  %p3002_p1 = scmp.lt.s32.totalorder %s4135_s24, %s3000_s20 }
 0x1f1   : > { %v1612_v36 = vsel %vm1596_vm14, %v1579_v16, %v1332_v35  ;;  %v1482_v35 = vsel %vm1464_vm10, %v1442_v27, %v1187_v29  ;;  %p2996_p12 = scmp.ne.s32.totalorder %s4135_s24, %s2995_s28  ;;  %p3003_p2 = scmp.lt.s32.totalorder %s3001_s16, %s2995_s28 }
 0x1f2   : > { %v1645_v33 = vsel %vm1629_vm15, %v1612_v36, %v3706_v13  ;;  %v1515_v13 = vsel %vm1497_vm11, %v1482_v35, %v3777_v43  ;;  %v1484_v43 = vsel %vm1464_vm10, %v1445_v30, %v3790_v50 }
 0x1f3   : > { %v1270_v22 = vpop.permute.xlu1 %1269  ;;  %v1678_v54 = vsel %vm1662_vm2, %v1645_v33, %v3773_v5  ;;  %v1548_v56 = vsel %vm1530_vm12, %v1515_v13, %v3708_v25  ;;  %p2997_p13 = pnand %p2996_p12, %p3173_p4  ;;  %p3004_p3 = por %p3003_p2, %p3002_p1 }
 0x1f4   : > { %v1367_v40 = vpop.permute.xlu0 %1366  ;;  %2798 = vmatmul.mubr.msk.bf16.gmra.mxu1 %vm1731_vm3, %v1678_v54  ;;  %v1581_v55 = vsel %vm1563_vm13, %v1548_v56, %v1301_v59 }
 0x1f5   : > { %p2998_p0 = pneg %p2997_p13 }
 0x1f7   : > { %v1143_v19 = vpop.permute.xlu1 %1142  ;;  %p3005_p5 = pnand %p3004_p3, %p2998_p0 }
 0x1f8   : > { %v1402_v34 = vpop.permute.xlu0 %1401  ;;  %v1448_v15 = vsel %vm1415_vm9, %v3572_v3, %v1143_v19  ;;  %v1451_v3 = vsel %vm1415_vm9, %v3532_v44, %v3813_v53 }
 0x1fb   : > { %v1336_v61 = vpop.permute.xlu1 %1335 }
 0x1fc   : > { %v1239_v32 = vpop.permute.xlu0 %1238 }
 0x1ff   : > { %v1193_v45 = vpop.permute.xlu1 %1192 }
 0x200   : > { %v1305_v37 = vpop.permute.xlu0 %1304  ;;  %v1488_v51 = vsel %vm1464_vm10, %v1451_v3, %v1193_v45 }
 0x203   : > { %v1373_v49 = vpop.permute.xlu1 %1372 }
 0x204   : > { %v3848_v5 = vpop.permute.xlu0 %1275 }
 0x207   : > { %v3852_v48 = vpop.permute.xlu1 %1148 }
 0x208   : > { %v1334_v60 = vpop.permute.xlu0 %1333  ;;  %v1457_v30 = vsel %vm1415_vm9, %v3631_v10, %v3852_v48 }
 0x209   : > { %v1614_v52 = vsel %vm1596_vm14, %v1581_v55, %v1334_v60 }
 0x20a   : > { %v1647_v20 = vsel %vm1629_vm15, %v1614_v52, %v1367_v40 }
 0x20b   : > { %v1237_v58 = vpop.permute.xlu1 %1236 }
 0x20c   : > { %v1517_v26 = vsel %vm1497_vm11, %v1484_v43, %v1237_v58  ;;  %v1400_v25 = vpop.permute.xlu0 %1399 }
 0x20d   : > { %v1680_v62 = vsel %vm1662_vm2, %v1647_v20, %v1400_v25  ;;  %v1550_v59 = vsel %vm1530_vm12, %v1517_v26, %v1270_v22 }
 0x20e   : > { %2801 = vmatprep.mubr.msk.bf16.mxu1 %vm1731_vm3, %v1680_v62 }
 0x20f   : > { %v1303_v4 = vpop.permute.xlu1 %1302 }
 0x210   : > { %v1583_v63 = vsel %vm1563_vm13, %v1550_v59, %v1303_v4  ;;  %v1191_v6 = vpop.permute.xlu0 %1190 }
 0x211   : > { %v1616_v31 = vsel %vm1596_vm14, %v1583_v63, %v1336_v61  ;;  %v1486_v18 = vsel %vm1464_vm10, %v1448_v15, %v1191_v6 }
 0x212   : > { %v1649_v14 = vsel %vm1629_vm15, %v1616_v31, %v3803_v0  ;;  %v1519_v21 = vsel %vm1497_vm11, %v1486_v18, %v1239_v32 }
 0x213   : > { %v1274_v50 = vpop.permute.xlu1 %1273  ;;  %v1682_v39 = vsel %vm1662_vm2, %v1649_v14, %v1402_v34  ;;  %v1552_v41 = vsel %vm1530_vm12, %v1519_v21, %v3805_v9 }
 0x214   : > { %2802 = vmatmul.mubr.msk.bf16.gmra.mxu1 %vm1731_vm3, %v1682_v39  ;;  %v1371_v7 = vpop.permute.xlu0 %1370  ;;  %v1585_v28 = vsel %vm1563_vm13, %v1552_v41, %v1305_v37 }
 0x217   : > { %v1147_v42 = vpop.permute.xlu1 %1146 }
 0x218   : > { %v1406_v11 = vpop.permute.xlu0 %1405  ;;  %v1454_v45 = vsel %vm1415_vm9, %v3671_v38, %v1147_v42 }
 0x21b   : > { %v1340_v12 = vpop.permute.xlu1 %1339 }
 0x21c   : > { %v1243_v17 = vpop.permute.xlu0 %1242 }
 0x21f   : > { %v1197_v8 = vpop.permute.xlu1 %1196 }
 0x220   : > { %v1309_v23 = vpop.permute.xlu0 %1308  ;;  %v1492_v43 = vsel %vm1464_vm10, %v1457_v30, %v1197_v8 }
 0x223   : > { %v1377_v0 = vpop.permute.xlu1 %1376 }
 0x224   : > { %v1280_v24 = vpop.permute.xlu0 %1279 }
 0x227   : > { %v3878_v57 = vpop.permute.xlu1 %1152 }
 0x228   : > { %v1338_v1 = vpop.permute.xlu0 %1337 }
 0x229   : > { %v1618_v46 = vsel %vm1596_vm14, %v1585_v28, %v1338_v1 }
 0x22a   : > { %v1651_v36 = vsel %vm1629_vm15, %v1618_v46, %v1371_v7 }
 0x22b   : > { %v1241_v29 = vpop.permute.xlu1 %1240 }
 0x22c   : > { %v1521_v16 = vsel %vm1497_vm11, %v1488_v51, %v1241_v29  ;;  %v1404_v33 = vpop.permute.xlu0 %1403 }
 0x22d   : > { %v1684_v9 = vsel %vm1662_vm2, %v1651_v36, %v1404_v33  ;;  %v1554_v22 = vsel %vm1530_vm12, %v1521_v16, %v1274_v50 }
 0x22e   : > { %2805 = vmatprep.mubr.msk.bf16.mxu1 %vm1731_vm3, %v1684_v9 }
 0x22f   : > { %v1307_v54 = vpop.permute.xlu1 %1306 }
 0x230   : > { %v1587_v40 = vsel %vm1563_vm13, %v1554_v22, %v1307_v54  ;;  %v1195_v19 = vpop.permute.xlu0 %1194 }
 0x231   : > { %v1620_v44 = vsel %vm1596_vm14, %v1587_v40, %v1340_v12  ;;  %v1490_v37 = vsel %vm1464_vm10, %v1454_v45, %v1195_v19  ;;  %v2983_v45 = vld [vmem:[%s3198_s29 + $0x28] sm:$0xff]  }
 0x232   : > { %v1653_v53 = vsel %vm1629_vm15, %v1620_v44, %v1373_v49  ;;  %v1523_v55 = vsel %vm1497_vm11, %v1490_v37, %v1243_v17 }
 0x233   : > { %v1278_v34 = vpop.permute.xlu1 %1277  ;;  %v1686_v61 = vsel %vm1662_vm2, %v1653_v53, %v1406_v11  ;;  %v1556_v49 = vsel %vm1530_vm12, %v1523_v55, %v3848_v5  ;;  %v2984_v55 = vld [vmem:[%s3198_s29 + $0x30] sm:$0xff]  }
 0x234   : > { %2806 = vmatmul.mubr.msk.bf16.gmra.mxu1 %vm1731_vm3, %v1686_v61  ;;  %v1375_v32 = vpop.permute.xlu0 %1374  ;;  %v1589_v26 = vsel %vm1563_vm13, %v1556_v49, %v1309_v23  ;;  %v2979_v61 = vld [vmem:[%s3198_s29 + $0x8] sm:$0xff]   ;;  %v2985_v49 = vld [vmem:[%s3198_s29 + $0x38] sm:$0xff]  }
 0x237   : > { %v1151_v27 = vpop.permute.xlu1 %1150 }
 0x238   : > { %v1410_v35 = vpop.permute.xlu0 %1409  ;;  %v1460_v50 = vsel %vm1415_vm9, %v3751_v47, %v1151_v27  ;;  %v1463_v47 = vsel %vm1415_vm9, %v3726_v2, %v3878_v57  ;;  %v2981_v27 = vld [vmem:[%s3198_s29 + $0x18] sm:$0xff]  }
 0x23b   : > { %v1344_v13 = vpop.permute.xlu1 %1343 }
 0x23c   : > { %v1247_v56 = vpop.permute.xlu0 %1246 }
 0x23f   : > { %v1201_v60 = vpop.permute.xlu1 %1200 }
 0x240   : > { %v1313_v52 = vpop.permute.xlu0 %1312 }
 0x243   : > { %v1245_v58 = vpop.permute.xlu1 %1244 }
 0x244   : > { %v1525_v38 = vsel %vm1497_vm11, %v1492_v43, %v1245_v58  ;;  %v1342_v20 = vpop.permute.xlu0 %1341 }
 0x245   : > { %v1622_v25 = vsel %vm1596_vm14, %v1589_v26, %v1342_v20  ;;  %v1558_v62 = vsel %vm1530_vm12, %v1525_v38, %v1278_v34  ;;  %v2986_v20 = vld [vmem:[%s3198_s29 + $0x40] sm:$0xff]  }
 0x246   : > { %v1655_v5 = vsel %vm1629_vm15, %v1622_v25, %v1375_v32  ;;  %v2980_v32 = vld [vmem:[%s3198_s29 + $0x10] sm:$0xff]   ;;  %v2987_v25 = vld [vmem:[%s3198_s29 + $0x48] sm:$0xff]  }
 0x247   : > { %v1311_v59 = vpop.permute.xlu1 %1310 }
 0x248   : > { %v1591_v4 = vsel %vm1563_vm13, %v1558_v62, %v1311_v59  ;;  %v1408_v63 = vpop.permute.xlu0 %1407  ;;  %v2988_v62 = vld [vmem:[%s3198_s29 + $0x50] sm:$0xff]   ;;  %v2989_v59 = vld [vmem:[%s3198_s29 + $0x58] sm:$0xff]  }
 0x249   : > { %v1624_v10 = vsel %vm1596_vm14, %v1591_v4, %v1344_v13  ;;  %v1688_v48 = vsel %vm1662_vm2, %v1655_v5, %v1408_v63  ;;  %v2990_v4 = vld [vmem:[%s3198_s29 + $0x60] sm:$0xff]   ;;  %v2991_v5 = vld [vmem:[%s3198_s29 + $0x68] sm:$0xff]  }
 0x24a   : > { %2809 = vmatprep.mubr.msk.bf16.mxu1 %vm1731_vm3, %v1688_v48  ;;  %v1657_v6 = vsel %vm1629_vm15, %v1624_v10, %v1377_v0  ;;  %v1496_v0 = vsel %vm1464_vm10, %v1463_v47, %v1201_v60 }
 0x24b   : > { %v1282_v31 = vpop.permute.xlu1 %1281  ;;  %v1690_v14 = vsel %vm1662_vm2, %v1657_v6, %v1410_v35  ;;  %v2982_v35 = vld [vmem:[%s3198_s29 + $0x20] sm:$0xff]   ;;  %v2992_v6 = vld [vmem:[%s3198_s29 + $0x70] sm:$0xff]  }
 0x24c   : > { %v1199_v39 = vpop.permute.xlu0 %1198  ;;  %2810 = vmatmul.mubr.msk.bf16.gmra.mxu1 %vm1731_vm3, %v1690_v14 }
 0x24d   : > { %v1494_v7 = vsel %vm1464_vm10, %v1460_v50, %v1199_v39  ;;  %v2993_v50 = vld [vmem:[%s3198_s29 + $0x78] sm:$0xff]  }
 0x24e   : > { %v1527_v42 = vsel %vm1497_vm11, %v1494_v7, %v1247_v56 }
 0x24f   : > { %v1381_v11 = vpop.permute.xlu1 %1380  ;;  %v1560_v17 = vsel %vm1530_vm12, %v1527_v42, %v1280_v24 }
 0x250   : > { %v1379_v12 = vpop.permute.xlu0 %1378  ;;  %v1593_v8 = vsel %vm1563_vm13, %v1560_v17, %v1313_v52  ;;  %v2994_v17 = vld [vmem:[%s3198_s29 + $0x80] sm:$0xff]  }
 0x253   : > { %v1249_v15 = vpop.permute.xlu1 %1248 }
 0x254   : > { %v2787_v18 = vpop.f32.mrf.mxu1  ;;  %v1346_v23 = vpop.permute.xlu0 %1345  ;;  %v1529_v28 = vsel %vm1497_vm11, %v1496_v0, %v1249_v15 }
 0x255   : > { %v1626_v21 = vsel %vm1596_vm14, %v1593_v8, %v1346_v23  ;;  %v1562_v29 = vsel %vm1530_vm12, %v1529_v28, %v1282_v31  ;;  %v1931_v22 = vmax.f32 %v2787_v18, 0.0 }
 0x256   : > { %v1802_v41 = vpop.f32.mrf.mxu1  ;;  %v1659_v24 = vsel %vm1629_vm15, %v1626_v21, %v1379_v12 }
 0x257   : > { %v1315_v1 = vpop.permute.xlu1 %1314  ;;  %v1929_v2 = vmax.f32 %v1802_v41, 0.0 }
 0x258   : > { %v2788_v46 = vpop.f32.mrf.mxu1  ;;  %v1412_v3 = vpop.permute.xlu0 %1411  ;;  %v1595_v57 = vsel %vm1563_vm13, %v1562_v29, %v1315_v1 }
 0x259   : > { %v1692_v51 = vsel %vm1662_vm2, %v1659_v24, %v1412_v3  ;;  %v1932_v16 = vmax.f32 %v2788_v46, 0.0 }
 0x25a   : > { %v1805_v36 = vpop.f32.mrf.mxu1  ;;  %2813 = vmatprep.mubr.msk.bf16.mxu1 %vm1731_vm3, %v1692_v51 }
 0x25b   : > { %v1930_v33 = vmax.f32 %v1805_v36, 0.0  ;;  %v1348_v9 = vpop.permute.xlu1 %1347  ;;  %v1962_v19 = vpack.c.bf16 %v1932_v16, %v1931_v22 }
 0x25c   : > { %v1628_v54 = vsel %vm1596_vm14, %v1595_v57, %v1348_v9 }
 0x25d   : > { %v1961_v40 = vpack.c.bf16 %v1930_v33, %v1929_v2  ;;  %v1661_v44 = vsel %vm1629_vm15, %v1628_v54, %v1381_v11 }
 0x25f   : > { %2819 = vmatprep.mubr.msk.bf16.mxu0 %vm1415_vm9, %v1961_v40  ;;  %v1414_v53 = vpop.permute.xlu1 %1413 }
 0x260   : > { %v1694_v34 = vsel %vm1662_vm2, %v1661_v44, %v1414_v53  ;;  %2820 = vmatmul.mubr.msk.bf16.vlgmr.msra.gmra.mxu0 %vm1415_vm9, %v1962_v19 }
 0x261   : > { %2814 = vmatmul.mubr.msk.bf16.gmra.mxu1 %vm1731_vm3, %v1694_v34 }
 0x262   : > { %2853 = vmatprep.mubr.msk.bf16.mxu1 %vm478_vm1, %v2979_v61 }
 0x269   : > { %2854 = vmatmul.mubr.msk.bf16.vlgmr.msra.gmra.mxu1 %vm478_vm1, %v2980_v32 }
 0x26a   : > { %2857 = vmatprep.mubr.msk.bf16.mxu1 %vm478_vm1, %v2981_v27 }
 0x271   : > { %2858 = vmatmul.mubr.msk.bf16.gmra.mxu1 %vm478_vm1, %v2982_v35 }
 0x272   : > { %2861 = vmatprep.mubr.msk.bf16.mxu1 %vm478_vm1, %v2983_v45 }
 0x274   : > { %v2791_v37 = vpop.f32.mrf.mxu1 }
 0x275   : > { %v1935_v58 = vmax.f32 %v2791_v37, 0.0 }
 0x276   : > { %v1818_v13 = vpop.f32.mrf.mxu1 }
 0x277   : > { %v1933_v30 = vmax.f32 %v1818_v13, 0.0 }
 0x278   : > { %v2792_v56 = vpop.f32.mrf.mxu1 }
 0x279   : > { %2862 = vmatmul.mubr.msk.bf16.gmra.mxu1 %vm478_vm1, %v2984_v55  ;;  %v1936_v60 = vmax.f32 %v2792_v56, 0.0 }
 0x27a   : > { %v1821_v52 = vpop.f32.mrf.mxu1  ;;  %2865 = vmatprep.mubr.msk.bf16.mxu1 %vm478_vm1, %v2985_v49 }
 0x27b   : > { %v1934_v43 = vmax.f32 %v1821_v52, 0.0  ;;  %v1964_v26 = vpack.c.bf16 %v1936_v60, %v1935_v58 }
 0x27d   : > { %v1963_v38 = vpack.c.bf16 %v1934_v43, %v1933_v30 }
 0x27f   : > { %2823 = vmatprep.mubr.msk.bf16.mxu0 %vm1415_vm9, %v1963_v38 }
 0x280   : > { %2824 = vmatmul.mubr.msk.bf16.gmra.mxu0 %vm1415_vm9, %v1964_v26 }
 0x281   : > { %2866 = vmatmul.mubr.msk.bf16.gmra.mxu1 %vm478_vm1, %v2986_v20  ;;  %v3988_v20 = vld [vmem:[%s4193_s6] ss:$0 sm:$0xff] }
 0x282   : > { %2869 = vmatprep.mubr.msk.bf16.mxu1 %vm478_vm1, %v2987_v25 }
 0x289   : > { %2870 = vmatmul.mubr.msk.bf16.gmra.mxu1 %vm478_vm1, %v2988_v62 }
 0x28a   : > { %2873 = vmatprep.mubr.msk.bf16.mxu1 %vm478_vm1, %v2989_v59  ;;  %v3994_v59 = vld [vmem:[%s4195_s8] ss:$0 sm:$0xff] }
 0x291   : > { %2874 = vmatmul.mubr.msk.bf16.gmra.mxu1 %vm478_vm1, %v2990_v4 }
 0x292   : > { %2877 = vmatprep.mubr.msk.bf16.mxu1 %vm478_vm1, %v2991_v5 }
 0x294   : > { %v2795_v63 = vpop.f32.mrf.mxu1 }
 0x295   : > { %v1939_v42 = vmax.f32 %v2795_v63, 0.0 }
 0x296   : > { %v1834_v10 = vpop.f32.mrf.mxu1 }
 0x297   : > { %v1937_v39 = vmax.f32 %v1834_v10, 0.0 }
 0x298   : > { %v2796_v48 = vpop.f32.mrf.mxu1 }
 0x299   : > { %2878 = vmatmul.mubr.msk.bf16.gmra.mxu1 %vm478_vm1, %v2992_v6  ;;  %v1940_v31 = vmax.f32 %v2796_v48, 0.0 }
 0x29a   : > { %v1837_v14 = vpop.f32.mrf.mxu1  ;;  %2881 = vmatprep.mubr.msk.bf16.mxu1 %vm478_vm1, %v2993_v50 }
 0x29b   : > { %v1938_v7 = vmax.f32 %v1837_v14, 0.0  ;;  %v1966_v12 = vpack.c.bf16 %v1940_v31, %v1939_v42 }
 0x29d   : > { %v1965_v11 = vpack.c.bf16 %v1938_v7, %v1937_v39 }
 0x29f   : > { %2827 = vmatprep.mubr.msk.bf16.mxu0 %vm1415_vm9, %v1965_v11 }
 0x2a0   : > { %2828 = vmatmul.mubr.msk.bf16.gmra.mxu0 %vm1415_vm9, %v1966_v12 }
 0x2a1   : > { %2882 = vmatmul.mubr.msk.bf16.gmra.mxu1 %vm478_vm1, %v2994_v17 }
 0x2b4   : > { %v2799_v15 = vpop.f32.mrf.mxu1 }
 0x2b5   : > { %v1943_v41 = vmax.f32 %v2799_v15, 0.0 }
 0x2b6   : > { %v1850_v18 = vpop.f32.mrf.mxu1 }
 0x2b7   : > { %v1941_v21 = vmax.f32 %v1850_v18, 0.0 }
 0x2b8   : > { %v2800_v8 = vpop.f32.mrf.mxu1 }
 0x2b9   : > { %v1944_v23 = vmax.f32 %v2800_v8, 0.0 }
 0x2ba   : > { %v1853_v47 = vpop.f32.mrf.mxu1 }
 0x2bb   : > { %v1942_v0 = vmax.f32 %v1853_v47, 0.0  ;;  %v1968_v1 = vpack.c.bf16 %v1944_v23, %v1943_v41 }
 0x2bd   : > { %v1967_v28 = vpack.c.bf16 %v1942_v0, %v1941_v21 }
 0x2bf   : > { %2831 = vmatprep.mubr.msk.bf16.mxu0 %vm1415_vm9, %v1967_v28 }
 0x2c0   : > { %2832 = vmatmul.mubr.msk.bf16.gmra.mxu0 %vm1415_vm9, %v1968_v1 }
 0x2d4   : > { %v2803_v46 = vpop.f32.mrf.mxu1 }
 0x2d5   : > { %v1947_v2 = vmax.f32 %v2803_v46, 0.0 }
 0x2d6   : > { %v1866_v24 = vpop.f32.mrf.mxu1 }
 0x2d7   : > { %v1945_v16 = vmax.f32 %v1866_v24, 0.0 }
 0x2d8   : > { %v2804_v3 = vpop.f32.mrf.mxu1 }
 0x2d9   : > { %v1948_v51 = vmax.f32 %v2804_v3, 0.0 }
 0x2da   : > { %v1869_v29 = vpop.f32.mrf.mxu1 }
 0x2db   : > { %v1946_v36 = vmax.f32 %v1869_v29, 0.0  ;;  %v1970_v33 = vpack.c.bf16 %v1948_v51, %v1947_v2 }
 0x2dd   : > { %v1969_v57 = vpack.c.bf16 %v1946_v36, %v1945_v16 }
 0x2df   : > { %2835 = vmatprep.mubr.msk.bf16.mxu0 %vm1415_vm9, %v1969_v57 }
 0x2e0   : > { %2836 = vmatmul.mubr.msk.bf16.gmra.mxu0 %vm1415_vm9, %v1970_v33 }
 0x2f4   : > { %v2807_v9 = vpop.f32.mrf.mxu1 }
 0x2f5   : > { %v1951_v34 = vmax.f32 %v2807_v9, 0.0 }
 0x2f6   : > { %v1882_v22 = vpop.f32.mrf.mxu1 }
 0x2f7   : > { %v1949_v44 = vmax.f32 %v1882_v22, 0.0 }
 0x2f8   : > { %v2808_v54 = vpop.f32.mrf.mxu1 }
 0x2f9   : > { %v1952_v40 = vmax.f32 %v2808_v54, 0.0 }
 0x2fa   : > { %v1885_v19 = vpop.f32.mrf.mxu1 }
 0x2fb   : > { %v1950_v53 = vmax.f32 %v1885_v19, 0.0  ;;  %v1972_v32 = vpack.c.bf16 %v1952_v40, %v1951_v34 }
 0x2fd   : > { %v1971_v61 = vpack.c.bf16 %v1950_v53, %v1949_v44 }
 0x2ff   : > { %2839 = vmatprep.mubr.msk.bf16.mxu0 %vm1415_vm9, %v1971_v61 }
 0x300   : > { %2840 = vmatmul.mubr.msk.bf16.gmra.mxu0 %vm1415_vm9, %v1972_v32 }
 0x30c   : > { %v2811_v27 = vpop.f32.mrf.mxu1 }
 0x30d   : > { %v1955_v60 = vmax.f32 %v2811_v27, 0.0 }
 0x30e   : > { %v1898_v35 = vpop.f32.mrf.mxu1 }
 0x30f   : > { %v1953_v56 = vmax.f32 %v1898_v35, 0.0 }
 0x310   : > { %v2812_v45 = vpop.f32.mrf.mxu1 }
 0x311   : > { %v1956_v37 = vmax.f32 %v2812_v45, 0.0 }
 0x312   : > { %v1901_v13 = vpop.f32.mrf.mxu1 }
 0x313   : > { %v1954_v55 = vmax.f32 %v1901_v13, 0.0  ;;  %v1974_v49 = vpack.c.bf16 %v1956_v37, %v1955_v60 }
 0x315   : > { %v1973_v52 = vpack.c.bf16 %v1954_v55, %v1953_v56 }
 0x317   : > { %2843 = vmatprep.mubr.msk.bf16.mxu0 %vm1415_vm9, %v1973_v52 }
 0x318   : > { %2844 = vmatmul.mubr.msk.bf16.gmra.mxu0 %vm1415_vm9, %v1974_v49 }
 0x320   : > { %v2821_v30 = vpop.f32.mrf.mxu0 }
 0x321   : > { %v2815_v43 = vpop.f32.mrf.mxu1  ;;  %v2079_v6 = vadd.f32 %v2821_v30, %v3988_v20 }
 0x322   : > { %v2070_v38 = vpop.f32.mrf.mxu0  ;;  %v1959_v63 = vmax.f32 %v2815_v43, 0.0 }
 0x323   : > { %v1914_v58 = vpop.f32.mrf.mxu1  ;;  %v2071_v7 = vadd.f32 %v3988_v20, %v2070_v38 }
 0x324   : > { %v1957_v4 = vmax.f32 %v1914_v58, 0.0  ;;  %v2822_v10 = vpop.f32.mrf.mxu0 }
 0x325   : > { %v2816_v26 = vpop.f32.mrf.mxu1  ;;  %v2082_v15 = vadd.f32 %v2822_v10, %v3988_v20 }
 0x326   : > { %v1960_v25 = vmax.f32 %v2816_v26, 0.0  ;;  %v2073_v12 = vpop.f32.mrf.mxu0 }
 0x327   : > { %v1917_v62 = vpop.f32.mrf.mxu1  ;;  %v2074_v21 = vadd.f32 %v3988_v20, %v2073_v12 }
 0x328   : > { %v1958_v5 = vmax.f32 %v1917_v62, 0.0  ;;  %v1976_v50 = vpack.c.bf16 %v1960_v25, %v1959_v63 }
 0x329   : > { %v2855_v48 = vpop.f32.mrf.mxu1 }
 0x32a   : > { %v1975_v31 = vpack.c.bf16 %v1958_v5, %v1957_v4  ;;  %v2251_v14 = vadd.f32 %v2855_v48, %v3994_v59 }
 0x32b   : > { %v2242_v39 = vpop.f32.mrf.mxu1 }
 0x32c   : > { %v2371_v42 = vadd.f32 %v2251_v14, %v2079_v6  ;;  %v2243_v11 = vadd.f32 %v3994_v59, %v2242_v39  ;;  %2847 = vmatprep.mubr.msk.bf16.mxu0 %vm1415_vm9, %v1975_v31 }
 0x32d   : > { %2848 = vmatmul.mubr.msk.bf16.gmra.mxu0 %vm1415_vm9, %v1976_v50  ;;  %v2856_v17 = vpop.f32.mrf.mxu1 }
 0x32e   : > { %v2403_v18 = vmax.f32 %v2371_v42, 0.0  ;;  %v2369_v8 = vadd.f32 %v2243_v11, %v2071_v7  ;;  %v2254_v23 = vadd.f32 %v2856_v17, %v3994_v59 }
 0x32f   : > { %v2245_v47 = vpop.f32.mrf.mxu1 }
 0x330   : > { %2435 = vst.msk [vmem:[%s4007_s15 + $0x10] sm:$0xff] %vm1464_vm10, %v2403_v18  ;;  %v2401_v0 = vmax.f32 %v2369_v8, 0.0  ;;  %v2372_v41 = vadd.f32 %v2254_v23, %v2082_v15  ;;  %v2246_v28 = vadd.f32 %v3994_v59, %v2245_v47 }
 0x331   : > { %v2859_v3 = vpop.f32.mrf.mxu1 }
 0x332   : > { %2433 = vst.msk [vmem:[%s4007_s15] sm:$0xff] %vm1464_vm10, %v2401_v0  ;;  %v2404_v1 = vmax.f32 %v2372_v41, 0.0  ;;  %v2370_v46 = vadd.f32 %v2246_v28, %v2074_v21  ;;  %v2267_v16 = vadd.f32 %v2859_v3, %v3994_v59 }
 0x333   : > { %v2258_v51 = vpop.f32.mrf.mxu1 }
 0x334   : > { %2436 = vst.msk [vmem:[%s4007_s15 + $0x18] sm:$0xff] %vm1464_vm10, %v2404_v1  ;;  %v2402_v24 = vmax.f32 %v2370_v46, 0.0  ;;  %v2259_v57 = vadd.f32 %v3994_v59, %v2258_v51 }
 0x335   : > { %v2860_v29 = vpop.f32.mrf.mxu1 }
 0x336   : > { %2434 = vst.msk [vmem:[%s4007_s15 + $0x8] sm:$0xff] %vm1464_vm10, %v2402_v24  ;;  %v2270_v40 = vadd.f32 %v2860_v29, %v3994_v59 }
 0x337   : > { %v2261_v9 = vpop.f32.mrf.mxu1 }
 0x338   : > { %v2262_v61 = vadd.f32 %v3994_v59, %v2261_v9 }
 0x339   : > { %v2863_v55 = vpop.f32.mrf.mxu1 }
 0x33a   : > { %v2283_v49 = vadd.f32 %v2863_v55, %v3994_v59 }
 0x33b   : > { %v2274_v60 = vpop.f32.mrf.mxu1 }
 0x33c   : > { %v2275_v58 = vadd.f32 %v3994_v59, %v2274_v60 }
 0x33d   : > { %v2864_v52 = vpop.f32.mrf.mxu1 }
 0x33e   : > { %v2286_v4 = vadd.f32 %v2864_v52, %v3994_v59 }
 0x33f   : > { %v2277_v26 = vpop.f32.mrf.mxu1 }
 0x340   : > { %v2825_v36 = vpop.f32.mrf.mxu0  ;;  %v2278_v6 = vadd.f32 %v3994_v59, %v2277_v26 }
 0x341   : > { %v2095_v2 = vadd.f32 %v2825_v36, %v3988_v20  ;;  %v2867_v12 = vpop.f32.mrf.mxu1 }
 0x342   : > { %v2086_v33 = vpop.f32.mrf.mxu0  ;;  %v2299_v18 = vadd.f32 %v2867_v12, %v3994_v59 }
 0x343   : > { %v2375_v22 = vadd.f32 %v2267_v16, %v2095_v2  ;;  %v2087_v54 = vadd.f32 %v3988_v20, %v2086_v33  ;;  %v2290_v17 = vpop.f32.mrf.mxu1 }
 0x344   : > { %v2826_v19 = vpop.f32.mrf.mxu0  ;;  %v2291_v47 = vadd.f32 %v3994_v59, %v2290_v17 }
 0x345   : > { %v2407_v44 = vmax.f32 %v2375_v22, 0.0  ;;  %v2373_v53 = vadd.f32 %v2259_v57, %v2087_v54  ;;  %v2098_v34 = vadd.f32 %v2826_v19, %v3988_v20  ;;  %v2868_v15 = vpop.f32.mrf.mxu1 }
 0x346   : > { %v2089_v32 = vpop.f32.mrf.mxu0  ;;  %v2302_v1 = vadd.f32 %v2868_v15, %v3994_v59 }
 0x347   : > { %2439 = vst.msk [vmem:[%s4007_s15 + $0x30] sm:$0xff] %vm1464_vm10, %v2407_v44  ;;  %v2405_v27 = vmax.f32 %v2373_v53, 0.0  ;;  %v2376_v35 = vadd.f32 %v2270_v40, %v2098_v34  ;;  %v2090_v45 = vadd.f32 %v3988_v20, %v2089_v32  ;;  %v2293_v0 = vpop.f32.mrf.mxu1 }
 0x348   : > { %v2294_v29 = vadd.f32 %v3994_v59, %v2293_v0 }
 0x349   : > { %2437 = vst.msk [vmem:[%s4007_s15 + $0x20] sm:$0xff] %vm1464_vm10, %v2405_v27  ;;  %v2408_v37 = vmax.f32 %v2376_v35, 0.0  ;;  %v2374_v13 = vadd.f32 %v2262_v61, %v2090_v45  ;;  %v2871_v54 = vpop.f32.mrf.mxu1 }
 0x34a   : > { %v2315_v44 = vadd.f32 %v2871_v54, %v3994_v59 }
 0x34b   : > { %2440 = vst.msk [vmem:[%s4007_s15 + $0x38] sm:$0xff] %vm1464_vm10, %v2408_v37  ;;  %v2406_v56 = vmax.f32 %v2374_v13, 0.0  ;;  %v2306_v40 = vpop.f32.mrf.mxu1 }
 0x34c   : > { %v2307_v61 = vadd.f32 %v3994_v59, %v2306_v40 }
 0x34d   : > { %2438 = vst.msk [vmem:[%s4007_s15 + $0x28] sm:$0xff] %vm1464_vm10, %v2406_v56  ;;  %v2872_v19 = vpop.f32.mrf.mxu1 }
 0x34e   : > { %v2318_v37 = vadd.f32 %v2872_v19, %v3994_v59 }
 0x34f   : > { %v2309_v27 = vpop.f32.mrf.mxu1 }
 0x350   : > { %v2310_v52 = vadd.f32 %v3994_v59, %v2309_v27 }
 0x360   : > { %v2829_v30 = vpop.f32.mrf.mxu0 }
 0x361   : > { %v2111_v43 = vadd.f32 %v2829_v30, %v3988_v20 }
 0x362   : > { %v2102_v38 = vpop.f32.mrf.mxu0 }
 0x363   : > { %v2379_v25 = vadd.f32 %v2283_v49, %v2111_v43  ;;  %v2103_v62 = vadd.f32 %v3988_v20, %v2102_v38 }
 0x364   : > { %v2830_v5 = vpop.f32.mrf.mxu0 }
 0x365   : > { %v2411_v63 = vmax.f32 %v2379_v25, 0.0  ;;  %v2377_v10 = vadd.f32 %v2275_v58, %v2103_v62  ;;  %v2114_v48 = vadd.f32 %v2830_v5, %v3988_v20  ;;  %v2875_v62 = vpop.f32.mrf.mxu1 }
 0x366   : > { %v2105_v31 = vpop.f32.mrf.mxu0 }
 0x367   : > { %2443 = vst.msk [vmem:[%s4007_s15 + $0x50] sm:$0xff] %vm1464_vm10, %v2411_v63  ;;  %v2409_v14 = vmax.f32 %v2377_v10, 0.0  ;;  %v2380_v50 = vadd.f32 %v2286_v4, %v2114_v48  ;;  %v2106_v39 = vadd.f32 %v3988_v20, %v2105_v31  ;;  %v2322_v4 = vpop.f32.mrf.mxu1  ;;  %v2331_v63 = vadd.f32 %v2875_v62, %v3994_v59 }
 0x369   : > { %2441 = vst.msk [vmem:[%s4007_s15 + $0x40] sm:$0xff] %vm1464_vm10, %v2409_v14  ;;  %v2412_v7 = vmax.f32 %v2380_v50, 0.0  ;;  %v2378_v42 = vadd.f32 %v2278_v6, %v2106_v39  ;;  %v2876_v5 = vpop.f32.mrf.mxu1  ;;  %v2323_v6 = vadd.f32 %v3994_v59, %v2322_v4 }
 0x36b   : > { %2444 = vst.msk [vmem:[%s4007_s15 + $0x58] sm:$0xff] %vm1464_vm10, %v2412_v7  ;;  %v2410_v11 = vmax.f32 %v2378_v42, 0.0  ;;  %v2325_v14 = vpop.f32.mrf.mxu1  ;;  %v2334_v7 = vadd.f32 %v2876_v5, %v3994_v59 }
 0x36c   : > { %v2326_v15 = vadd.f32 %v3994_v59, %v2325_v14 }
 0x36d   : > { %2442 = vst.msk [vmem:[%s4007_s15 + $0x48] sm:$0xff] %vm1464_vm10, %v2410_v11 }
 0x380   : > { %v2833_v8 = vpop.f32.mrf.mxu0 }
 0x381   : > { %v2127_v23 = vadd.f32 %v2833_v8, %v3988_v20 }
 0x382   : > { %v2118_v21 = vpop.f32.mrf.mxu0 }
 0x383   : > { %v2383_v41 = vadd.f32 %v2299_v18, %v2127_v23  ;;  %v2119_v28 = vadd.f32 %v3988_v20, %v2118_v21 }
 0x384   : > { %v2834_v46 = vpop.f32.mrf.mxu0 }
 0x385   : > { %v2415_v24 = vmax.f32 %v2383_v41, 0.0  ;;  %v2381_v3 = vadd.f32 %v2291_v47, %v2119_v28  ;;  %v2130_v51 = vadd.f32 %v2834_v46, %v3988_v20  ;;  %v2879_v28 = vpop.f32.mrf.mxu1 }
 0x386   : > { %v2121_v16 = vpop.f32.mrf.mxu0 }
 0x387   : > { %2447 = vst.msk [vmem:[%s4007_s15 + $0x70] sm:$0xff] %vm1464_vm10, %v2415_v24  ;;  %v2413_v36 = vmax.f32 %v2381_v3, 0.0  ;;  %v2384_v2 = vadd.f32 %v2302_v1, %v2130_v51  ;;  %v2122_v57 = vadd.f32 %v3988_v20, %v2121_v16  ;;  %v2338_v1 = vpop.f32.mrf.mxu1  ;;  %v2347_v24 = vadd.f32 %v2879_v28, %v3994_v59 }
 0x389   : > { %2445 = vst.msk [vmem:[%s4007_s15 + $0x60] sm:$0xff] %vm1464_vm10, %v2413_v36  ;;  %v2416_v33 = vmax.f32 %v2384_v2, 0.0  ;;  %v2382_v9 = vadd.f32 %v2294_v29, %v2122_v57  ;;  %v2880_v46 = vpop.f32.mrf.mxu1  ;;  %v2339_v29 = vadd.f32 %v3994_v59, %v2338_v1 }
 0x38b   : > { %2448 = vst.msk [vmem:[%s4007_s15 + $0x78] sm:$0xff] %vm1464_vm10, %v2416_v33  ;;  %v2414_v22 = vmax.f32 %v2382_v9, 0.0  ;;  %v2341_v36 = vpop.f32.mrf.mxu1  ;;  %v2350_v33 = vadd.f32 %v2880_v46, %v3994_v59 }
 0x38c   : > { %v2342_v19 = vadd.f32 %v3994_v59, %v2341_v36 }
 0x38d   : > { %2446 = vst.msk [vmem:[%s4007_s15 + $0x68] sm:$0xff] %vm1464_vm10, %v2414_v22 }
 0x3a0   : > { %v2837_v53 = vpop.f32.mrf.mxu0 }
 0x3a1   : > { %v2143_v34 = vadd.f32 %v2837_v53, %v3988_v20 }
 0x3a2   : > { %v2134_v32 = vpop.f32.mrf.mxu0 }
 0x3a3   : > { %v2387_v35 = vadd.f32 %v2315_v44, %v2143_v34  ;;  %v2135_v45 = vadd.f32 %v3988_v20, %v2134_v32 }
 0x3a4   : > { %v2838_v13 = vpop.f32.mrf.mxu0 }
 0x3a5   : > { %v2419_v56 = vmax.f32 %v2387_v35, 0.0  ;;  %v2385_v55 = vadd.f32 %v2307_v61, %v2135_v45  ;;  %v2146_v60 = vadd.f32 %v2838_v13, %v3988_v20  ;;  %v2883_v45 = vpop.f32.mrf.mxu1 }
 0x3a6   : > { %v2137_v49 = vpop.f32.mrf.mxu0  ;;  %v2363_v13 = vadd.f32 %v2883_v45, %v3994_v59 }
 0x3a7   : > { %2451 = vst.msk [vmem:[%s4007_s15 + $0x90] sm:$0xff] %vm1464_vm10, %v2419_v56  ;;  %v2417_v30 = vmax.f32 %v2385_v55, 0.0  ;;  %v2388_v43 = vadd.f32 %v2318_v37, %v2146_v60  ;;  %v2138_v58 = vadd.f32 %v3988_v20, %v2137_v49  ;;  %v2354_v37 = vpop.f32.mrf.mxu1 }
 0x3a8   : > { %v2355_v49 = vadd.f32 %v3994_v59, %v2354_v37 }
 0x3a9   : > { %2449 = vst.msk [vmem:[%s4007_s15 + $0x80] sm:$0xff] %vm1464_vm10, %v2417_v30  ;;  %v2420_v38 = vmax.f32 %v2388_v43, 0.0  ;;  %v2386_v26 = vadd.f32 %v2310_v52, %v2138_v58  ;;  %v2884_v56 = vpop.f32.mrf.mxu1 }
 0x3ab   : > { %2452 = vst.msk [vmem:[%s4007_s15 + $0x98] sm:$0xff] %vm1464_vm10, %v2420_v38  ;;  %v2418_v25 = vmax.f32 %v2386_v26, 0.0  ;;  %v2357_v58 = vpop.f32.mrf.mxu1  ;;  %v2366_v26 = vadd.f32 %v2884_v56, %v3994_v59 }
 0x3ad   : > { %2450 = vst.msk [vmem:[%s4007_s15 + $0x88] sm:$0xff] %vm1464_vm10, %v2418_v25 }
 0x3c0   : > { %v2841_v10 = vpop.f32.mrf.mxu0 }
 0x3c1   : > { %v2159_v48 = vadd.f32 %v2841_v10, %v3988_v20 }
 0x3c2   : > { %v2150_v31 = vpop.f32.mrf.mxu0 }
 0x3c3   : > { %v2391_v50 = vadd.f32 %v2331_v63, %v2159_v48  ;;  %v2151_v39 = vadd.f32 %v3988_v20, %v2150_v31  ;;  %v2358_v63 = vadd.f32 %v3994_v59, %v2357_v58 }
 0x3c4   : > { %v2842_v42 = vpop.f32.mrf.mxu0 }
 0x3c5   : > { %v2423_v11 = vmax.f32 %v2391_v50, 0.0  ;;  %v2389_v12 = vadd.f32 %v2323_v6, %v2151_v39  ;;  %v2162_v17 = vadd.f32 %v2842_v42, %v3988_v20 }
 0x3c6   : > { %v2153_v18 = vpop.f32.mrf.mxu0 }
 0x3c7   : > { %2455 = vst.msk [vmem:[%s4007_s15 + $0xb0] sm:$0xff] %vm1464_vm10, %v2423_v11  ;;  %v2421_v8 = vmax.f32 %v2389_v12, 0.0  ;;  %v2392_v23 = vadd.f32 %v2334_v7, %v2162_v17  ;;  %v2154_v47 = vadd.f32 %v3988_v20, %v2153_v18 }
 0x3c9   : > { %2453 = vst.msk [vmem:[%s4007_s15 + $0xa0] sm:$0xff] %vm1464_vm10, %v2421_v8  ;;  %v2424_v21 = vmax.f32 %v2392_v23, 0.0  ;;  %v2390_v0 = vadd.f32 %v2326_v15, %v2154_v47 }
 0x3cb   : > { %2456 = vst.msk [vmem:[%s4007_s15 + $0xb8] sm:$0xff] %vm1464_vm10, %v2424_v21  ;;  %v2422_v41 = vmax.f32 %v2390_v0, 0.0 }
 0x3cd   : > { %2454 = vst.msk [vmem:[%s4007_s15 + $0xa8] sm:$0xff] %vm1464_vm10, %v2422_v41 }
 0x3d8   : > { %v2845_v3 = vpop.f32.mrf.mxu0 }
 0x3d9   : > { %v2175_v51 = vadd.f32 %v2845_v3, %v3988_v20 }
 0x3da   : > { %v2166_v16 = vpop.f32.mrf.mxu0 }
 0x3db   : > { %v2395_v2 = vadd.f32 %v2347_v24, %v2175_v51  ;;  %v2167_v57 = vadd.f32 %v3988_v20, %v2166_v16 }
 0x3dc   : > { %v2846_v9 = vpop.f32.mrf.mxu0 }
 0x3dd   : > { %v2427_v22 = vmax.f32 %v2395_v2, 0.0  ;;  %v2393_v54 = vadd.f32 %v2339_v29, %v2167_v57  ;;  %v2178_v40 = vadd.f32 %v2846_v9, %v3988_v20 }
 0x3de   : > { %v2169_v44 = vpop.f32.mrf.mxu0 }
 0x3df   : > { %2459 = vst.msk [vmem:[%s4007_s15 + $0xd0] sm:$0xff] %vm1464_vm10, %v2427_v22  ;;  %v2425_v53 = vmax.f32 %v2393_v54, 0.0  ;;  %v2396_v34 = vadd.f32 %v2350_v33, %v2178_v40  ;;  %v2170_v61 = vadd.f32 %v3988_v20, %v2169_v44 }
 0x3e1   : > { %2457 = vst.msk [vmem:[%s4007_s15 + $0xc0] sm:$0xff] %vm1464_vm10, %v2425_v53  ;;  %v2428_v32 = vmax.f32 %v2396_v34, 0.0  ;;  %v2394_v27 = vadd.f32 %v2342_v19, %v2170_v61 }
 0x3e3   : > { %2460 = vst.msk [vmem:[%s4007_s15 + $0xd8] sm:$0xff] %vm1464_vm10, %v2428_v32  ;;  %v2426_v35 = vmax.f32 %v2394_v27, 0.0 }
 0x3e5   : > { %2458 = vst.msk [vmem:[%s4007_s15 + $0xc8] sm:$0xff] %vm1464_vm10, %v2426_v35 }
 0x3ed   : > { %v2849_v55 = vpop.f32.mrf.mxu0 }
 0x3ee   : > { %v2191_v60 = vadd.f32 %v2849_v55, %v3988_v20 }
 0x3ef   : > { %v2182_v52 = vpop.f32.mrf.mxu0 }
 0x3f0   : > { %v2399_v30 = vadd.f32 %v2363_v13, %v2191_v60  ;;  %v2183_v43 = vadd.f32 %v3988_v20, %v2182_v52 }
 0x3f1   : > { %v2850_v38 = vpop.f32.mrf.mxu0 }
 0x3f2   : > { %v2431_v25 = vmax.f32 %v2399_v30, 0.0  ;;  %v2397_v62 = vadd.f32 %v2355_v49, %v2183_v43  ;;  %v2194_v4 = vadd.f32 %v2850_v38, %v3988_v20 }
 0x3f3   : > { %v2185_v5 = vpop.f32.mrf.mxu0 }
 0x3f4   : > { %2463 = vst.msk [vmem:[%s4007_s15 + $0xf0] sm:$0xff] %vm1464_vm10, %v2431_v25  ;;  %v2429_v10 = vmax.f32 %v2397_v62, 0.0  ;;  %v2400_v48 = vadd.f32 %v2366_v26, %v2194_v4  ;;  %v2186_v6 = vadd.f32 %v3988_v20, %v2185_v5 }
 0x3f6   : > { %2461 = vst.msk [vmem:[%s4007_s15 + $0xe0] sm:$0xff] %vm1464_vm10, %v2429_v10  ;;  %v2432_v31 = vmax.f32 %v2400_v48, 0.0  ;;  %v2398_v14 = vadd.f32 %v2358_v63, %v2186_v6 }
 0x3f8   : > { %2464 = vst.msk [vmem:[%s4007_s15 + $0xf8] sm:$0xff] %vm1464_vm10, %v2432_v31  ;;  %v2430_v50 = vmax.f32 %v2398_v14, 0.0 }
 0x3fa   : > { %2462 = vst.msk [vmem:[%s4007_s15 + $0xe8] sm:$0xff] %vm1464_vm10, %v2430_v50 }
 0x3fb   : > { %3008 = shalt.err (!%p3005_p5)
}
 0x3fc   : > { %s3009_s27 = scalar_lea.hbm %s4131_s26, 4096  ;;  %s3013_s29 = scalar_lea.hbm %s4196_s9, 8192 }
 0x3fd   : > { %p3010_p6 = scmp.ne.s32.totalorder %s4131_s26, %s3009_s27  ;;  %p3014_p10 = scmp.lt.s32.totalorder %s4131_s26, %s4196_s9 }
 0x3fe   : > { %p3015_p11 = scmp.lt.s32.totalorder %s3013_s29, %s3009_s27 }
 0x3ff   : > { %p3011_p7 = pnand %p3010_p6, %p3173_p4 }
 0x400   : > { %p3016_p12 = por %p3015_p11, %p3014_p10 }
 0x401   : > { %p3012_p9 = pneg %p3011_p7 }
 0x403   : > { %p3017_p13 = pnand %p3016_p12, %p3012_p9 }
 0x405   : > { %3020 = shalt.err (!%p3017_p13)
}
 0x406   : > { %s3082_s28 = smov 128  }
 0x407   : > { %2890 = dma.vmem_to_hbm [thread:$0]  (%p3173_p4), %s4135_s24, 4096, %s4131_s26, %s4141_s12, %s3082_s28, %s3082_s28, %s4209_s23  }
 0x408 PF: > { %p2896_p0 = scmp.ge.s32.totalorder %s3071_s14, 2  ;;  %s2497_s20 = sand.u32 1, %s3051_s30  }
 0x409   : > { %s2498_s0 = scalar_lea.sflag [#allocation3], %s2497_s20 }
 0x40a   : > { %p2893_p1 = pnand %p2896_p0, %p3180_p8 }
 0x40c   : > { %p2894_p2 = pneg %p2893_p1 }
 0x40e   : > { %3046 = dma.done.wait (%p2894_p2), %s2498_s0, 4096  }
 0x40f   : > { %3048 = vsyncadd (%p2894_p2), %s2498_s0, 4294963200  ;;  %s22_s14 = sadd.s32 1, %s3071_s14   ;;  %s4211_s30 = smov %s3055_s10 }
 0x410   : > { %p19_p3 = scmp.ge.s32.totalorder %s22_s14, 4   ;;  %s4212_s10 = smov %s3059_s11 }
 0x411   : > { %s4213_s11 = smov %s3186_s22  ;;  %s4214_s12 = smov %s3067_s13 }
 0x412   : > { %s4215_s13 = smov %s4217_s17  ;;  %21 = sbr.rel (!%p19_p3) target bundleno = 6 (0x6), region = 92 }
 0x417   :  { %2503 = vsyncpa [#allocation3], 1 }
 0x418   :  { %2505 = vsyncpa [#allocation3 + $0x1], 1 }

</bundles_post_ra>
